<compile_context>
chip_gen: v5e
topology: v5e:2x2
jax: 0.10.0
libtpu: 0.0.40
codegen_flags: <defaults>
</compile_context>

<pallas_src>
import functools

import jax
import jax.numpy as jnp
from jax import lax
from jax.experimental import pallas as pl
from jax.experimental.pallas import tpu as pltpu


# ----------------------------- Pallas kernel -------------------------------

def _fused_net_kernel(B, p1_ref, w1_ref, b1_ref, w2_ref, b2_ref,
                      wf1_ref, bf1_ref, wf2_ref, bf2_ref,
                      out_ref, a1_ref):
    """One grid step == B images.  All channel axes are zero-padded to 128 lanes.

    Row layouts (b = image index inside the block):
      p1_ref : (1, 4, 144*B, 32)  rows = (pi*12+pj)*B + b, group = pool offset
      a1_ref : (144*B, 128) f32   rows = (pi*12+pj)*B + b   (pooled+relu conv1)
      conv2 band for output row qi: band rows = qj*B + b
      out_ref: (B, 128)           rows = b
    """
    f32, bf16 = jnp.float32, jnp.bfloat16
    w1 = w1_ref[...]                                      # (32, 128) bf16
    b1 = b1_ref[...]                                      # (1, 128)  f32

    # ---- conv1 + 2x2 maxpool + relu, in B chunks of 144 rows ----------------
    # Incremental max over the 4 pool-window groups keeps <=2 live (144,128)
    # f32 GEMM results in vregs; one giant (144*B,32) GEMM would push the
    # accumulator through VMEM instead.
    def conv1_chunk(c, carry):
        base = pl.multiple_of(c * 144, 8)
        m = jnp.dot(p1_ref[0, 0, pl.ds(base, 144), :], w1,
                    preferred_element_type=f32)
        for g in range(1, 4):
            m = jnp.maximum(
                m, jnp.dot(p1_ref[0, g, pl.ds(base, 144), :], w1,
                           preferred_element_type=f32))
        a1_ref[pl.ds(base, 144), :] = jnp.maximum(m + b1, 0.0)
        return carry

    lax.fori_loop(0, B, conv1_chunk, 0)

    # ---- conv2 (25 shifted taps) + 2x2 maxpool + relu, fused into fc1 -------
    b2 = b2_ref[...]
    h = jnp.zeros((B, 128), f32)                          # fc1 accumulator
    for ri in range(4):                                   # pooled output row
        def di_body(di, carry, ri=ri):
            acc0, acc1 = carry                            # bands qi=2ri, 2ri+1
            row0 = (2 * ri + di) * 12
            for dj in range(5):                           # unrolled x5 body
                w2t = w2_ref[di * 5 + dj]                 # (128,128) bf16
                s0 = pl.multiple_of((row0 + dj) * B, 8)
                s1 = pl.multiple_of((row0 + 12 + dj) * B, 8)
                lhs0 = a1_ref[pl.ds(s0, 8 * B), :].astype(bf16)
                lhs1 = a1_ref[pl.ds(s1, 8 * B), :].astype(bf16)
                acc0 = acc0 + jnp.dot(lhs0, w2t, preferred_element_type=f32)
                acc1 = acc1 + jnp.dot(lhs1, w2t, preferred_element_type=f32)
            return acc0, acc1

        # TODO(synk): pack ~12 conv2 taps into lane ranges (pltpu.roll) to cut
        # conv2 MXU pushes ~8x; today lanes 10..127 of each LHS are zero pad.
        zero = jnp.zeros((8 * B, 128), f32)
        band0, band1 = lax.fori_loop(0, 5, di_body, (zero, zero))
        band0 = band0 + b2
        band1 = band1 + b2
        for rj in range(4):                               # pooled output col
            c0 = 2 * rj * B
            pooled = jnp.maximum(
                jnp.maximum(band0[c0:c0 + B], band0[c0 + B:c0 + 2 * B]),
                jnp.maximum(band1[c0:c0 + B], band1[c0 + B:c0 + 2 * B]))
            pooled = jnp.maximum(pooled, 0.0).astype(bf16)          # (B, 128)
            h = h + jnp.dot(pooled, wf1_ref[ri * 4 + rj],
                            preferred_element_type=f32)

    # TODO(synk): Dropout2d / F.dropout run in inference mode (identity).
    h = jnp.maximum(h + bf1_ref[...], 0.0)                # fc1 bias + relu

    # ---- fc2 + log_softmax ---------------------------------------------------
    # Padded logit lanes carry a -1e30 bias so the lane-wide max/sum reductions
    # only see the 10 valid classes.
    logits = jnp.dot(h.astype(bf16), wf2_ref[...],
                     preferred_element_type=f32) + bf2_ref[...]
    m = jnp.max(logits, axis=-1, keepdims=True)
    s = logits - m
    lse = jnp.log(jnp.sum(jnp.exp(s), axis=-1, keepdims=True))
    out_ref[...] = s - lse                                # (B,128); host keeps [:, :10]


# ------------------------------ host-side prep ------------------------------

def _im2col_conv1_grouped(x, B):
    """(N,1,28,28) -> (N//B, 4, 144*B, 32) bf16 patch blocks.

    Group g = 2*u+v is the position inside the 2x2 max-pool window; within a
    block, row index = (pi*12+pj)*B + b so that (a) pool1 is an elementwise max
    over the 4 groups and (b) every conv2 tap later reads one contiguous
    8*B-row slab of the activation.  K = 25 (di,dj) taps, zero-padded to 32.
    """
    n = x.shape[0]
    nb = n // B
    img = x[:, 0]                                             # (N, 28, 28)
    cols = [img[:, di:di + 24, dj:dj + 24]
            for di in range(5) for dj in range(5)]
    p = jnp.stack(cols, axis=-1)                              # (N, 24, 24, 25)
    p = p.reshape(n, 12, 2, 12, 2, 25)                        # (n, pi, u, pj, v, t)
    p = jnp.transpose(p, (2, 4, 1, 3, 0, 5))                  # (u, v, pi, pj, n, t)
    p = p.reshape(4, 12, 12, nb, B, 25)                       # (g, pi, pj, blk, b, t)
    p = jnp.transpose(p, (3, 0, 1, 2, 4, 5))                  # (blk, g, pi, pj, b, t)
    p = p.reshape(nb, 4, 144 * B, 25)
    p = jnp.pad(p, ((0, 0), (0, 0), (0, 0), (0, 7)))          # taps 25 -> 32
    return p.astype(jnp.bfloat16)


def _prepare_params(params):
    """Repack PyTorch-layout params into lane-dense (padded-to-128) bf16 matrices."""
    w1, b1, w2, b2, wf1, bf1, wf2, bf2 = params
    f32, bf16 = jnp.float32, jnp.bfloat16
    # conv1 (10,1,5,5) -> (32,128): rows = (di,dj) taps, cols = cout.
    w1m = jnp.transpose(w1[:, 0], (1, 2, 0)).reshape(25, 10)
    w1p = jnp.zeros((32, 128), f32).at[:25, :10].set(w1m).astype(bf16)
    b1p = jnp.zeros((1, 128), f32).at[0, :10].set(b1)
    # conv2 (20,10,5,5) -> (25,128,128): [tap, cin, cout].
    w2m = jnp.transpose(w2, (2, 3, 1, 0)).reshape(25, 10, 20)
    w2p = jnp.zeros((25, 128, 128), f32).at[:, :10, :20].set(w2m).astype(bf16)
    b2p = jnp.zeros((1, 128), f32).at[0, :20].set(b2)
    # fc1 (50,320): fold the NCHW flatten order (c*16 + h*4 + w) into the
    # weights -> (16,128,128): [spatial s=h*4+w, cin, out].
    wf1m = jnp.transpose(wf1.reshape(50, 20, 16), (2, 1, 0))   # (16, 20, 50)
    wf1p = jnp.zeros((16, 128, 128), f32).at[:, :20, :50].set(wf1m).astype(bf16)
    bf1p = jnp.zeros((1, 128), f32).at[0, :50].set(bf1)
    # fc2 (10,50) -> (128,128); padded logit lanes biased to -1e30 so they
    # vanish under the in-kernel log-softmax reductions.
    wf2p = jnp.zeros((128, 128), f32).at[:50, :10].set(wf2.T).astype(bf16)
    bf2p = jnp.full((1, 128), -1e30, f32).at[0, :10].set(bf2)
    return (w1p, b1p, w2p, b2p, wf1p, bf1p, wf2p, bf2p)


def net_forward(x, params, block_b=8):
    """Fused Net forward.  block_b = images per grid step (multiple of 8)."""
    assert block_b % 8 == 0
    B = block_b
    n = x.shape[0]
    nb = -(-n // B)                      # ceil(n / B)
    npad = nb * B
    if npad != n:
        x = jnp.pad(x, ((0, npad - n), (0, 0), (0, 0), (0, 0)))

    p1 = _im2col_conv1_grouped(x, B)     # (nb, 4, 144*B, 32) bf16
    w1p, b1p, w2p, b2p, wf1p, bf1p, wf2p, bf2p = _prepare_params(params)

    out_padded = pl.pallas_call(
        functools.partial(_fused_net_kernel, B),
        out_shape=jax.ShapeDtypeStruct((nb * B, 128), jnp.float32),
        grid=(nb,),
        in_specs=[
            pl.BlockSpec((1, 4, 144 * B, 32), lambda i: (i, 0, 0, 0)),  # patches
            pl.BlockSpec((32, 128), lambda i: (0, 0)),                  # conv1 W
            pl.BlockSpec((1, 128), lambda i: (0, 0)),                   # conv1 b
            pl.BlockSpec((25, 128, 128), lambda i: (0, 0, 0)),          # conv2 W (per tap)
            pl.BlockSpec((1, 128), lambda i: (0, 0)),                   # conv2 b
            pl.BlockSpec((16, 128, 128), lambda i: (0, 0, 0)),          # fc1 W (per spatial)
            pl.BlockSpec((1, 128), lambda i: (0, 0)),                   # fc1 b
            pl.BlockSpec((128, 128), lambda i: (0, 0)),                 # fc2 W
            pl.BlockSpec((1, 128), lambda i: (0, 0)),                   # fc2 b (pads=-1e30)
        ],
        out_specs=pl.BlockSpec((B, 128), lambda i: (i, 0)),
        scratch_shapes=[
            pltpu.VMEM((144 * B, 128), jnp.float32),   # pooled conv1 activation
        ],
        compiler_params=pltpu.CompilerParams(
            dimension_semantics=("parallel",),
            vmem_limit_bytes=32 * 1024 * 1024),
    )(p1, w1p, b1p, w2p, b2p, wf1p, bf1p, wf2p, bf2p)

    return out_padded[:n, :10]


# ------------------------------ reference & init ----------------------------

def _reference_forward(x, params):
    """Pure-JAX/XLA f32 reference mirroring the PyTorch module (eval mode)."""
    w1, b1, w2, b2, wf1, bf1, wf2, bf2 = params
    dn = ("NCHW", "OIHW", "NCHW")
    hp = jax.lax.Precision.HIGHEST
    y = jax.lax.conv_general_dilated(x, w1, (1, 1), "VALID",
                                     dimension_numbers=dn, precision=hp)
    y = y + b1[None, :, None, None]
    y = jax.lax.reduce_window(y, -jnp.inf, jax.lax.max,
                              (1, 1, 2, 2), (1, 1, 2, 2), "VALID")
    y = jnp.maximum(y, 0.0)
    y = jax.lax.conv_general_dilated(y, w2, (1, 1), "VALID",
                                     dimension_numbers=dn, precision=hp)
    y = y + b2[None, :, None, None]
    y = jax.lax.reduce_window(y, -jnp.inf, jax.lax.max,
                              (1, 1, 2, 2), (1, 1, 2, 2), "VALID")
    y = jnp.maximum(y, 0.0)
    y = y.reshape(y.shape[0], 320)
    y = jnp.maximum(jnp.dot(y, wf1.T, precision=hp) + bf1, 0.0)
    y = jnp.dot(y, wf2.T, precision=hp) + bf2
    return jax.nn.log_softmax(y, axis=-1)


def init_params(key):
    ks = jax.random.split(key, 8)
    w1 = jax.random.normal(ks[0], (10, 1, 5, 5), jnp.float32) * 0.1
    b1 = jax.random.normal(ks[1], (10,), jnp.float32) * 0.1
    w2 = jax.random.normal(ks[2], (20, 10, 5, 5), jnp.float32) * 0.05
    b2 = jax.random.normal(ks[3], (20,), jnp.float32) * 0.05
    wf1 = jax.random.normal(ks[4], (50, 320), jnp.float32) * 0.05
    bf1 = jax.random.normal(ks[5], (50,), jnp.float32) * 0.05
    wf2 = jax.random.normal(ks[6], (10, 50), jnp.float32) * 0.1
    bf2 = jax.random.normal(ks[7], (10,), jnp.float32) * 0.1
    return (w1, b1, w2, b2, wf1, bf1, wf2, bf2)


if __name__ == "__main__":
    key = jax.random.PRNGKey(0)
    kx, kp = jax.random.split(key)
    # MNIST-style input implied by the 320-feature flatten: (N, 1, 28, 28).
    # N=16 with block_b=8 gives an even grid of 2 (both v7x TCs busy).
    x = jax.random.normal(kx, (16, 1, 28, 28), jnp.float32)
    params = init_params(kp)

    fwd = jax.jit(net_forward)
    out = fwd(x, params)
    jax.block_until_ready(out)

    ref = jax.jit(_reference_forward)(x, params)
    jax.block_until_ready(ref)

    assert out.shape == (16, 10)
    assert bool(jnp.all(jnp.isfinite(out)))
    # log_softmax rows must sum to 1 after exp
    assert jnp.allclose(jnp.sum(jnp.exp(out), axis=-1), 1.0, atol=1e-4)
    # agree with the f32 XLA reference (tolerance covers bf16 MXU operands)
    assert jnp.allclose(out, ref, atol=3e-2, rtol=3e-2), \
        float(jnp.max(jnp.abs(out - ref)))
    print("KERNEL_OK")
</pallas_src>

<mosaic_0001>
module attributes {stable_mosaic.version = 11 : i64} {
  func.func @_fused_net_kernel(%arg0: i32, %arg1: memref<1x4x1152x32xbf16, #tpu.memory_space<vmem>>, %arg2: memref<32x128xbf16, #tpu.memory_space<vmem>>, %arg3: memref<1x128xf32, #tpu.memory_space<vmem>>, %arg4: memref<25x128x128xbf16, #tpu.memory_space<vmem>>, %arg5: memref<1x128xf32, #tpu.memory_space<vmem>>, %arg6: memref<16x128x128xbf16, #tpu.memory_space<vmem>>, %arg7: memref<1x128xf32, #tpu.memory_space<vmem>>, %arg8: memref<128x128xbf16, #tpu.memory_space<vmem>>, %arg9: memref<1x128xf32, #tpu.memory_space<vmem>>, %arg10: memref<8x128xf32, #tpu.memory_space<vmem>>, %arg11: memref<1152x128xf32, #tpu.memory_space<vmem>>) attributes {dimension_semantics = [#tpu.dimension_semantics<parallel>], iteration_bounds = array<i64: 2>, scalar_prefetch = 0 : i64, scratch_operands = 1 : i64, tpu.core_type = #tpu.core_type<tc>, window_params = [{transform_indices = @transform_0, window_bounds = array<i64: 1, 4, 1152, 32>}, {pipeline_mode = #tpu.pipeline_mode<synchronous>, transform_indices = @transform_1, window_bounds = array<i64: 32, 128>}, {pipeline_mode = #tpu.pipeline_mode<synchronous>, transform_indices = @transform_2, window_bounds = array<i64: 1, 128>}, {pipeline_mode = #tpu.pipeline_mode<synchronous>, transform_indices = @transform_3, window_bounds = array<i64: 25, 128, 128>}, {pipeline_mode = #tpu.pipeline_mode<synchronous>, transform_indices = @transform_4, window_bounds = array<i64: 1, 128>}, {pipeline_mode = #tpu.pipeline_mode<synchronous>, transform_indices = @transform_5, window_bounds = array<i64: 16, 128, 128>}, {pipeline_mode = #tpu.pipeline_mode<synchronous>, transform_indices = @transform_6, window_bounds = array<i64: 1, 128>}, {pipeline_mode = #tpu.pipeline_mode<synchronous>, transform_indices = @transform_7, window_bounds = array<i64: 128, 128>}, {pipeline_mode = #tpu.pipeline_mode<synchronous>, transform_indices = @transform_8, window_bounds = array<i64: 1, 128>}, {transform_indices = @transform_9, window_bounds = array<i64: 8, 128>}]} {
    %c0 = arith.constant 0 : index
    %c0_0 = arith.constant 0 : index
    %0 = vector.load %arg2[%c0, %c0_0] : memref<32x128xbf16, #tpu.memory_space<vmem>>, vector<32x128xbf16>
    %c0_1 = arith.constant 0 : index
    %c0_2 = arith.constant 0 : index
    %1 = vector.load %arg3[%c0_1, %c0_2] : memref<1x128xf32, #tpu.memory_space<vmem>>, vector<1x128xf32>
    %c0_i32 = arith.constant 0 : i32
    %c8_i32 = arith.constant 8 : i32
    %2 = arith.addi %c0_i32, %c8_i32 : i32
    %c1_i32 = arith.constant 1 : i32
    scf.for %arg12 = %c0_i32 to %2 step %c1_i32  : i32 {
      %c144_i32 = arith.constant 144 : i32
      %279 = arith.muli %arg12, %c144_i32 : i32
      %280 = tpu.assume_multiple %279, 8 : i32
      %c0_102 = arith.constant 0 : index
      %c0_103 = arith.constant 0 : index
      %281 = arith.index_cast %280 : i32 to index
      %c0_104 = arith.constant 0 : index
      %282 = vector.load %arg1[%c0_102, %c0_103, %281, %c0_104] : memref<1x4x1152x32xbf16, #tpu.memory_space<vmem>>, vector<1x1x144x32xbf16>
      %283 = vector.shape_cast %282 : vector<1x1x144x32xbf16> to vector<144x32xbf16>
      %cst_105 = arith.constant dense<0.000000e+00> : vector<144x128xf32>
      %284 = tpu.matmul %283, %0, %cst_105 {dimension_numbers = #tpu.dot_dimension_numbers<[1], [0], [0], [1], [0, 0, 1, 1], [], []>} : vector<144x32xbf16>, vector<32x128xbf16>, vector<144x128xf32> -> vector<144x128xf32>
      %c0_106 = arith.constant 0 : index
      %c1_107 = arith.constant 1 : index
      %285 = arith.index_cast %280 : i32 to index
      %c0_108 = arith.constant 0 : index
      %286 = vector.load %arg1[%c0_106, %c1_107, %285, %c0_108] : memref<1x4x1152x32xbf16, #tpu.memory_space<vmem>>, vector<1x1x144x32xbf16>
      %287 = vector.shape_cast %286 : vector<1x1x144x32xbf16> to vector<144x32xbf16>
      %cst_109 = arith.constant dense<0.000000e+00> : vector<144x128xf32>
      %288 = tpu.matmul %287, %0, %cst_109 {dimension_numbers = #tpu.dot_dimension_numbers<[1], [0], [0], [1], [0, 0, 1, 1], [], []>} : vector<144x32xbf16>, vector<32x128xbf16>, vector<144x128xf32> -> vector<144x128xf32>
      %289 = arith.maximumf %284, %288 : vector<144x128xf32>
      %c0_110 = arith.constant 0 : index
      %c2_111 = arith.constant 2 : index
      %290 = arith.index_cast %280 : i32 to index
      %c0_112 = arith.constant 0 : index
      %291 = vector.load %arg1[%c0_110, %c2_111, %290, %c0_112] : memref<1x4x1152x32xbf16, #tpu.memory_space<vmem>>, vector<1x1x144x32xbf16>
      %292 = vector.shape_cast %291 : vector<1x1x144x32xbf16> to vector<144x32xbf16>
      %cst_113 = arith.constant dense<0.000000e+00> : vector<144x128xf32>
      %293 = tpu.matmul %292, %0, %cst_113 {dimension_numbers = #tpu.dot_dimension_numbers<[1], [0], [0], [1], [0, 0, 1, 1], [], []>} : vector<144x32xbf16>, vector<32x128xbf16>, vector<144x128xf32> -> vector<144x128xf32>
      %294 = arith.maximumf %289, %293 : vector<144x128xf32>
      %c0_114 = arith.constant 0 : index
      %c3_115 = arith.constant 3 : index
      %295 = arith.index_cast %280 : i32 to index
      %c0_116 = arith.constant 0 : index
      %296 = vector.load %arg1[%c0_114, %c3_115, %295, %c0_116] : memref<1x4x1152x32xbf16, #tpu.memory_space<vmem>>, vector<1x1x144x32xbf16>
      %297 = vector.shape_cast %296 : vector<1x1x144x32xbf16> to vector<144x32xbf16>
      %cst_117 = arith.constant dense<0.000000e+00> : vector<144x128xf32>
      %298 = tpu.matmul %297, %0, %cst_117 {dimension_numbers = #tpu.dot_dimension_numbers<[1], [0], [0], [1], [0, 0, 1, 1], [], []>} : vector<144x32xbf16>, vector<32x128xbf16>, vector<144x128xf32> -> vector<144x128xf32>
      %299 = arith.maximumf %294, %298 : vector<144x128xf32>
      %300 = vector.broadcast %1 : vector<1x128xf32> to vector<144x128xf32>
      %301 = arith.addf %299, %300 : vector<144x128xf32>
      %cst_118 = arith.constant 0.000000e+00 : f32
      %302 = vector.broadcast %cst_118 : f32 to vector<144x128xf32>
      %303 = arith.maximumf %301, %302 : vector<144x128xf32>
      %304 = arith.index_cast %280 : i32 to index
      %c0_119 = arith.constant 0 : index
      %305 = vector.load %arg11[%304, %c0_119] : memref<1152x128xf32, #tpu.memory_space<vmem>>, vector<144x128xf32>
      tpu.vector_store %arg11[%304, %c0_119], %303 {strides = array<i32>} : memref<1152x128xf32, #tpu.memory_space<vmem>>, vector<144x128xf32>,
    }
    %c8_i32_3 = arith.constant 8 : i32
    %c0_4 = arith.constant 0 : index
    %c0_5 = arith.constant 0 : index
    %3 = vector.load %arg5[%c0_4, %c0_5] : memref<1x128xf32, #tpu.memory_space<vmem>>, vector<1x128xf32>
    %cst = arith.constant 0.000000e+00 : f32
    %4 = vector.broadcast %cst : f32 to vector<8x128xf32>
    %cst_6 = arith.constant 0.000000e+00 : f32
    %5 = vector.broadcast %cst_6 : f32 to vector<64x128xf32>
    %c0_i32_7 = arith.constant 0 : i32
    %c5_i32 = arith.constant 5 : i32
    %6 = arith.addi %c0_i32_7, %c5_i32 : i32
    %c1_i32_8 = arith.constant 1 : i32
    %7:2 = scf.for %arg12 = %c0_i32_7 to %6 step %c1_i32_8 iter_args(%arg13 = %5, %arg14 = %5) -> (vector<64x128xf32>, vector<64x128xf32>)  : i32 {
      %c0_i32_102 = arith.constant 0 : i32
      %279 = arith.addi %c0_i32_102, %arg12 : i32
      %c12_i32 = arith.constant 12 : i32
      %280 = arith.muli %279, %c12_i32 : i32
      %c5_i32_103 = arith.constant 5 : i32
      %281 = arith.muli %arg12, %c5_i32_103 : i32
      %c0_i32_104 = arith.constant 0 : i32
      %282 = arith.addi %281, %c0_i32_104 : i32
      %283 = arith.index_cast %282 : i32 to index
      %c0_105 = arith.constant 0 : index
      %c0_106 = arith.constant 0 : index
      %284 = vector.load %arg4[%283, %c0_105, %c0_106] : memref<25x128x128xbf16, #tpu.memory_space<vmem>>, vector<1x128x128xbf16>
      %285 = vector.shape_cast %284 : vector<1x128x128xbf16> to vector<128x128xbf16>
      %c0_i32_107 = arith.constant 0 : i32
      %286 = arith.addi %280, %c0_i32_107 : i32
      %c8_i32_108 = arith.constant 8 : i32
      %287 = arith.muli %286, %c8_i32_108 : i32
      %288 = tpu.assume_multiple %287, 8 : i32
      %c12_i32_109 = arith.constant 12 : i32
      %289 = arith.addi %280, %c12_i32_109 : i32
      %c0_i32_110 = arith.constant 0 : i32
      %290 = arith.addi %289, %c0_i32_110 : i32
      %c8_i32_111 = arith.constant 8 : i32
      %291 = arith.muli %290, %c8_i32_111 : i32
      %292 = tpu.assume_multiple %291, 8 : i32
      %293 = arith.index_cast %288 : i32 to index
      %c0_112 = arith.constant 0 : index
      %294 = vector.load %arg11[%293, %c0_112] : memref<1152x128xf32, #tpu.memory_space<vmem>>, vector<64x128xf32>
      %295 = arith.truncf %294 : vector<64x128xf32> to vector<64x128xbf16>
      %296 = arith.index_cast %292 : i32 to index
      %c0_113 = arith.constant 0 : index
      %297 = vector.load %arg11[%296, %c0_113] : memref<1152x128xf32, #tpu.memory_space<vmem>>, vector<64x128xf32>
      %298 = arith.truncf %297 : vector<64x128xf32> to vector<64x128xbf16>
      %cst_114 = arith.constant dense<0.000000e+00> : vector<64x128xf32>
      %299 = tpu.matmul %295, %285, %cst_114 {dimension_numbers = #tpu.dot_dimension_numbers<[1], [0], [0], [1], [0, 0, 1, 1], [], []>} : vector<64x128xbf16>, vector<128x128xbf16>, vector<64x128xf32> -> vector<64x128xf32>
      %300 = arith.addf %arg13, %299 : vector<64x128xf32>
      %cst_115 = arith.constant dense<0.000000e+00> : vector<64x128xf32>
      %301 = tpu.matmul %298, %285, %cst_115 {dimension_numbers = #tpu.dot_dimension_numbers<[1], [0], [0], [1], [0, 0, 1, 1], [], []>} : vector<64x128xbf16>, vector<128x128xbf16>, vector<64x128xf32> -> vector<64x128xf32>
      %302 = arith.addf %arg14, %301 : vector<64x128xf32>
      %c5_i32_116 = arith.constant 5 : i32
      %303 = arith.muli %arg12, %c5_i32_116 : i32
      %c1_i32_117 = arith.constant 1 : i32
      %304 = arith.addi %303, %c1_i32_117 : i32
      %305 = arith.index_cast %304 : i32 to index
      %c0_118 = arith.constant 0 : index
      %c0_119 = arith.constant 0 : index
      %306 = vector.load %arg4[%305, %c0_118, %c0_119] : memref<25x128x128xbf16, #tpu.memory_space<vmem>>, vector<1x128x128xbf16>
      %307 = vector.shape_cast %306 : vector<1x128x128xbf16> to vector<128x128xbf16>
      %c1_i32_120 = arith.constant 1 : i32
      %308 = arith.addi %280, %c1_i32_120 : i32
      %c8_i32_121 = arith.constant 8 : i32
      %309 = arith.muli %308, %c8_i32_121 : i32
      %310 = tpu.assume_multiple %309, 8 : i32
      %c12_i32_122 = arith.constant 12 : i32
      %311 = arith.addi %280, %c12_i32_122 : i32
      %c1_i32_123 = arith.constant 1 : i32
      %312 = arith.addi %311, %c1_i32_123 : i32
      %c8_i32_124 = arith.constant 8 : i32
      %313 = arith.muli %312, %c8_i32_124 : i32
      %314 = tpu.assume_multiple %313, 8 : i32
      %315 = arith.index_cast %310 : i32 to index
      %c0_125 = arith.constant 0 : index
      %316 = vector.load %arg11[%315, %c0_125] : memref<1152x128xf32, #tpu.memory_space<vmem>>, vector<64x128xf32>
      %317 = arith.truncf %316 : vector<64x128xf32> to vector<64x128xbf16>
      %318 = arith.index_cast %314 : i32 to index
      %c0_126 = arith.constant 0 : index
      %319 = vector.load %arg11[%318, %c0_126] : memref<1152x128xf32, #tpu.memory_space<vmem>>, vector<64x128xf32>
      %320 = arith.truncf %319 : vector<64x128xf32> to vector<64x128xbf16>
      %cst_127 = arith.constant dense<0.000000e+00> : vector<64x128xf32>
      %321 = tpu.matmul %317, %307, %cst_127 {dimension_numbers = #tpu.dot_dimension_numbers<[1], [0], [0], [1], [0, 0, 1, 1], [], []>} : vector<64x128xbf16>, vector<128x128xbf16>, vector<64x128xf32> -> vector<64x128xf32>
      %322 = arith.addf %300, %321 : vector<64x128xf32>
      %cst_128 = arith.constant dense<0.000000e+00> : vector<64x128xf32>
      %323 = tpu.matmul %320, %307, %cst_128 {dimension_numbers = #tpu.dot_dimension_numbers<[1], [0], [0], [1], [0, 0, 1, 1], [], []>} : vector<64x128xbf16>, vector<128x128xbf16>, vector<64x128xf32> -> vector<64x128xf32>
      %324 = arith.addf %302, %323 : vector<64x128xf32>
      %c5_i32_129 = arith.constant 5 : i32
      %325 = arith.muli %arg12, %c5_i32_129 : i32
      %c2_i32 = arith.constant 2 : i32
      %326 = arith.addi %325, %c2_i32 : i32
      %327 = arith.index_cast %326 : i32 to index
      %c0_130 = arith.constant 0 : index
      %c0_131 = arith.constant 0 : index
      %328 = vector.load %arg4[%327, %c0_130, %c0_131] : memref<25x128x128xbf16, #tpu.memory_space<vmem>>, vector<1x128x128xbf16>
      %329 = vector.shape_cast %328 : vector<1x128x128xbf16> to vector<128x128xbf16>
      %c2_i32_132 = arith.constant 2 : i32
      %330 = arith.addi %280, %c2_i32_132 : i32
      %c8_i32_133 = arith.constant 8 : i32
      %331 = arith.muli %330, %c8_i32_133 : i32
      %332 = tpu.assume_multiple %331, 8 : i32
      %c12_i32_134 = arith.constant 12 : i32
      %333 = arith.addi %280, %c12_i32_134 : i32
      %c2_i32_135 = arith.constant 2 : i32
      %334 = arith.addi %333, %c2_i32_135 : i32
      %c8_i32_136 = arith.constant 8 : i32
      %335 = arith.muli %334, %c8_i32_136 : i32
      %336 = tpu.assume_multiple %335, 8 : i32
      %337 = arith.index_cast %332 : i32 to index
      %c0_137 = arith.constant 0 : index
      %338 = vector.load %arg11[%337, %c0_137] : memref<1152x128xf32, #tpu.memory_space<vmem>>, vector<64x128xf32>
      %339 = arith.truncf %338 : vector<64x128xf32> to vector<64x128xbf16>
      %340 = arith.index_cast %336 : i32 to index
      %c0_138 = arith.constant 0 : index
      %341 = vector.load %arg11[%340, %c0_138] : memref<1152x128xf32, #tpu.memory_space<vmem>>, vector<64x128xf32>
      %342 = arith.truncf %341 : vector<64x128xf32> to vector<64x128xbf16>
      %cst_139 = arith.constant dense<0.000000e+00> : vector<64x128xf32>
      %343 = tpu.matmul %339, %329, %cst_139 {dimension_numbers = #tpu.dot_dimension_numbers<[1], [0], [0], [1], [0, 0, 1, 1], [], []>} : vector<64x128xbf16>, vector<128x128xbf16>, vector<64x128xf32> -> vector<64x128xf32>
      %344 = arith.addf %322, %343 : vector<64x128xf32>
      %cst_140 = arith.constant dense<0.000000e+00> : vector<64x128xf32>
      %345 = tpu.matmul %342, %329, %cst_140 {dimension_numbers = #tpu.dot_dimension_numbers<[1], [0], [0], [1], [0, 0, 1, 1], [], []>} : vector<64x128xbf16>, vector<128x128xbf16>, vector<64x128xf32> -> vector<64x128xf32>
      %346 = arith.addf %324, %345 : vector<64x128xf32>
      %c5_i32_141 = arith.constant 5 : i32
      %347 = arith.muli %arg12, %c5_i32_141 : i32
      %c3_i32 = arith.constant 3 : i32
      %348 = arith.addi %347, %c3_i32 : i32
      %349 = arith.index_cast %348 : i32 to index
      %c0_142 = arith.constant 0 : index
      %c0_143 = arith.constant 0 : index
      %350 = vector.load %arg4[%349, %c0_142, %c0_143] : memref<25x128x128xbf16, #tpu.memory_space<vmem>>, vector<1x128x128xbf16>
      %351 = vector.shape_cast %350 : vector<1x128x128xbf16> to vector<128x128xbf16>
      %c3_i32_144 = arith.constant 3 : i32
      %352 = arith.addi %280, %c3_i32_144 : i32
      %c8_i32_145 = arith.constant 8 : i32
      %353 = arith.muli %352, %c8_i32_145 : i32
      %354 = tpu.assume_multiple %353, 8 : i32
      %c12_i32_146 = arith.constant 12 : i32
      %355 = arith.addi %280, %c12_i32_146 : i32
      %c3_i32_147 = arith.constant 3 : i32
      %356 = arith.addi %355, %c3_i32_147 : i32
      %c8_i32_148 = arith.constant 8 : i32
      %357 = arith.muli %356, %c8_i32_148 : i32
      %358 = tpu.assume_multiple %357, 8 : i32
      %359 = arith.index_cast %354 : i32 to index
      %c0_149 = arith.constant 0 : index
      %360 = vector.load %arg11[%359, %c0_149] : memref<1152x128xf32, #tpu.memory_space<vmem>>, vector<64x128xf32>
      %361 = arith.truncf %360 : vector<64x128xf32> to vector<64x128xbf16>
      %362 = arith.index_cast %358 : i32 to index
      %c0_150 = arith.constant 0 : index
      %363 = vector.load %arg11[%362, %c0_150] : memref<1152x128xf32, #tpu.memory_space<vmem>>, vector<64x128xf32>
      %364 = arith.truncf %363 : vector<64x128xf32> to vector<64x128xbf16>
      %cst_151 = arith.constant dense<0.000000e+00> : vector<64x128xf32>
      %365 = tpu.matmul %361, %351, %cst_151 {dimension_numbers = #tpu.dot_dimension_numbers<[1], [0], [0], [1], [0, 0, 1, 1], [], []>} : vector<64x128xbf16>, vector<128x128xbf16>, vector<64x128xf32> -> vector<64x128xf32>
      %366 = arith.addf %344, %365 : vector<64x128xf32>
      %cst_152 = arith.constant dense<0.000000e+00> : vector<64x128xf32>
      %367 = tpu.matmul %364, %351, %cst_152 {dimension_numbers = #tpu.dot_dimension_numbers<[1], [0], [0], [1], [0, 0, 1, 1], [], []>} : vector<64x128xbf16>, vector<128x128xbf16>, vector<64x128xf32> -> vector<64x128xf32>
      %368 = arith.addf %346, %367 : vector<64x128xf32>
      %c5_i32_153 = arith.constant 5 : i32
      %369 = arith.muli %arg12, %c5_i32_153 : i32
      %c4_i32 = arith.constant 4 : i32
      %370 = arith.addi %369, %c4_i32 : i32
      %371 = arith.index_cast %370 : i32 to index
      %c0_154 = arith.constant 0 : index
      %c0_155 = arith.constant 0 : index
      %372 = vector.load %arg4[%371, %c0_154, %c0_155] : memref<25x128x128xbf16, #tpu.memory_space<vmem>>, vector<1x128x128xbf16>
      %373 = vector.shape_cast %372 : vector<1x128x128xbf16> to vector<128x128xbf16>
      %c4_i32_156 = arith.constant 4 : i32
      %374 = arith.addi %280, %c4_i32_156 : i32
      %c8_i32_157 = arith.constant 8 : i32
      %375 = arith.muli %374, %c8_i32_157 : i32
      %376 = tpu.assume_multiple %375, 8 : i32
      %c12_i32_158 = arith.constant 12 : i32
      %377 = arith.addi %280, %c12_i32_158 : i32
      %c4_i32_159 = arith.constant 4 : i32
      %378 = arith.addi %377, %c4_i32_159 : i32
      %c8_i32_160 = arith.constant 8 : i32
      %379 = arith.muli %378, %c8_i32_160 : i32
      %380 = tpu.assume_multiple %379, 8 : i32
      %381 = arith.index_cast %376 : i32 to index
      %c0_161 = arith.constant 0 : index
      %382 = vector.load %arg11[%381, %c0_161] : memref<1152x128xf32, #tpu.memory_space<vmem>>, vector<64x128xf32>
      %383 = arith.truncf %382 : vector<64x128xf32> to vector<64x128xbf16>
      %384 = arith.index_cast %380 : i32 to index
      %c0_162 = arith.constant 0 : index
      %385 = vector.load %arg11[%384, %c0_162] : memref<1152x128xf32, #tpu.memory_space<vmem>>, vector<64x128xf32>
      %386 = arith.truncf %385 : vector<64x128xf32> to vector<64x128xbf16>
      %cst_163 = arith.constant dense<0.000000e+00> : vector<64x128xf32>
      %387 = tpu.matmul %383, %373, %cst_163 {dimension_numbers = #tpu.dot_dimension_numbers<[1], [0], [0], [1], [0, 0, 1, 1], [], []>} : vector<64x128xbf16>, vector<128x128xbf16>, vector<64x128xf32> -> vector<64x128xf32>
      %388 = arith.addf %366, %387 : vector<64x128xf32>
      %cst_164 = arith.constant dense<0.000000e+00> : vector<64x128xf32>
      %389 = tpu.matmul %386, %373, %cst_164 {dimension_numbers = #tpu.dot_dimension_numbers<[1], [0], [0], [1], [0, 0, 1, 1], [], []>} : vector<64x128xbf16>, vector<128x128xbf16>, vector<64x128xf32> -> vector<64x128xf32>
      %390 = arith.addf %368, %389 : vector<64x128xf32>
      scf.yield %388, %390 : vector<64x128xf32>, vector<64x128xf32>
    }
    %c5_i32_9 = arith.constant 5 : i32
    %8 = vector.broadcast %3 : vector<1x128xf32> to vector<64x128xf32>
    %9 = arith.addf %7#0, %8 : vector<64x128xf32>
    %10 = vector.broadcast %3 : vector<1x128xf32> to vector<64x128xf32>
    %11 = arith.addf %7#1, %10 : vector<64x128xf32>
    %12 = vector.extract_strided_slice %9 {offsets = [0, 0], sizes = [8, 128], strides = [1, 1]} : vector<64x128xf32> to vector<8x128xf32>
    %13 = vector.extract_strided_slice %9 {offsets = [8, 0], sizes = [8, 128], strides = [1, 1]} : vector<64x128xf32> to vector<8x128xf32>
    %14 = arith.maximumf %12, %13 : vector<8x128xf32>
    %15 = vector.extract_strided_slice %11 {offsets = [0, 0], sizes = [8, 128], strides = [1, 1]} : vector<64x128xf32> to vector<8x128xf32>
    %16 = vector.extract_strided_slice %11 {offsets = [8, 0], sizes = [8, 128], strides = [1, 1]} : vector<64x128xf32> to vector<8x128xf32>
    %17 = arith.maximumf %15, %16 : vector<8x128xf32>
    %18 = arith.maximumf %14, %17 : vector<8x128xf32>
    %cst_10 = arith.constant 0.000000e+00 : f32
    %19 = vector.broadcast %cst_10 : f32 to vector<8x128xf32>
    %20 = arith.maximumf %18, %19 : vector<8x128xf32>
    %21 = arith.truncf %20 : vector<8x128xf32> to vector<8x128xbf16>
    %c0_11 = arith.constant 0 : index
    %c0_12 = arith.constant 0 : index
    %c0_13 = arith.constant 0 : index
    %22 = vector.load %arg6[%c0_11, %c0_12, %c0_13] : memref<16x128x128xbf16, #tpu.memory_space<vmem>>, vector<1x128x128xbf16>
    %23 = vector.shape_cast %22 : vector<1x128x128xbf16> to vector<128x128xbf16>
    %cst_14 = arith.constant dense<0.000000e+00> : vector<8x128xf32>
    %24 = tpu.matmul %21, %23, %cst_14 {dimension_numbers = #tpu.dot_dimension_numbers<[1], [0], [0], [1], [0, 0, 1, 1], [], []>} : vector<8x128xbf16>, vector<128x128xbf16>, vector<8x128xf32> -> vector<8x128xf32>
    %25 = arith.addf %4, %24 : vector<8x128xf32>
    %26 = vector.extract_strided_slice %9 {offsets = [16, 0], sizes = [8, 128], strides = [1, 1]} : vector<64x128xf32> to vector<8x128xf32>
    %27 = vector.extract_strided_slice %9 {offsets = [24, 0], sizes = [8, 128], strides = [1, 1]} : vector<64x128xf32> to vector<8x128xf32>
    %28 = arith.maximumf %26, %27 : vector<8x128xf32>
    %29 = vector.extract_strided_slice %11 {offsets = [16, 0], sizes = [8, 128], strides = [1, 1]} : vector<64x128xf32> to vector<8x128xf32>
    %30 = vector.extract_strided_slice %11 {offsets = [24, 0], sizes = [8, 128], strides = [1, 1]} : vector<64x128xf32> to vector<8x128xf32>
    %31 = arith.maximumf %29, %30 : vector<8x128xf32>
    %32 = arith.maximumf %28, %31 : vector<8x128xf32>
    %cst_15 = arith.constant 0.000000e+00 : f32
    %33 = vector.broadcast %cst_15 : f32 to vector<8x128xf32>
    %34 = arith.maximumf %32, %33 : vector<8x128xf32>
    %35 = arith.truncf %34 : vector<8x128xf32> to vector<8x128xbf16>
    %c1 = arith.constant 1 : index
    %c0_16 = arith.constant 0 : index
    %c0_17 = arith.constant 0 : index
    %36 = vector.load %arg6[%c1, %c0_16, %c0_17] : memref<16x128x128xbf16, #tpu.memory_space<vmem>>, vector<1x128x128xbf16>
    %37 = vector.shape_cast %36 : vector<1x128x128xbf16> to vector<128x128xbf16>
    %cst_18 = arith.constant dense<0.000000e+00> : vector<8x128xf32>
    %38 = tpu.matmul %35, %37, %cst_18 {dimension_numbers = #tpu.dot_dimension_numbers<[1], [0], [0], [1], [0, 0, 1, 1], [], []>} : vector<8x128xbf16>, vector<128x128xbf16>, vector<8x128xf32> -> vector<8x128xf32>
    %39 = arith.addf %25, %38 : vector<8x128xf32>
    %40 = vector.extract_strided_slice %9 {offsets = [32, 0], sizes = [8, 128], strides = [1, 1]} : vector<64x128xf32> to vector<8x128xf32>
    %41 = vector.extract_strided_slice %9 {offsets = [40, 0], sizes = [8, 128], strides = [1, 1]} : vector<64x128xf32> to vector<8x128xf32>
    %42 = arith.maximumf %40, %41 : vector<8x128xf32>
    %43 = vector.extract_strided_slice %11 {offsets = [32, 0], sizes = [8, 128], strides = [1, 1]} : vector<64x128xf32> to vector<8x128xf32>
    %44 = vector.extract_strided_slice %11 {offsets = [40, 0], sizes = [8, 128], strides = [1, 1]} : vector<64x128xf32> to vector<8x128xf32>
    %45 = arith.maximumf %43, %44 : vector<8x128xf32>
    %46 = arith.maximumf %42, %45 : vector<8x128xf32>
    %cst_19 = arith.constant 0.000000e+00 : f32
    %47 = vector.broadcast %cst_19 : f32 to vector<8x128xf32>
    %48 = arith.maximumf %46, %47 : vector<8x128xf32>
    %49 = arith.truncf %48 : vector<8x128xf32> to vector<8x128xbf16>
    %c2 = arith.constant 2 : index
    %c0_20 = arith.constant 0 : index
    %c0_21 = arith.constant 0 : index
    %50 = vector.load %arg6[%c2, %c0_20, %c0_21] : memref<16x128x128xbf16, #tpu.memory_space<vmem>>, vector<1x128x128xbf16>
    %51 = vector.shape_cast %50 : vector<1x128x128xbf16> to vector<128x128xbf16>
    %cst_22 = arith.constant dense<0.000000e+00> : vector<8x128xf32>
    %52 = tpu.matmul %49, %51, %cst_22 {dimension_numbers = #tpu.dot_dimension_numbers<[1], [0], [0], [1], [0, 0, 1, 1], [], []>} : vector<8x128xbf16>, vector<128x128xbf16>, vector<8x128xf32> -> vector<8x128xf32>
    %53 = arith.addf %39, %52 : vector<8x128xf32>
    %54 = vector.extract_strided_slice %9 {offsets = [48, 0], sizes = [8, 128], strides = [1, 1]} : vector<64x128xf32> to vector<8x128xf32>
    %55 = vector.extract_strided_slice %9 {offsets = [56, 0], sizes = [8, 128], strides = [1, 1]} : vector<64x128xf32> to vector<8x128xf32>
    %56 = arith.maximumf %54, %55 : vector<8x128xf32>
    %57 = vector.extract_strided_slice %11 {offsets = [48, 0], sizes = [8, 128], strides = [1, 1]} : vector<64x128xf32> to vector<8x128xf32>
    %58 = vector.extract_strided_slice %11 {offsets = [56, 0], sizes = [8, 128], strides = [1, 1]} : vector<64x128xf32> to vector<8x128xf32>
    %59 = arith.maximumf %57, %58 : vector<8x128xf32>
    %60 = arith.maximumf %56, %59 : vector<8x128xf32>
    %cst_23 = arith.constant 0.000000e+00 : f32
    %61 = vector.broadcast %cst_23 : f32 to vector<8x128xf32>
    %62 = arith.maximumf %60, %61 : vector<8x128xf32>
    %63 = arith.truncf %62 : vector<8x128xf32> to vector<8x128xbf16>
    %c3 = arith.constant 3 : index
    %c0_24 = arith.constant 0 : index
    %c0_25 = arith.constant 0 : index
    %64 = vector.load %arg6[%c3, %c0_24, %c0_25] : memref<16x128x128xbf16, #tpu.memory_space<vmem>>, vector<1x128x128xbf16>
    %65 = vector.shape_cast %64 : vector<1x128x128xbf16> to vector<128x128xbf16>
    %cst_26 = arith.constant dense<0.000000e+00> : vector<8x128xf32>
    %66 = tpu.matmul %63, %65, %cst_26 {dimension_numbers = #tpu.dot_dimension_numbers<[1], [0], [0], [1], [0, 0, 1, 1], [], []>} : vector<8x128xbf16>, vector<128x128xbf16>, vector<8x128xf32> -> vector<8x128xf32>
    %67 = arith.addf %53, %66 : vector<8x128xf32>
    %cst_27 = arith.constant 0.000000e+00 : f32
    %68 = vector.broadcast %cst_27 : f32 to vector<64x128xf32>
    %c0_i32_28 = arith.constant 0 : i32
    %c5_i32_29 = arith.constant 5 : i32
    %69 = arith.addi %c0_i32_28, %c5_i32_29 : i32
    %c1_i32_30 = arith.constant 1 : i32
    %70:2 = scf.for %arg12 = %c0_i32_28 to %69 step %c1_i32_30 iter_args(%arg13 = %68, %arg14 = %68) -> (vector<64x128xf32>, vector<64x128xf32>)  : i32 {
      %c2_i32 = arith.constant 2 : i32
      %279 = arith.addi %c2_i32, %arg12 : i32
      %c12_i32 = arith.constant 12 : i32
      %280 = arith.muli %279, %c12_i32 : i32
      %c5_i32_102 = arith.constant 5 : i32
      %281 = arith.muli %arg12, %c5_i32_102 : i32
      %c0_i32_103 = arith.constant 0 : i32
      %282 = arith.addi %281, %c0_i32_103 : i32
      %283 = arith.index_cast %282 : i32 to index
      %c0_104 = arith.constant 0 : index
      %c0_105 = arith.constant 0 : index
      %284 = vector.load %arg4[%283, %c0_104, %c0_105] : memref<25x128x128xbf16, #tpu.memory_space<vmem>>, vector<1x128x128xbf16>
      %285 = vector.shape_cast %284 : vector<1x128x128xbf16> to vector<128x128xbf16>
      %c0_i32_106 = arith.constant 0 : i32
      %286 = arith.addi %280, %c0_i32_106 : i32
      %c8_i32_107 = arith.constant 8 : i32
      %287 = arith.muli %286, %c8_i32_107 : i32
      %288 = tpu.assume_multiple %287, 8 : i32
      %c12_i32_108 = arith.constant 12 : i32
      %289 = arith.addi %280, %c12_i32_108 : i32
      %c0_i32_109 = arith.constant 0 : i32
      %290 = arith.addi %289, %c0_i32_109 : i32
      %c8_i32_110 = arith.constant 8 : i32
      %291 = arith.muli %290, %c8_i32_110 : i32
      %292 = tpu.assume_multiple %291, 8 : i32
      %293 = arith.index_cast %288 : i32 to index
      %c0_111 = arith.constant 0 : index
      %294 = vector.load %arg11[%293, %c0_111] : memref<1152x128xf32, #tpu.memory_space<vmem>>, vector<64x128xf32>
      %295 = arith.truncf %294 : vector<64x128xf32> to vector<64x128xbf16>
      %296 = arith.index_cast %292 : i32 to index
      %c0_112 = arith.constant 0 : index
      %297 = vector.load %arg11[%296, %c0_112] : memref<1152x128xf32, #tpu.memory_space<vmem>>, vector<64x128xf32>
      %298 = arith.truncf %297 : vector<64x128xf32> to vector<64x128xbf16>
      %cst_113 = arith.constant dense<0.000000e+00> : vector<64x128xf32>
      %299 = tpu.matmul %295, %285, %cst_113 {dimension_numbers = #tpu.dot_dimension_numbers<[1], [0], [0], [1], [0, 0, 1, 1], [], []>} : vector<64x128xbf16>, vector<128x128xbf16>, vector<64x128xf32> -> vector<64x128xf32>
      %300 = arith.addf %arg13, %299 : vector<64x128xf32>
      %cst_114 = arith.constant dense<0.000000e+00> : vector<64x128xf32>
      %301 = tpu.matmul %298, %285, %cst_114 {dimension_numbers = #tpu.dot_dimension_numbers<[1], [0], [0], [1], [0, 0, 1, 1], [], []>} : vector<64x128xbf16>, vector<128x128xbf16>, vector<64x128xf32> -> vector<64x128xf32>
      %302 = arith.addf %arg14, %301 : vector<64x128xf32>
      %c5_i32_115 = arith.constant 5 : i32
      %303 = arith.muli %arg12, %c5_i32_115 : i32
      %c1_i32_116 = arith.constant 1 : i32
      %304 = arith.addi %303, %c1_i32_116 : i32
      %305 = arith.index_cast %304 : i32 to index
      %c0_117 = arith.constant 0 : index
      %c0_118 = arith.constant 0 : index
      %306 = vector.load %arg4[%305, %c0_117, %c0_118] : memref<25x128x128xbf16, #tpu.memory_space<vmem>>, vector<1x128x128xbf16>
      %307 = vector.shape_cast %306 : vector<1x128x128xbf16> to vector<128x128xbf16>
      %c1_i32_119 = arith.constant 1 : i32
      %308 = arith.addi %280, %c1_i32_119 : i32
      %c8_i32_120 = arith.constant 8 : i32
      %309 = arith.muli %308, %c8_i32_120 : i32
      %310 = tpu.assume_multiple %309, 8 : i32
      %c12_i32_121 = arith.constant 12 : i32
      %311 = arith.addi %280, %c12_i32_121 : i32
      %c1_i32_122 = arith.constant 1 : i32
      %312 = arith.addi %311, %c1_i32_122 : i32
      %c8_i32_123 = arith.constant 8 : i32
      %313 = arith.muli %312, %c8_i32_123 : i32
      %314 = tpu.assume_multiple %313, 8 : i32
      %315 = arith.index_cast %310 : i32 to index
      %c0_124 = arith.constant 0 : index
      %316 = vector.load %arg11[%315, %c0_124] : memref<1152x128xf32, #tpu.memory_space<vmem>>, vector<64x128xf32>
      %317 = arith.truncf %316 : vector<64x128xf32> to vector<64x128xbf16>
      %318 = arith.index_cast %314 : i32 to index
      %c0_125 = arith.constant 0 : index
      %319 = vector.load %arg11[%318, %c0_125] : memref<1152x128xf32, #tpu.memory_space<vmem>>, vector<64x128xf32>
      %320 = arith.truncf %319 : vector<64x128xf32> to vector<64x128xbf16>
      %cst_126 = arith.constant dense<0.000000e+00> : vector<64x128xf32>
      %321 = tpu.matmul %317, %307, %cst_126 {dimension_numbers = #tpu.dot_dimension_numbers<[1], [0], [0], [1], [0, 0, 1, 1], [], []>} : vector<64x128xbf16>, vector<128x128xbf16>, vector<64x128xf32> -> vector<64x128xf32>
      %322 = arith.addf %300, %321 : vector<64x128xf32>
      %cst_127 = arith.constant dense<0.000000e+00> : vector<64x128xf32>
      %323 = tpu.matmul %320, %307, %cst_127 {dimension_numbers = #tpu.dot_dimension_numbers<[1], [0], [0], [1], [0, 0, 1, 1], [], []>} : vector<64x128xbf16>, vector<128x128xbf16>, vector<64x128xf32> -> vector<64x128xf32>
      %324 = arith.addf %302, %323 : vector<64x128xf32>
      %c5_i32_128 = arith.constant 5 : i32
      %325 = arith.muli %arg12, %c5_i32_128 : i32
      %c2_i32_129 = arith.constant 2 : i32
      %326 = arith.addi %325, %c2_i32_129 : i32
      %327 = arith.index_cast %326 : i32 to index
      %c0_130 = arith.constant 0 : index
      %c0_131 = arith.constant 0 : index
      %328 = vector.load %arg4[%327, %c0_130, %c0_131] : memref<25x128x128xbf16, #tpu.memory_space<vmem>>, vector<1x128x128xbf16>
      %329 = vector.shape_cast %328 : vector<1x128x128xbf16> to vector<128x128xbf16>
      %c2_i32_132 = arith.constant 2 : i32
      %330 = arith.addi %280, %c2_i32_132 : i32
      %c8_i32_133 = arith.constant 8 : i32
      %331 = arith.muli %330, %c8_i32_133 : i32
      %332 = tpu.assume_multiple %331, 8 : i32
      %c12_i32_134 = arith.constant 12 : i32
      %333 = arith.addi %280, %c12_i32_134 : i32
      %c2_i32_135 = arith.constant 2 : i32
      %334 = arith.addi %333, %c2_i32_135 : i32
      %c8_i32_136 = arith.constant 8 : i32
      %335 = arith.muli %334, %c8_i32_136 : i32
      %336 = tpu.assume_multiple %335, 8 : i32
      %337 = arith.index_cast %332 : i32 to index
      %c0_137 = arith.constant 0 : index
      %338 = vector.load %arg11[%337, %c0_137] : memref<1152x128xf32, #tpu.memory_space<vmem>>, vector<64x128xf32>
      %339 = arith.truncf %338 : vector<64x128xf32> to vector<64x128xbf16>
      %340 = arith.index_cast %336 : i32 to index
      %c0_138 = arith.constant 0 : index
      %341 = vector.load %arg11[%340, %c0_138] : memref<1152x128xf32, #tpu.memory_space<vmem>>, vector<64x128xf32>
      %342 = arith.truncf %341 : vector<64x128xf32> to vector<64x128xbf16>
      %cst_139 = arith.constant dense<0.000000e+00> : vector<64x128xf32>
      %343 = tpu.matmul %339, %329, %cst_139 {dimension_numbers = #tpu.dot_dimension_numbers<[1], [0], [0], [1], [0, 0, 1, 1], [], []>} : vector<64x128xbf16>, vector<128x128xbf16>, vector<64x128xf32> -> vector<64x128xf32>
      %344 = arith.addf %322, %343 : vector<64x128xf32>
      %cst_140 = arith.constant dense<0.000000e+00> : vector<64x128xf32>
      %345 = tpu.matmul %342, %329, %cst_140 {dimension_numbers = #tpu.dot_dimension_numbers<[1], [0], [0], [1], [0, 0, 1, 1], [], []>} : vector<64x128xbf16>, vector<128x128xbf16>, vector<64x128xf32> -> vector<64x128xf32>
      %346 = arith.addf %324, %345 : vector<64x128xf32>
      %c5_i32_141 = arith.constant 5 : i32
      %347 = arith.muli %arg12, %c5_i32_141 : i32
      %c3_i32 = arith.constant 3 : i32
      %348 = arith.addi %347, %c3_i32 : i32
      %349 = arith.index_cast %348 : i32 to index
      %c0_142 = arith.constant 0 : index
      %c0_143 = arith.constant 0 : index
      %350 = vector.load %arg4[%349, %c0_142, %c0_143] : memref<25x128x128xbf16, #tpu.memory_space<vmem>>, vector<1x128x128xbf16>
      %351 = vector.shape_cast %350 : vector<1x128x128xbf16> to vector<128x128xbf16>
      %c3_i32_144 = arith.constant 3 : i32
      %352 = arith.addi %280, %c3_i32_144 : i32
      %c8_i32_145 = arith.constant 8 : i32
      %353 = arith.muli %352, %c8_i32_145 : i32
      %354 = tpu.assume_multiple %353, 8 : i32
      %c12_i32_146 = arith.constant 12 : i32
      %355 = arith.addi %280, %c12_i32_146 : i32
      %c3_i32_147 = arith.constant 3 : i32
      %356 = arith.addi %355, %c3_i32_147 : i32
      %c8_i32_148 = arith.constant 8 : i32
      %357 = arith.muli %356, %c8_i32_148 : i32
      %358 = tpu.assume_multiple %357, 8 : i32
      %359 = arith.index_cast %354 : i32 to index
      %c0_149 = arith.constant 0 : index
      %360 = vector.load %arg11[%359, %c0_149] : memref<1152x128xf32, #tpu.memory_space<vmem>>, vector<64x128xf32>
      %361 = arith.truncf %360 : vector<64x128xf32> to vector<64x128xbf16>
      %362 = arith.index_cast %358 : i32 to index
      %c0_150 = arith.constant 0 : index
      %363 = vector.load %arg11[%362, %c0_150] : memref<1152x128xf32, #tpu.memory_space<vmem>>, vector<64x128xf32>
      %364 = arith.truncf %363 : vector<64x128xf32> to vector<64x128xbf16>
      %cst_151 = arith.constant dense<0.000000e+00> : vector<64x128xf32>
      %365 = tpu.matmul %361, %351, %cst_151 {dimension_numbers = #tpu.dot_dimension_numbers<[1], [0], [0], [1], [0, 0, 1, 1], [], []>} : vector<64x128xbf16>, vector<128x128xbf16>, vector<64x128xf32> -> vector<64x128xf32>
      %366 = arith.addf %344, %365 : vector<64x128xf32>
      %cst_152 = arith.constant dense<0.000000e+00> : vector<64x128xf32>
      %367 = tpu.matmul %364, %351, %cst_152 {dimension_numbers = #tpu.dot_dimension_numbers<[1], [0], [0], [1], [0, 0, 1, 1], [], []>} : vector<64x128xbf16>, vector<128x128xbf16>, vector<64x128xf32> -> vector<64x128xf32>
      %368 = arith.addf %346, %367 : vector<64x128xf32>
      %c5_i32_153 = arith.constant 5 : i32
      %369 = arith.muli %arg12, %c5_i32_153 : i32
      %c4_i32 = arith.constant 4 : i32
      %370 = arith.addi %369, %c4_i32 : i32
      %371 = arith.index_cast %370 : i32 to index
      %c0_154 = arith.constant 0 : index
      %c0_155 = arith.constant 0 : index
      %372 = vector.load %arg4[%371, %c0_154, %c0_155] : memref<25x128x128xbf16, #tpu.memory_space<vmem>>, vector<1x128x128xbf16>
      %373 = vector.shape_cast %372 : vector<1x128x128xbf16> to vector<128x128xbf16>
      %c4_i32_156 = arith.constant 4 : i32
      %374 = arith.addi %280, %c4_i32_156 : i32
      %c8_i32_157 = arith.constant 8 : i32
      %375 = arith.muli %374, %c8_i32_157 : i32
      %376 = tpu.assume_multiple %375, 8 : i32
      %c12_i32_158 = arith.constant 12 : i32
      %377 = arith.addi %280, %c12_i32_158 : i32
      %c4_i32_159 = arith.constant 4 : i32
      %378 = arith.addi %377, %c4_i32_159 : i32
      %c8_i32_160 = arith.constant 8 : i32
      %379 = arith.muli %378, %c8_i32_160 : i32
      %380 = tpu.assume_multiple %379, 8 : i32
      %381 = arith.index_cast %376 : i32 to index
      %c0_161 = arith.constant 0 : index
      %382 = vector.load %arg11[%381, %c0_161] : memref<1152x128xf32, #tpu.memory_space<vmem>>, vector<64x128xf32>
      %383 = arith.truncf %382 : vector<64x128xf32> to vector<64x128xbf16>
      %384 = arith.index_cast %380 : i32 to index
      %c0_162 = arith.constant 0 : index
      %385 = vector.load %arg11[%384, %c0_162] : memref<1152x128xf32, #tpu.memory_space<vmem>>, vector<64x128xf32>
      %386 = arith.truncf %385 : vector<64x128xf32> to vector<64x128xbf16>
      %cst_163 = arith.constant dense<0.000000e+00> : vector<64x128xf32>
      %387 = tpu.matmul %383, %373, %cst_163 {dimension_numbers = #tpu.dot_dimension_numbers<[1], [0], [0], [1], [0, 0, 1, 1], [], []>} : vector<64x128xbf16>, vector<128x128xbf16>, vector<64x128xf32> -> vector<64x128xf32>
      %388 = arith.addf %366, %387 : vector<64x128xf32>
      %cst_164 = arith.constant dense<0.000000e+00> : vector<64x128xf32>
      %389 = tpu.matmul %386, %373, %cst_164 {dimension_numbers = #tpu.dot_dimension_numbers<[1], [0], [0], [1], [0, 0, 1, 1], [], []>} : vector<64x128xbf16>, vector<128x128xbf16>, vector<64x128xf32> -> vector<64x128xf32>
      %390 = arith.addf %368, %389 : vector<64x128xf32>
      scf.yield %388, %390 : vector<64x128xf32>, vector<64x128xf32>
    }
    %c5_i32_31 = arith.constant 5 : i32
    %71 = vector.broadcast %3 : vector<1x128xf32> to vector<64x128xf32>
    %72 = arith.addf %70#0, %71 : vector<64x128xf32>
    %73 = vector.broadcast %3 : vector<1x128xf32> to vector<64x128xf32>
    %74 = arith.addf %70#1, %73 : vector<64x128xf32>
    %75 = vector.extract_strided_slice %72 {offsets = [0, 0], sizes = [8, 128], strides = [1, 1]} : vector<64x128xf32> to vector<8x128xf32>
    %76 = vector.extract_strided_slice %72 {offsets = [8, 0], sizes = [8, 128], strides = [1, 1]} : vector<64x128xf32> to vector<8x128xf32>
    %77 = arith.maximumf %75, %76 : vector<8x128xf32>
    %78 = vector.extract_strided_slice %74 {offsets = [0, 0], sizes = [8, 128], strides = [1, 1]} : vector<64x128xf32> to vector<8x128xf32>
    %79 = vector.extract_strided_slice %74 {offsets = [8, 0], sizes = [8, 128], strides = [1, 1]} : vector<64x128xf32> to vector<8x128xf32>
    %80 = arith.maximumf %78, %79 : vector<8x128xf32>
    %81 = arith.maximumf %77, %80 : vector<8x128xf32>
    %cst_32 = arith.constant 0.000000e+00 : f32
    %82 = vector.broadcast %cst_32 : f32 to vector<8x128xf32>
    %83 = arith.maximumf %81, %82 : vector<8x128xf32>
    %84 = arith.truncf %83 : vector<8x128xf32> to vector<8x128xbf16>
    %c4 = arith.constant 4 : index
    %c0_33 = arith.constant 0 : index
    %c0_34 = arith.constant 0 : index
    %85 = vector.load %arg6[%c4, %c0_33, %c0_34] : memref<16x128x128xbf16, #tpu.memory_space<vmem>>, vector<1x128x128xbf16>
    %86 = vector.shape_cast %85 : vector<1x128x128xbf16> to vector<128x128xbf16>
    %cst_35 = arith.constant dense<0.000000e+00> : vector<8x128xf32>
    %87 = tpu.matmul %84, %86, %cst_35 {dimension_numbers = #tpu.dot_dimension_numbers<[1], [0], [0], [1], [0, 0, 1, 1], [], []>} : vector<8x128xbf16>, vector<128x128xbf16>, vector<8x128xf32> -> vector<8x128xf32>
    %88 = arith.addf %67, %87 : vector<8x128xf32>
    %89 = vector.extract_strided_slice %72 {offsets = [16, 0], sizes = [8, 128], strides = [1, 1]} : vector<64x128xf32> to vector<8x128xf32>
    %90 = vector.extract_strided_slice %72 {offsets = [24, 0], sizes = [8, 128], strides = [1, 1]} : vector<64x128xf32> to vector<8x128xf32>
    %91 = arith.maximumf %89, %90 : vector<8x128xf32>
    %92 = vector.extract_strided_slice %74 {offsets = [16, 0], sizes = [8, 128], strides = [1, 1]} : vector<64x128xf32> to vector<8x128xf32>
    %93 = vector.extract_strided_slice %74 {offsets = [24, 0], sizes = [8, 128], strides = [1, 1]} : vector<64x128xf32> to vector<8x128xf32>
    %94 = arith.maximumf %92, %93 : vector<8x128xf32>
    %95 = arith.maximumf %91, %94 : vector<8x128xf32>
    %cst_36 = arith.constant 0.000000e+00 : f32
    %96 = vector.broadcast %cst_36 : f32 to vector<8x128xf32>
    %97 = arith.maximumf %95, %96 : vector<8x128xf32>
    %98 = arith.truncf %97 : vector<8x128xf32> to vector<8x128xbf16>
    %c5 = arith.constant 5 : index
    %c0_37 = arith.constant 0 : index
    %c0_38 = arith.constant 0 : index
    %99 = vector.load %arg6[%c5, %c0_37, %c0_38] : memref<16x128x128xbf16, #tpu.memory_space<vmem>>, vector<1x128x128xbf16>
    %100 = vector.shape_cast %99 : vector<1x128x128xbf16> to vector<128x128xbf16>
    %cst_39 = arith.constant dense<0.000000e+00> : vector<8x128xf32>
    %101 = tpu.matmul %98, %100, %cst_39 {dimension_numbers = #tpu.dot_dimension_numbers<[1], [0], [0], [1], [0, 0, 1, 1], [], []>} : vector<8x128xbf16>, vector<128x128xbf16>, vector<8x128xf32> -> vector<8x128xf32>
    %102 = arith.addf %88, %101 : vector<8x128xf32>
    %103 = vector.extract_strided_slice %72 {offsets = [32, 0], sizes = [8, 128], strides = [1, 1]} : vector<64x128xf32> to vector<8x128xf32>
    %104 = vector.extract_strided_slice %72 {offsets = [40, 0], sizes = [8, 128], strides = [1, 1]} : vector<64x128xf32> to vector<8x128xf32>
    %105 = arith.maximumf %103, %104 : vector<8x128xf32>
    %106 = vector.extract_strided_slice %74 {offsets = [32, 0], sizes = [8, 128], strides = [1, 1]} : vector<64x128xf32> to vector<8x128xf32>
    %107 = vector.extract_strided_slice %74 {offsets = [40, 0], sizes = [8, 128], strides = [1, 1]} : vector<64x128xf32> to vector<8x128xf32>
    %108 = arith.maximumf %106, %107 : vector<8x128xf32>
    %109 = arith.maximumf %105, %108 : vector<8x128xf32>
    %cst_40 = arith.constant 0.000000e+00 : f32
    %110 = vector.broadcast %cst_40 : f32 to vector<8x128xf32>
    %111 = arith.maximumf %109, %110 : vector<8x128xf32>
    %112 = arith.truncf %111 : vector<8x128xf32> to vector<8x128xbf16>
    %c6 = arith.constant 6 : index
    %c0_41 = arith.constant 0 : index
    %c0_42 = arith.constant 0 : index
    %113 = vector.load %arg6[%c6, %c0_41, %c0_42] : memref<16x128x128xbf16, #tpu.memory_space<vmem>>, vector<1x128x128xbf16>
    %114 = vector.shape_cast %113 : vector<1x128x128xbf16> to vector<128x128xbf16>
    %cst_43 = arith.constant dense<0.000000e+00> : vector<8x128xf32>
    %115 = tpu.matmul %112, %114, %cst_43 {dimension_numbers = #tpu.dot_dimension_numbers<[1], [0], [0], [1], [0, 0, 1, 1], [], []>} : vector<8x128xbf16>, vector<128x128xbf16>, vector<8x128xf32> -> vector<8x128xf32>
    %116 = arith.addf %102, %115 : vector<8x128xf32>
    %117 = vector.extract_strided_slice %72 {offsets = [48, 0], sizes = [8, 128], strides = [1, 1]} : vector<64x128xf32> to vector<8x128xf32>
    %118 = vector.extract_strided_slice %72 {offsets = [56, 0], sizes = [8, 128], strides = [1, 1]} : vector<64x128xf32> to vector<8x128xf32>
    %119 = arith.maximumf %117, %118 : vector<8x128xf32>
    %120 = vector.extract_strided_slice %74 {offsets = [48, 0], sizes = [8, 128], strides = [1, 1]} : vector<64x128xf32> to vector<8x128xf32>
    %121 = vector.extract_strided_slice %74 {offsets = [56, 0], sizes = [8, 128], strides = [1, 1]} : vector<64x128xf32> to vector<8x128xf32>
    %122 = arith.maximumf %120, %121 : vector<8x128xf32>
    %123 = arith.maximumf %119, %122 : vector<8x128xf32>
    %cst_44 = arith.constant 0.000000e+00 : f32
    %124 = vector.broadcast %cst_44 : f32 to vector<8x128xf32>
    %125 = arith.maximumf %123, %124 : vector<8x128xf32>
    %126 = arith.truncf %125 : vector<8x128xf32> to vector<8x128xbf16>
    %c7 = arith.constant 7 : index
    %c0_45 = arith.constant 0 : index
    %c0_46 = arith.constant 0 : index
    %127 = vector.load %arg6[%c7, %c0_45, %c0_46] : memref<16x128x128xbf16, #tpu.memory_space<vmem>>, vector<1x128x128xbf16>
    %128 = vector.shape_cast %127 : vector<1x128x128xbf16> to vector<128x128xbf16>
    %cst_47 = arith.constant dense<0.000000e+00> : vector<8x128xf32>
    %129 = tpu.matmul %126, %128, %cst_47 {dimension_numbers = #tpu.dot_dimension_numbers<[1], [0], [0], [1], [0, 0, 1, 1], [], []>} : vector<8x128xbf16>, vector<128x128xbf16>, vector<8x128xf32> -> vector<8x128xf32>
    %130 = arith.addf %116, %129 : vector<8x128xf32>
    %cst_48 = arith.constant 0.000000e+00 : f32
    %131 = vector.broadcast %cst_48 : f32 to vector<64x128xf32>
    %c0_i32_49 = arith.constant 0 : i32
    %c5_i32_50 = arith.constant 5 : i32
    %132 = arith.addi %c0_i32_49, %c5_i32_50 : i32
    %c1_i32_51 = arith.constant 1 : i32
    %133:2 = scf.for %arg12 = %c0_i32_49 to %132 step %c1_i32_51 iter_args(%arg13 = %131, %arg14 = %131) -> (vector<64x128xf32>, vector<64x128xf32>)  : i32 {
      %c4_i32 = arith.constant 4 : i32
      %279 = arith.addi %c4_i32, %arg12 : i32
      %c12_i32 = arith.constant 12 : i32
      %280 = arith.muli %279, %c12_i32 : i32
      %c5_i32_102 = arith.constant 5 : i32
      %281 = arith.muli %arg12, %c5_i32_102 : i32
      %c0_i32_103 = arith.constant 0 : i32
      %282 = arith.addi %281, %c0_i32_103 : i32
      %283 = arith.index_cast %282 : i32 to index
      %c0_104 = arith.constant 0 : index
      %c0_105 = arith.constant 0 : index
      %284 = vector.load %arg4[%283, %c0_104, %c0_105] : memref<25x128x128xbf16, #tpu.memory_space<vmem>>, vector<1x128x128xbf16>
      %285 = vector.shape_cast %284 : vector<1x128x128xbf16> to vector<128x128xbf16>
      %c0_i32_106 = arith.constant 0 : i32
      %286 = arith.addi %280, %c0_i32_106 : i32
      %c8_i32_107 = arith.constant 8 : i32
      %287 = arith.muli %286, %c8_i32_107 : i32
      %288 = tpu.assume_multiple %287, 8 : i32
      %c12_i32_108 = arith.constant 12 : i32
      %289 = arith.addi %280, %c12_i32_108 : i32
      %c0_i32_109 = arith.constant 0 : i32
      %290 = arith.addi %289, %c0_i32_109 : i32
      %c8_i32_110 = arith.constant 8 : i32
      %291 = arith.muli %290, %c8_i32_110 : i32
      %292 = tpu.assume_multiple %291, 8 : i32
      %293 = arith.index_cast %288 : i32 to index
      %c0_111 = arith.constant 0 : index
      %294 = vector.load %arg11[%293, %c0_111] : memref<1152x128xf32, #tpu.memory_space<vmem>>, vector<64x128xf32>
      %295 = arith.truncf %294 : vector<64x128xf32> to vector<64x128xbf16>
      %296 = arith.index_cast %292 : i32 to index
      %c0_112 = arith.constant 0 : index
      %297 = vector.load %arg11[%296, %c0_112] : memref<1152x128xf32, #tpu.memory_space<vmem>>, vector<64x128xf32>
      %298 = arith.truncf %297 : vector<64x128xf32> to vector<64x128xbf16>
      %cst_113 = arith.constant dense<0.000000e+00> : vector<64x128xf32>
      %299 = tpu.matmul %295, %285, %cst_113 {dimension_numbers = #tpu.dot_dimension_numbers<[1], [0], [0], [1], [0, 0, 1, 1], [], []>} : vector<64x128xbf16>, vector<128x128xbf16>, vector<64x128xf32> -> vector<64x128xf32>
      %300 = arith.addf %arg13, %299 : vector<64x128xf32>
      %cst_114 = arith.constant dense<0.000000e+00> : vector<64x128xf32>
      %301 = tpu.matmul %298, %285, %cst_114 {dimension_numbers = #tpu.dot_dimension_numbers<[1], [0], [0], [1], [0, 0, 1, 1], [], []>} : vector<64x128xbf16>, vector<128x128xbf16>, vector<64x128xf32> -> vector<64x128xf32>
      %302 = arith.addf %arg14, %301 : vector<64x128xf32>
      %c5_i32_115 = arith.constant 5 : i32
      %303 = arith.muli %arg12, %c5_i32_115 : i32
      %c1_i32_116 = arith.constant 1 : i32
      %304 = arith.addi %303, %c1_i32_116 : i32
      %305 = arith.index_cast %304 : i32 to index
      %c0_117 = arith.constant 0 : index
      %c0_118 = arith.constant 0 : index
      %306 = vector.load %arg4[%305, %c0_117, %c0_118] : memref<25x128x128xbf16, #tpu.memory_space<vmem>>, vector<1x128x128xbf16>
      %307 = vector.shape_cast %306 : vector<1x128x128xbf16> to vector<128x128xbf16>
      %c1_i32_119 = arith.constant 1 : i32
      %308 = arith.addi %280, %c1_i32_119 : i32
      %c8_i32_120 = arith.constant 8 : i32
      %309 = arith.muli %308, %c8_i32_120 : i32
      %310 = tpu.assume_multiple %309, 8 : i32
      %c12_i32_121 = arith.constant 12 : i32
      %311 = arith.addi %280, %c12_i32_121 : i32
      %c1_i32_122 = arith.constant 1 : i32
      %312 = arith.addi %311, %c1_i32_122 : i32
      %c8_i32_123 = arith.constant 8 : i32
      %313 = arith.muli %312, %c8_i32_123 : i32
      %314 = tpu.assume_multiple %313, 8 : i32
      %315 = arith.index_cast %310 : i32 to index
      %c0_124 = arith.constant 0 : index
      %316 = vector.load %arg11[%315, %c0_124] : memref<1152x128xf32, #tpu.memory_space<vmem>>, vector<64x128xf32>
      %317 = arith.truncf %316 : vector<64x128xf32> to vector<64x128xbf16>
      %318 = arith.index_cast %314 : i32 to index
      %c0_125 = arith.constant 0 : index
      %319 = vector.load %arg11[%318, %c0_125] : memref<1152x128xf32, #tpu.memory_space<vmem>>, vector<64x128xf32>
      %320 = arith.truncf %319 : vector<64x128xf32> to vector<64x128xbf16>
      %cst_126 = arith.constant dense<0.000000e+00> : vector<64x128xf32>
      %321 = tpu.matmul %317, %307, %cst_126 {dimension_numbers = #tpu.dot_dimension_numbers<[1], [0], [0], [1], [0, 0, 1, 1], [], []>} : vector<64x128xbf16>, vector<128x128xbf16>, vector<64x128xf32> -> vector<64x128xf32>
      %322 = arith.addf %300, %321 : vector<64x128xf32>
      %cst_127 = arith.constant dense<0.000000e+00> : vector<64x128xf32>
      %323 = tpu.matmul %320, %307, %cst_127 {dimension_numbers = #tpu.dot_dimension_numbers<[1], [0], [0], [1], [0, 0, 1, 1], [], []>} : vector<64x128xbf16>, vector<128x128xbf16>, vector<64x128xf32> -> vector<64x128xf32>
      %324 = arith.addf %302, %323 : vector<64x128xf32>
      %c5_i32_128 = arith.constant 5 : i32
      %325 = arith.muli %arg12, %c5_i32_128 : i32
      %c2_i32 = arith.constant 2 : i32
      %326 = arith.addi %325, %c2_i32 : i32
      %327 = arith.index_cast %326 : i32 to index
      %c0_129 = arith.constant 0 : index
      %c0_130 = arith.constant 0 : index
      %328 = vector.load %arg4[%327, %c0_129, %c0_130] : memref<25x128x128xbf16, #tpu.memory_space<vmem>>, vector<1x128x128xbf16>
      %329 = vector.shape_cast %328 : vector<1x128x128xbf16> to vector<128x128xbf16>
      %c2_i32_131 = arith.constant 2 : i32
      %330 = arith.addi %280, %c2_i32_131 : i32
      %c8_i32_132 = arith.constant 8 : i32
      %331 = arith.muli %330, %c8_i32_132 : i32
      %332 = tpu.assume_multiple %331, 8 : i32
      %c12_i32_133 = arith.constant 12 : i32
      %333 = arith.addi %280, %c12_i32_133 : i32
      %c2_i32_134 = arith.constant 2 : i32
      %334 = arith.addi %333, %c2_i32_134 : i32
      %c8_i32_135 = arith.constant 8 : i32
      %335 = arith.muli %334, %c8_i32_135 : i32
      %336 = tpu.assume_multiple %335, 8 : i32
      %337 = arith.index_cast %332 : i32 to index
      %c0_136 = arith.constant 0 : index
      %338 = vector.load %arg11[%337, %c0_136] : memref<1152x128xf32, #tpu.memory_space<vmem>>, vector<64x128xf32>
      %339 = arith.truncf %338 : vector<64x128xf32> to vector<64x128xbf16>
      %340 = arith.index_cast %336 : i32 to index
      %c0_137 = arith.constant 0 : index
      %341 = vector.load %arg11[%340, %c0_137] : memref<1152x128xf32, #tpu.memory_space<vmem>>, vector<64x128xf32>
      %342 = arith.truncf %341 : vector<64x128xf32> to vector<64x128xbf16>
      %cst_138 = arith.constant dense<0.000000e+00> : vector<64x128xf32>
      %343 = tpu.matmul %339, %329, %cst_138 {dimension_numbers = #tpu.dot_dimension_numbers<[1], [0], [0], [1], [0, 0, 1, 1], [], []>} : vector<64x128xbf16>, vector<128x128xbf16>, vector<64x128xf32> -> vector<64x128xf32>
      %344 = arith.addf %322, %343 : vector<64x128xf32>
      %cst_139 = arith.constant dense<0.000000e+00> : vector<64x128xf32>
      %345 = tpu.matmul %342, %329, %cst_139 {dimension_numbers = #tpu.dot_dimension_numbers<[1], [0], [0], [1], [0, 0, 1, 1], [], []>} : vector<64x128xbf16>, vector<128x128xbf16>, vector<64x128xf32> -> vector<64x128xf32>
      %346 = arith.addf %324, %345 : vector<64x128xf32>
      %c5_i32_140 = arith.constant 5 : i32
      %347 = arith.muli %arg12, %c5_i32_140 : i32
      %c3_i32 = arith.constant 3 : i32
      %348 = arith.addi %347, %c3_i32 : i32
      %349 = arith.index_cast %348 : i32 to index
      %c0_141 = arith.constant 0 : index
      %c0_142 = arith.constant 0 : index
      %350 = vector.load %arg4[%349, %c0_141, %c0_142] : memref<25x128x128xbf16, #tpu.memory_space<vmem>>, vector<1x128x128xbf16>
      %351 = vector.shape_cast %350 : vector<1x128x128xbf16> to vector<128x128xbf16>
      %c3_i32_143 = arith.constant 3 : i32
      %352 = arith.addi %280, %c3_i32_143 : i32
      %c8_i32_144 = arith.constant 8 : i32
      %353 = arith.muli %352, %c8_i32_144 : i32
      %354 = tpu.assume_multiple %353, 8 : i32
      %c12_i32_145 = arith.constant 12 : i32
      %355 = arith.addi %280, %c12_i32_145 : i32
      %c3_i32_146 = arith.constant 3 : i32
      %356 = arith.addi %355, %c3_i32_146 : i32
      %c8_i32_147 = arith.constant 8 : i32
      %357 = arith.muli %356, %c8_i32_147 : i32
      %358 = tpu.assume_multiple %357, 8 : i32
      %359 = arith.index_cast %354 : i32 to index
      %c0_148 = arith.constant 0 : index
      %360 = vector.load %arg11[%359, %c0_148] : memref<1152x128xf32, #tpu.memory_space<vmem>>, vector<64x128xf32>
      %361 = arith.truncf %360 : vector<64x128xf32> to vector<64x128xbf16>
      %362 = arith.index_cast %358 : i32 to index
      %c0_149 = arith.constant 0 : index
      %363 = vector.load %arg11[%362, %c0_149] : memref<1152x128xf32, #tpu.memory_space<vmem>>, vector<64x128xf32>
      %364 = arith.truncf %363 : vector<64x128xf32> to vector<64x128xbf16>
      %cst_150 = arith.constant dense<0.000000e+00> : vector<64x128xf32>
      %365 = tpu.matmul %361, %351, %cst_150 {dimension_numbers = #tpu.dot_dimension_numbers<[1], [0], [0], [1], [0, 0, 1, 1], [], []>} : vector<64x128xbf16>, vector<128x128xbf16>, vector<64x128xf32> -> vector<64x128xf32>
      %366 = arith.addf %344, %365 : vector<64x128xf32>
      %cst_151 = arith.constant dense<0.000000e+00> : vector<64x128xf32>
      %367 = tpu.matmul %364, %351, %cst_151 {dimension_numbers = #tpu.dot_dimension_numbers<[1], [0], [0], [1], [0, 0, 1, 1], [], []>} : vector<64x128xbf16>, vector<128x128xbf16>, vector<64x128xf32> -> vector<64x128xf32>
      %368 = arith.addf %346, %367 : vector<64x128xf32>
      %c5_i32_152 = arith.constant 5 : i32
      %369 = arith.muli %arg12, %c5_i32_152 : i32
      %c4_i32_153 = arith.constant 4 : i32
      %370 = arith.addi %369, %c4_i32_153 : i32
      %371 = arith.index_cast %370 : i32 to index
      %c0_154 = arith.constant 0 : index
      %c0_155 = arith.constant 0 : index
      %372 = vector.load %arg4[%371, %c0_154, %c0_155] : memref<25x128x128xbf16, #tpu.memory_space<vmem>>, vector<1x128x128xbf16>
      %373 = vector.shape_cast %372 : vector<1x128x128xbf16> to vector<128x128xbf16>
      %c4_i32_156 = arith.constant 4 : i32
      %374 = arith.addi %280, %c4_i32_156 : i32
      %c8_i32_157 = arith.constant 8 : i32
      %375 = arith.muli %374, %c8_i32_157 : i32
      %376 = tpu.assume_multiple %375, 8 : i32
      %c12_i32_158 = arith.constant 12 : i32
      %377 = arith.addi %280, %c12_i32_158 : i32
      %c4_i32_159 = arith.constant 4 : i32
      %378 = arith.addi %377, %c4_i32_159 : i32
      %c8_i32_160 = arith.constant 8 : i32
      %379 = arith.muli %378, %c8_i32_160 : i32
      %380 = tpu.assume_multiple %379, 8 : i32
      %381 = arith.index_cast %376 : i32 to index
      %c0_161 = arith.constant 0 : index
      %382 = vector.load %arg11[%381, %c0_161] : memref<1152x128xf32, #tpu.memory_space<vmem>>, vector<64x128xf32>
      %383 = arith.truncf %382 : vector<64x128xf32> to vector<64x128xbf16>
      %384 = arith.index_cast %380 : i32 to index
      %c0_162 = arith.constant 0 : index
      %385 = vector.load %arg11[%384, %c0_162] : memref<1152x128xf32, #tpu.memory_space<vmem>>, vector<64x128xf32>
      %386 = arith.truncf %385 : vector<64x128xf32> to vector<64x128xbf16>
      %cst_163 = arith.constant dense<0.000000e+00> : vector<64x128xf32>
      %387 = tpu.matmul %383, %373, %cst_163 {dimension_numbers = #tpu.dot_dimension_numbers<[1], [0], [0], [1], [0, 0, 1, 1], [], []>} : vector<64x128xbf16>, vector<128x128xbf16>, vector<64x128xf32> -> vector<64x128xf32>
      %388 = arith.addf %366, %387 : vector<64x128xf32>
      %cst_164 = arith.constant dense<0.000000e+00> : vector<64x128xf32>
      %389 = tpu.matmul %386, %373, %cst_164 {dimension_numbers = #tpu.dot_dimension_numbers<[1], [0], [0], [1], [0, 0, 1, 1], [], []>} : vector<64x128xbf16>, vector<128x128xbf16>, vector<64x128xf32> -> vector<64x128xf32>
      %390 = arith.addf %368, %389 : vector<64x128xf32>
      scf.yield %388, %390 : vector<64x128xf32>, vector<64x128xf32>
    }
    %c5_i32_52 = arith.constant 5 : i32
    %134 = vector.broadcast %3 : vector<1x128xf32> to vector<64x128xf32>
    %135 = arith.addf %133#0, %134 : vector<64x128xf32>
    %136 = vector.broadcast %3 : vector<1x128xf32> to vector<64x128xf32>
    %137 = arith.addf %133#1, %136 : vector<64x128xf32>
    %138 = vector.extract_strided_slice %135 {offsets = [0, 0], sizes = [8, 128], strides = [1, 1]} : vector<64x128xf32> to vector<8x128xf32>
    %139 = vector.extract_strided_slice %135 {offsets = [8, 0], sizes = [8, 128], strides = [1, 1]} : vector<64x128xf32> to vector<8x128xf32>
    %140 = arith.maximumf %138, %139 : vector<8x128xf32>
    %141 = vector.extract_strided_slice %137 {offsets = [0, 0], sizes = [8, 128], strides = [1, 1]} : vector<64x128xf32> to vector<8x128xf32>
    %142 = vector.extract_strided_slice %137 {offsets = [8, 0], sizes = [8, 128], strides = [1, 1]} : vector<64x128xf32> to vector<8x128xf32>
    %143 = arith.maximumf %141, %142 : vector<8x128xf32>
    %144 = arith.maximumf %140, %143 : vector<8x128xf32>
    %cst_53 = arith.constant 0.000000e+00 : f32
    %145 = vector.broadcast %cst_53 : f32 to vector<8x128xf32>
    %146 = arith.maximumf %144, %145 : vector<8x128xf32>
    %147 = arith.truncf %146 : vector<8x128xf32> to vector<8x128xbf16>
    %c8 = arith.constant 8 : index
    %c0_54 = arith.constant 0 : index
    %c0_55 = arith.constant 0 : index
    %148 = vector.load %arg6[%c8, %c0_54, %c0_55] : memref<16x128x128xbf16, #tpu.memory_space<vmem>>, vector<1x128x128xbf16>
    %149 = vector.shape_cast %148 : vector<1x128x128xbf16> to vector<128x128xbf16>
    %cst_56 = arith.constant dense<0.000000e+00> : vector<8x128xf32>
    %150 = tpu.matmul %147, %149, %cst_56 {dimension_numbers = #tpu.dot_dimension_numbers<[1], [0], [0], [1], [0, 0, 1, 1], [], []>} : vector<8x128xbf16>, vector<128x128xbf16>, vector<8x128xf32> -> vector<8x128xf32>
    %151 = arith.addf %130, %150 : vector<8x128xf32>
    %152 = vector.extract_strided_slice %135 {offsets = [16, 0], sizes = [8, 128], strides = [1, 1]} : vector<64x128xf32> to vector<8x128xf32>
    %153 = vector.extract_strided_slice %135 {offsets = [24, 0], sizes = [8, 128], strides = [1, 1]} : vector<64x128xf32> to vector<8x128xf32>
    %154 = arith.maximumf %152, %153 : vector<8x128xf32>
    %155 = vector.extract_strided_slice %137 {offsets = [16, 0], sizes = [8, 128], strides = [1, 1]} : vector<64x128xf32> to vector<8x128xf32>
    %156 = vector.extract_strided_slice %137 {offsets = [24, 0], sizes = [8, 128], strides = [1, 1]} : vector<64x128xf32> to vector<8x128xf32>
    %157 = arith.maximumf %155, %156 : vector<8x128xf32>
    %158 = arith.maximumf %154, %157 : vector<8x128xf32>
    %cst_57 = arith.constant 0.000000e+00 : f32
    %159 = vector.broadcast %cst_57 : f32 to vector<8x128xf32>
    %160 = arith.maximumf %158, %159 : vector<8x128xf32>
    %161 = arith.truncf %160 : vector<8x128xf32> to vector<8x128xbf16>
    %c9 = arith.constant 9 : index
    %c0_58 = arith.constant 0 : index
    %c0_59 = arith.constant 0 : index
    %162 = vector.load %arg6[%c9, %c0_58, %c0_59] : memref<16x128x128xbf16, #tpu.memory_space<vmem>>, vector<1x128x128xbf16>
    %163 = vector.shape_cast %162 : vector<1x128x128xbf16> to vector<128x128xbf16>
    %cst_60 = arith.constant dense<0.000000e+00> : vector<8x128xf32>
    %164 = tpu.matmul %161, %163, %cst_60 {dimension_numbers = #tpu.dot_dimension_numbers<[1], [0], [0], [1], [0, 0, 1, 1], [], []>} : vector<8x128xbf16>, vector<128x128xbf16>, vector<8x128xf32> -> vector<8x128xf32>
    %165 = arith.addf %151, %164 : vector<8x128xf32>
    %166 = vector.extract_strided_slice %135 {offsets = [32, 0], sizes = [8, 128], strides = [1, 1]} : vector<64x128xf32> to vector<8x128xf32>
    %167 = vector.extract_strided_slice %135 {offsets = [40, 0], sizes = [8, 128], strides = [1, 1]} : vector<64x128xf32> to vector<8x128xf32>
    %168 = arith.maximumf %166, %167 : vector<8x128xf32>
    %169 = vector.extract_strided_slice %137 {offsets = [32, 0], sizes = [8, 128], strides = [1, 1]} : vector<64x128xf32> to vector<8x128xf32>
    %170 = vector.extract_strided_slice %137 {offsets = [40, 0], sizes = [8, 128], strides = [1, 1]} : vector<64x128xf32> to vector<8x128xf32>
    %171 = arith.maximumf %169, %170 : vector<8x128xf32>
    %172 = arith.maximumf %168, %171 : vector<8x128xf32>
    %cst_61 = arith.constant 0.000000e+00 : f32
    %173 = vector.broadcast %cst_61 : f32 to vector<8x128xf32>
    %174 = arith.maximumf %172, %173 : vector<8x128xf32>
    %175 = arith.truncf %174 : vector<8x128xf32> to vector<8x128xbf16>
    %c10 = arith.constant 10 : index
    %c0_62 = arith.constant 0 : index
    %c0_63 = arith.constant 0 : index
    %176 = vector.load %arg6[%c10, %c0_62, %c0_63] : memref<16x128x128xbf16, #tpu.memory_space<vmem>>, vector<1x128x128xbf16>
    %177 = vector.shape_cast %176 : vector<1x128x128xbf16> to vector<128x128xbf16>
    %cst_64 = arith.constant dense<0.000000e+00> : vector<8x128xf32>
    %178 = tpu.matmul %175, %177, %cst_64 {dimension_numbers = #tpu.dot_dimension_numbers<[1], [0], [0], [1], [0, 0, 1, 1], [], []>} : vector<8x128xbf16>, vector<128x128xbf16>, vector<8x128xf32> -> vector<8x128xf32>
    %179 = arith.addf %165, %178 : vector<8x128xf32>
    %180 = vector.extract_strided_slice %135 {offsets = [48, 0], sizes = [8, 128], strides = [1, 1]} : vector<64x128xf32> to vector<8x128xf32>
    %181 = vector.extract_strided_slice %135 {offsets = [56, 0], sizes = [8, 128], strides = [1, 1]} : vector<64x128xf32> to vector<8x128xf32>
    %182 = arith.maximumf %180, %181 : vector<8x128xf32>
    %183 = vector.extract_strided_slice %137 {offsets = [48, 0], sizes = [8, 128], strides = [1, 1]} : vector<64x128xf32> to vector<8x128xf32>
    %184 = vector.extract_strided_slice %137 {offsets = [56, 0], sizes = [8, 128], strides = [1, 1]} : vector<64x128xf32> to vector<8x128xf32>
    %185 = arith.maximumf %183, %184 : vector<8x128xf32>
    %186 = arith.maximumf %182, %185 : vector<8x128xf32>
    %cst_65 = arith.constant 0.000000e+00 : f32
    %187 = vector.broadcast %cst_65 : f32 to vector<8x128xf32>
    %188 = arith.maximumf %186, %187 : vector<8x128xf32>
    %189 = arith.truncf %188 : vector<8x128xf32> to vector<8x128xbf16>
    %c11 = arith.constant 11 : index
    %c0_66 = arith.constant 0 : index
    %c0_67 = arith.constant 0 : index
    %190 = vector.load %arg6[%c11, %c0_66, %c0_67] : memref<16x128x128xbf16, #tpu.memory_space<vmem>>, vector<1x128x128xbf16>
    %191 = vector.shape_cast %190 : vector<1x128x128xbf16> to vector<128x128xbf16>
    %cst_68 = arith.constant dense<0.000000e+00> : vector<8x128xf32>
    %192 = tpu.matmul %189, %191, %cst_68 {dimension_numbers = #tpu.dot_dimension_numbers<[1], [0], [0], [1], [0, 0, 1, 1], [], []>} : vector<8x128xbf16>, vector<128x128xbf16>, vector<8x128xf32> -> vector<8x128xf32>
    %193 = arith.addf %179, %192 : vector<8x128xf32>
    %cst_69 = arith.constant 0.000000e+00 : f32
    %194 = vector.broadcast %cst_69 : f32 to vector<64x128xf32>
    %c0_i32_70 = arith.constant 0 : i32
    %c5_i32_71 = arith.constant 5 : i32
    %195 = arith.addi %c0_i32_70, %c5_i32_71 : i32
    %c1_i32_72 = arith.constant 1 : i32
    %196:2 = scf.for %arg12 = %c0_i32_70 to %195 step %c1_i32_72 iter_args(%arg13 = %194, %arg14 = %194) -> (vector<64x128xf32>, vector<64x128xf32>)  : i32 {
      %c6_i32 = arith.constant 6 : i32
      %279 = arith.addi %c6_i32, %arg12 : i32
      %c12_i32 = arith.constant 12 : i32
      %280 = arith.muli %279, %c12_i32 : i32
      %c5_i32_102 = arith.constant 5 : i32
      %281 = arith.muli %arg12, %c5_i32_102 : i32
      %c0_i32_103 = arith.constant 0 : i32
      %282 = arith.addi %281, %c0_i32_103 : i32
      %283 = arith.index_cast %282 : i32 to index
      %c0_104 = arith.constant 0 : index
      %c0_105 = arith.constant 0 : index
      %284 = vector.load %arg4[%283, %c0_104, %c0_105] : memref<25x128x128xbf16, #tpu.memory_space<vmem>>, vector<1x128x128xbf16>
      %285 = vector.shape_cast %284 : vector<1x128x128xbf16> to vector<128x128xbf16>
      %c0_i32_106 = arith.constant 0 : i32
      %286 = arith.addi %280, %c0_i32_106 : i32
      %c8_i32_107 = arith.constant 8 : i32
      %287 = arith.muli %286, %c8_i32_107 : i32
      %288 = tpu.assume_multiple %287, 8 : i32
      %c12_i32_108 = arith.constant 12 : i32
      %289 = arith.addi %280, %c12_i32_108 : i32
      %c0_i32_109 = arith.constant 0 : i32
      %290 = arith.addi %289, %c0_i32_109 : i32
      %c8_i32_110 = arith.constant 8 : i32
      %291 = arith.muli %290, %c8_i32_110 : i32
      %292 = tpu.assume_multiple %291, 8 : i32
      %293 = arith.index_cast %288 : i32 to index
      %c0_111 = arith.constant 0 : index
      %294 = vector.load %arg11[%293, %c0_111] : memref<1152x128xf32, #tpu.memory_space<vmem>>, vector<64x128xf32>
      %295 = arith.truncf %294 : vector<64x128xf32> to vector<64x128xbf16>
      %296 = arith.index_cast %292 : i32 to index
      %c0_112 = arith.constant 0 : index
      %297 = vector.load %arg11[%296, %c0_112] : memref<1152x128xf32, #tpu.memory_space<vmem>>, vector<64x128xf32>
      %298 = arith.truncf %297 : vector<64x128xf32> to vector<64x128xbf16>
      %cst_113 = arith.constant dense<0.000000e+00> : vector<64x128xf32>
      %299 = tpu.matmul %295, %285, %cst_113 {dimension_numbers = #tpu.dot_dimension_numbers<[1], [0], [0], [1], [0, 0, 1, 1], [], []>} : vector<64x128xbf16>, vector<128x128xbf16>, vector<64x128xf32> -> vector<64x128xf32>
      %300 = arith.addf %arg13, %299 : vector<64x128xf32>
      %cst_114 = arith.constant dense<0.000000e+00> : vector<64x128xf32>
      %301 = tpu.matmul %298, %285, %cst_114 {dimension_numbers = #tpu.dot_dimension_numbers<[1], [0], [0], [1], [0, 0, 1, 1], [], []>} : vector<64x128xbf16>, vector<128x128xbf16>, vector<64x128xf32> -> vector<64x128xf32>
      %302 = arith.addf %arg14, %301 : vector<64x128xf32>
      %c5_i32_115 = arith.constant 5 : i32
      %303 = arith.muli %arg12, %c5_i32_115 : i32
      %c1_i32_116 = arith.constant 1 : i32
      %304 = arith.addi %303, %c1_i32_116 : i32
      %305 = arith.index_cast %304 : i32 to index
      %c0_117 = arith.constant 0 : index
      %c0_118 = arith.constant 0 : index
      %306 = vector.load %arg4[%305, %c0_117, %c0_118] : memref<25x128x128xbf16, #tpu.memory_space<vmem>>, vector<1x128x128xbf16>
      %307 = vector.shape_cast %306 : vector<1x128x128xbf16> to vector<128x128xbf16>
      %c1_i32_119 = arith.constant 1 : i32
      %308 = arith.addi %280, %c1_i32_119 : i32
      %c8_i32_120 = arith.constant 8 : i32
      %309 = arith.muli %308, %c8_i32_120 : i32
      %310 = tpu.assume_multiple %309, 8 : i32
      %c12_i32_121 = arith.constant 12 : i32
      %311 = arith.addi %280, %c12_i32_121 : i32
      %c1_i32_122 = arith.constant 1 : i32
      %312 = arith.addi %311, %c1_i32_122 : i32
      %c8_i32_123 = arith.constant 8 : i32
      %313 = arith.muli %312, %c8_i32_123 : i32
      %314 = tpu.assume_multiple %313, 8 : i32
      %315 = arith.index_cast %310 : i32 to index
      %c0_124 = arith.constant 0 : index
      %316 = vector.load %arg11[%315, %c0_124] : memref<1152x128xf32, #tpu.memory_space<vmem>>, vector<64x128xf32>
      %317 = arith.truncf %316 : vector<64x128xf32> to vector<64x128xbf16>
      %318 = arith.index_cast %314 : i32 to index
      %c0_125 = arith.constant 0 : index
      %319 = vector.load %arg11[%318, %c0_125] : memref<1152x128xf32, #tpu.memory_space<vmem>>, vector<64x128xf32>
      %320 = arith.truncf %319 : vector<64x128xf32> to vector<64x128xbf16>
      %cst_126 = arith.constant dense<0.000000e+00> : vector<64x128xf32>
      %321 = tpu.matmul %317, %307, %cst_126 {dimension_numbers = #tpu.dot_dimension_numbers<[1], [0], [0], [1], [0, 0, 1, 1], [], []>} : vector<64x128xbf16>, vector<128x128xbf16>, vector<64x128xf32> -> vector<64x128xf32>
      %322 = arith.addf %300, %321 : vector<64x128xf32>
      %cst_127 = arith.constant dense<0.000000e+00> : vector<64x128xf32>
      %323 = tpu.matmul %320, %307, %cst_127 {dimension_numbers = #tpu.dot_dimension_numbers<[1], [0], [0], [1], [0, 0, 1, 1], [], []>} : vector<64x128xbf16>, vector<128x128xbf16>, vector<64x128xf32> -> vector<64x128xf32>
      %324 = arith.addf %302, %323 : vector<64x128xf32>
      %c5_i32_128 = arith.constant 5 : i32
      %325 = arith.muli %arg12, %c5_i32_128 : i32
      %c2_i32 = arith.constant 2 : i32
      %326 = arith.addi %325, %c2_i32 : i32
      %327 = arith.index_cast %326 : i32 to index
      %c0_129 = arith.constant 0 : index
      %c0_130 = arith.constant 0 : index
      %328 = vector.load %arg4[%327, %c0_129, %c0_130] : memref<25x128x128xbf16, #tpu.memory_space<vmem>>, vector<1x128x128xbf16>
      %329 = vector.shape_cast %328 : vector<1x128x128xbf16> to vector<128x128xbf16>
      %c2_i32_131 = arith.constant 2 : i32
      %330 = arith.addi %280, %c2_i32_131 : i32
      %c8_i32_132 = arith.constant 8 : i32
      %331 = arith.muli %330, %c8_i32_132 : i32
      %332 = tpu.assume_multiple %331, 8 : i32
      %c12_i32_133 = arith.constant 12 : i32
      %333 = arith.addi %280, %c12_i32_133 : i32
      %c2_i32_134 = arith.constant 2 : i32
      %334 = arith.addi %333, %c2_i32_134 : i32
      %c8_i32_135 = arith.constant 8 : i32
      %335 = arith.muli %334, %c8_i32_135 : i32
      %336 = tpu.assume_multiple %335, 8 : i32
      %337 = arith.index_cast %332 : i32 to index
      %c0_136 = arith.constant 0 : index
      %338 = vector.load %arg11[%337, %c0_136] : memref<1152x128xf32, #tpu.memory_space<vmem>>, vector<64x128xf32>
      %339 = arith.truncf %338 : vector<64x128xf32> to vector<64x128xbf16>
      %340 = arith.index_cast %336 : i32 to index
      %c0_137 = arith.constant 0 : index
      %341 = vector.load %arg11[%340, %c0_137] : memref<1152x128xf32, #tpu.memory_space<vmem>>, vector<64x128xf32>
      %342 = arith.truncf %341 : vector<64x128xf32> to vector<64x128xbf16>
      %cst_138 = arith.constant dense<0.000000e+00> : vector<64x128xf32>
      %343 = tpu.matmul %339, %329, %cst_138 {dimension_numbers = #tpu.dot_dimension_numbers<[1], [0], [0], [1], [0, 0, 1, 1], [], []>} : vector<64x128xbf16>, vector<128x128xbf16>, vector<64x128xf32> -> vector<64x128xf32>
      %344 = arith.addf %322, %343 : vector<64x128xf32>
      %cst_139 = arith.constant dense<0.000000e+00> : vector<64x128xf32>
      %345 = tpu.matmul %342, %329, %cst_139 {dimension_numbers = #tpu.dot_dimension_numbers<[1], [0], [0], [1], [0, 0, 1, 1], [], []>} : vector<64x128xbf16>, vector<128x128xbf16>, vector<64x128xf32> -> vector<64x128xf32>
      %346 = arith.addf %324, %345 : vector<64x128xf32>
      %c5_i32_140 = arith.constant 5 : i32
      %347 = arith.muli %arg12, %c5_i32_140 : i32
      %c3_i32 = arith.constant 3 : i32
      %348 = arith.addi %347, %c3_i32 : i32
      %349 = arith.index_cast %348 : i32 to index
      %c0_141 = arith.constant 0 : index
      %c0_142 = arith.constant 0 : index
      %350 = vector.load %arg4[%349, %c0_141, %c0_142] : memref<25x128x128xbf16, #tpu.memory_space<vmem>>, vector<1x128x128xbf16>
      %351 = vector.shape_cast %350 : vector<1x128x128xbf16> to vector<128x128xbf16>
      %c3_i32_143 = arith.constant 3 : i32
      %352 = arith.addi %280, %c3_i32_143 : i32
      %c8_i32_144 = arith.constant 8 : i32
      %353 = arith.muli %352, %c8_i32_144 : i32
      %354 = tpu.assume_multiple %353, 8 : i32
      %c12_i32_145 = arith.constant 12 : i32
      %355 = arith.addi %280, %c12_i32_145 : i32
      %c3_i32_146 = arith.constant 3 : i32
      %356 = arith.addi %355, %c3_i32_146 : i32
      %c8_i32_147 = arith.constant 8 : i32
      %357 = arith.muli %356, %c8_i32_147 : i32
      %358 = tpu.assume_multiple %357, 8 : i32
      %359 = arith.index_cast %354 : i32 to index
      %c0_148 = arith.constant 0 : index
      %360 = vector.load %arg11[%359, %c0_148] : memref<1152x128xf32, #tpu.memory_space<vmem>>, vector<64x128xf32>
      %361 = arith.truncf %360 : vector<64x128xf32> to vector<64x128xbf16>
      %362 = arith.index_cast %358 : i32 to index
      %c0_149 = arith.constant 0 : index
      %363 = vector.load %arg11[%362, %c0_149] : memref<1152x128xf32, #tpu.memory_space<vmem>>, vector<64x128xf32>
      %364 = arith.truncf %363 : vector<64x128xf32> to vector<64x128xbf16>
      %cst_150 = arith.constant dense<0.000000e+00> : vector<64x128xf32>
      %365 = tpu.matmul %361, %351, %cst_150 {dimension_numbers = #tpu.dot_dimension_numbers<[1], [0], [0], [1], [0, 0, 1, 1], [], []>} : vector<64x128xbf16>, vector<128x128xbf16>, vector<64x128xf32> -> vector<64x128xf32>
      %366 = arith.addf %344, %365 : vector<64x128xf32>
      %cst_151 = arith.constant dense<0.000000e+00> : vector<64x128xf32>
      %367 = tpu.matmul %364, %351, %cst_151 {dimension_numbers = #tpu.dot_dimension_numbers<[1], [0], [0], [1], [0, 0, 1, 1], [], []>} : vector<64x128xbf16>, vector<128x128xbf16>, vector<64x128xf32> -> vector<64x128xf32>
      %368 = arith.addf %346, %367 : vector<64x128xf32>
      %c5_i32_152 = arith.constant 5 : i32
      %369 = arith.muli %arg12, %c5_i32_152 : i32
      %c4_i32 = arith.constant 4 : i32
      %370 = arith.addi %369, %c4_i32 : i32
      %371 = arith.index_cast %370 : i32 to index
      %c0_153 = arith.constant 0 : index
      %c0_154 = arith.constant 0 : index
      %372 = vector.load %arg4[%371, %c0_153, %c0_154] : memref<25x128x128xbf16, #tpu.memory_space<vmem>>, vector<1x128x128xbf16>
      %373 = vector.shape_cast %372 : vector<1x128x128xbf16> to vector<128x128xbf16>
      %c4_i32_155 = arith.constant 4 : i32
      %374 = arith.addi %280, %c4_i32_155 : i32
      %c8_i32_156 = arith.constant 8 : i32
      %375 = arith.muli %374, %c8_i32_156 : i32
      %376 = tpu.assume_multiple %375, 8 : i32
      %c12_i32_157 = arith.constant 12 : i32
      %377 = arith.addi %280, %c12_i32_157 : i32
      %c4_i32_158 = arith.constant 4 : i32
      %378 = arith.addi %377, %c4_i32_158 : i32
      %c8_i32_159 = arith.constant 8 : i32
      %379 = arith.muli %378, %c8_i32_159 : i32
      %380 = tpu.assume_multiple %379, 8 : i32
      %381 = arith.index_cast %376 : i32 to index
      %c0_160 = arith.constant 0 : index
      %382 = vector.load %arg11[%381, %c0_160] : memref<1152x128xf32, #tpu.memory_space<vmem>>, vector<64x128xf32>
      %383 = arith.truncf %382 : vector<64x128xf32> to vector<64x128xbf16>
      %384 = arith.index_cast %380 : i32 to index
      %c0_161 = arith.constant 0 : index
      %385 = vector.load %arg11[%384, %c0_161] : memref<1152x128xf32, #tpu.memory_space<vmem>>, vector<64x128xf32>
      %386 = arith.truncf %385 : vector<64x128xf32> to vector<64x128xbf16>
      %cst_162 = arith.constant dense<0.000000e+00> : vector<64x128xf32>
      %387 = tpu.matmul %383, %373, %cst_162 {dimension_numbers = #tpu.dot_dimension_numbers<[1], [0], [0], [1], [0, 0, 1, 1], [], []>} : vector<64x128xbf16>, vector<128x128xbf16>, vector<64x128xf32> -> vector<64x128xf32>
      %388 = arith.addf %366, %387 : vector<64x128xf32>
      %cst_163 = arith.constant dense<0.000000e+00> : vector<64x128xf32>
      %389 = tpu.matmul %386, %373, %cst_163 {dimension_numbers = #tpu.dot_dimension_numbers<[1], [0], [0], [1], [0, 0, 1, 1], [], []>} : vector<64x128xbf16>, vector<128x128xbf16>, vector<64x128xf32> -> vector<64x128xf32>
      %390 = arith.addf %368, %389 : vector<64x128xf32>
      scf.yield %388, %390 : vector<64x128xf32>, vector<64x128xf32>
    }
    %c5_i32_73 = arith.constant 5 : i32
    %197 = vector.broadcast %3 : vector<1x128xf32> to vector<64x128xf32>
    %198 = arith.addf %196#0, %197 : vector<64x128xf32>
    %199 = vector.broadcast %3 : vector<1x128xf32> to vector<64x128xf32>
    %200 = arith.addf %196#1, %199 : vector<64x128xf32>
    %201 = vector.extract_strided_slice %198 {offsets = [0, 0], sizes = [8, 128], strides = [1, 1]} : vector<64x128xf32> to vector<8x128xf32>
    %202 = vector.extract_strided_slice %198 {offsets = [8, 0], sizes = [8, 128], strides = [1, 1]} : vector<64x128xf32> to vector<8x128xf32>
    %203 = arith.maximumf %201, %202 : vector<8x128xf32>
    %204 = vector.extract_strided_slice %200 {offsets = [0, 0], sizes = [8, 128], strides = [1, 1]} : vector<64x128xf32> to vector<8x128xf32>
    %205 = vector.extract_strided_slice %200 {offsets = [8, 0], sizes = [8, 128], strides = [1, 1]} : vector<64x128xf32> to vector<8x128xf32>
    %206 = arith.maximumf %204, %205 : vector<8x128xf32>
    %207 = arith.maximumf %203, %206 : vector<8x128xf32>
    %cst_74 = arith.constant 0.000000e+00 : f32
    %208 = vector.broadcast %cst_74 : f32 to vector<8x128xf32>
    %209 = arith.maximumf %207, %208 : vector<8x128xf32>
    %210 = arith.truncf %209 : vector<8x128xf32> to vector<8x128xbf16>
    %c12 = arith.constant 12 : index
    %c0_75 = arith.constant 0 : index
    %c0_76 = arith.constant 0 : index
    %211 = vector.load %arg6[%c12, %c0_75, %c0_76] : memref<16x128x128xbf16, #tpu.memory_space<vmem>>, vector<1x128x128xbf16>
    %212 = vector.shape_cast %211 : vector<1x128x128xbf16> to vector<128x128xbf16>
    %cst_77 = arith.constant dense<0.000000e+00> : vector<8x128xf32>
    %213 = tpu.matmul %210, %212, %cst_77 {dimension_numbers = #tpu.dot_dimension_numbers<[1], [0], [0], [1], [0, 0, 1, 1], [], []>} : vector<8x128xbf16>, vector<128x128xbf16>, vector<8x128xf32> -> vector<8x128xf32>
    %214 = arith.addf %193, %213 : vector<8x128xf32>
    %215 = vector.extract_strided_slice %198 {offsets = [16, 0], sizes = [8, 128], strides = [1, 1]} : vector<64x128xf32> to vector<8x128xf32>
    %216 = vector.extract_strided_slice %198 {offsets = [24, 0], sizes = [8, 128], strides = [1, 1]} : vector<64x128xf32> to vector<8x128xf32>
    %217 = arith.maximumf %215, %216 : vector<8x128xf32>
    %218 = vector.extract_strided_slice %200 {offsets = [16, 0], sizes = [8, 128], strides = [1, 1]} : vector<64x128xf32> to vector<8x128xf32>
    %219 = vector.extract_strided_slice %200 {offsets = [24, 0], sizes = [8, 128], strides = [1, 1]} : vector<64x128xf32> to vector<8x128xf32>
    %220 = arith.maximumf %218, %219 : vector<8x128xf32>
    %221 = arith.maximumf %217, %220 : vector<8x128xf32>
    %cst_78 = arith.constant 0.000000e+00 : f32
    %222 = vector.broadcast %cst_78 : f32 to vector<8x128xf32>
    %223 = arith.maximumf %221, %222 : vector<8x128xf32>
    %224 = arith.truncf %223 : vector<8x128xf32> to vector<8x128xbf16>
    %c13 = arith.constant 13 : index
    %c0_79 = arith.constant 0 : index
    %c0_80 = arith.constant 0 : index
    %225 = vector.load %arg6[%c13, %c0_79, %c0_80] : memref<16x128x128xbf16, #tpu.memory_space<vmem>>, vector<1x128x128xbf16>
    %226 = vector.shape_cast %225 : vector<1x128x128xbf16> to vector<128x128xbf16>
    %cst_81 = arith.constant dense<0.000000e+00> : vector<8x128xf32>
    %227 = tpu.matmul %224, %226, %cst_81 {dimension_numbers = #tpu.dot_dimension_numbers<[1], [0], [0], [1], [0, 0, 1, 1], [], []>} : vector<8x128xbf16>, vector<128x128xbf16>, vector<8x128xf32> -> vector<8x128xf32>
    %228 = arith.addf %214, %227 : vector<8x128xf32>
    %229 = vector.extract_strided_slice %198 {offsets = [32, 0], sizes = [8, 128], strides = [1, 1]} : vector<64x128xf32> to vector<8x128xf32>
    %230 = vector.extract_strided_slice %198 {offsets = [40, 0], sizes = [8, 128], strides = [1, 1]} : vector<64x128xf32> to vector<8x128xf32>
    %231 = arith.maximumf %229, %230 : vector<8x128xf32>
    %232 = vector.extract_strided_slice %200 {offsets = [32, 0], sizes = [8, 128], strides = [1, 1]} : vector<64x128xf32> to vector<8x128xf32>
    %233 = vector.extract_strided_slice %200 {offsets = [40, 0], sizes = [8, 128], strides = [1, 1]} : vector<64x128xf32> to vector<8x128xf32>
    %234 = arith.maximumf %232, %233 : vector<8x128xf32>
    %235 = arith.maximumf %231, %234 : vector<8x128xf32>
    %cst_82 = arith.constant 0.000000e+00 : f32
    %236 = vector.broadcast %cst_82 : f32 to vector<8x128xf32>
    %237 = arith.maximumf %235, %236 : vector<8x128xf32>
    %238 = arith.truncf %237 : vector<8x128xf32> to vector<8x128xbf16>
    %c14 = arith.constant 14 : index
    %c0_83 = arith.constant 0 : index
    %c0_84 = arith.constant 0 : index
    %239 = vector.load %arg6[%c14, %c0_83, %c0_84] : memref<16x128x128xbf16, #tpu.memory_space<vmem>>, vector<1x128x128xbf16>
    %240 = vector.shape_cast %239 : vector<1x128x128xbf16> to vector<128x128xbf16>
    %cst_85 = arith.constant dense<0.000000e+00> : vector<8x128xf32>
    %241 = tpu.matmul %238, %240, %cst_85 {dimension_numbers = #tpu.dot_dimension_numbers<[1], [0], [0], [1], [0, 0, 1, 1], [], []>} : vector<8x128xbf16>, vector<128x128xbf16>, vector<8x128xf32> -> vector<8x128xf32>
    %242 = arith.addf %228, %241 : vector<8x128xf32>
    %243 = vector.extract_strided_slice %198 {offsets = [48, 0], sizes = [8, 128], strides = [1, 1]} : vector<64x128xf32> to vector<8x128xf32>
    %244 = vector.extract_strided_slice %198 {offsets = [56, 0], sizes = [8, 128], strides = [1, 1]} : vector<64x128xf32> to vector<8x128xf32>
    %245 = arith.maximumf %243, %244 : vector<8x128xf32>
    %246 = vector.extract_strided_slice %200 {offsets = [48, 0], sizes = [8, 128], strides = [1, 1]} : vector<64x128xf32> to vector<8x128xf32>
    %247 = vector.extract_strided_slice %200 {offsets = [56, 0], sizes = [8, 128], strides = [1, 1]} : vector<64x128xf32> to vector<8x128xf32>
    %248 = arith.maximumf %246, %247 : vector<8x128xf32>
    %249 = arith.maximumf %245, %248 : vector<8x128xf32>
    %cst_86 = arith.constant 0.000000e+00 : f32
    %250 = vector.broadcast %cst_86 : f32 to vector<8x128xf32>
    %251 = arith.maximumf %249, %250 : vector<8x128xf32>
    %252 = arith.truncf %251 : vector<8x128xf32> to vector<8x128xbf16>
    %c15 = arith.constant 15 : index
    %c0_87 = arith.constant 0 : index
    %c0_88 = arith.constant 0 : index
    %253 = vector.load %arg6[%c15, %c0_87, %c0_88] : memref<16x128x128xbf16, #tpu.memory_space<vmem>>, vector<1x128x128xbf16>
    %254 = vector.shape_cast %253 : vector<1x128x128xbf16> to vector<128x128xbf16>
    %cst_89 = arith.constant dense<0.000000e+00> : vector<8x128xf32>
    %255 = tpu.matmul %252, %254, %cst_89 {dimension_numbers = #tpu.dot_dimension_numbers<[1], [0], [0], [1], [0, 0, 1, 1], [], []>} : vector<8x128xbf16>, vector<128x128xbf16>, vector<8x128xf32> -> vector<8x128xf32>
    %256 = arith.addf %242, %255 : vector<8x128xf32>
    %c0_90 = arith.constant 0 : index
    %c0_91 = arith.constant 0 : index
    %257 = vector.load %arg7[%c0_90, %c0_91] : memref<1x128xf32, #tpu.memory_space<vmem>>, vector<1x128xf32>
    %258 = vector.broadcast %257 : vector<1x128xf32> to vector<8x128xf32>
    %259 = arith.addf %256, %258 : vector<8x128xf32>
    %cst_92 = arith.constant 0.000000e+00 : f32
    %260 = vector.broadcast %cst_92 : f32 to vector<8x128xf32>
    %261 = arith.maximumf %259, %260 : vector<8x128xf32>
    %262 = arith.truncf %261 : vector<8x128xf32> to vector<8x128xbf16>
    %c0_93 = arith.constant 0 : index
    %c0_94 = arith.constant 0 : index
    %263 = vector.load %arg8[%c0_93, %c0_94] : memref<128x128xbf16, #tpu.memory_space<vmem>>, vector<128x128xbf16>
    %cst_95 = arith.constant dense<0.000000e+00> : vector<8x128xf32>
    %264 = tpu.matmul %262, %263, %cst_95 {dimension_numbers = #tpu.dot_dimension_numbers<[1], [0], [0], [1], [0, 0, 1, 1], [], []>} : vector<8x128xbf16>, vector<128x128xbf16>, vector<8x128xf32> -> vector<8x128xf32>
    %c0_96 = arith.constant 0 : index
    %c0_97 = arith.constant 0 : index
    %265 = vector.load %arg9[%c0_96, %c0_97] : memref<1x128xf32, #tpu.memory_space<vmem>>, vector<1x128xf32>
    %266 = vector.broadcast %265 : vector<1x128xf32> to vector<8x128xf32>
    %267 = arith.addf %264, %266 : vector<8x128xf32>
    %cst_98 = arith.constant dense<0xFF800000> : vector<8xf32>
    %268 = vector.multi_reduction <maximumf>, %267, %cst_98 [1] : vector<8x128xf32> to vector<8xf32>
    %269 = vector.shape_cast %268 : vector<8xf32> to vector<8x1xf32>
    %270 = vector.broadcast %269 : vector<8x1xf32> to vector<8x128xf32>
    %271 = arith.subf %267, %270 : vector<8x128xf32>
    %272 = math.exp %271 : vector<8x128xf32>
    %cst_99 = arith.constant dense<0.000000e+00> : vector<8xf32>
    %273 = vector.multi_reduction <add>, %272, %cst_99 [1] : vector<8x128xf32> to vector<8xf32>
    %274 = vector.shape_cast %273 : vector<8xf32> to vector<8x1xf32>
    %275 = math.log %274 : vector<8x1xf32>
    %276 = vector.broadcast %275 : vector<8x1xf32> to vector<8x128xf32>
    %277 = arith.subf %271, %276 : vector<8x128xf32>
    %c0_100 = arith.constant 0 : index
    %c0_101 = arith.constant 0 : index
    %278 = vector.load %arg10[%c0_100, %c0_101] : memref<8x128xf32, #tpu.memory_space<vmem>>, vector<8x128xf32>
    tpu.vector_store %arg10[%c0_100, %c0_101], %277 {strides = array<i32>} : memref<8x128xf32, #tpu.memory_space<vmem>>, vector<8x128xf32>,
    return
  }
  func.func @transform_0(%arg0: i32) -> (i32, i32, i32, i32) {
    %c0_i32 = arith.constant 0 : i32
    %c0_i32_0 = arith.constant 0 : i32
    %c0_i32_1 = arith.constant 0 : i32
    %c0_i32_2 = arith.constant 0 : i32
    return %arg0, %c0_i32, %c0_i32_0, %c0_i32_1 : i32, i32, i32, i32
  }
  func.func @transform_1(%arg0: i32) -> (i32, i32) {
    %c0_i32 = arith.constant 0 : i32
    %c0_i32_0 = arith.constant 0 : i32
    %c0_i32_1 = arith.constant 0 : i32
    return %c0_i32, %c0_i32_0 : i32, i32
  }
  func.func @transform_2(%arg0: i32) -> (i32, i32) {
    %c0_i32 = arith.constant 0 : i32
    %c0_i32_0 = arith.constant 0 : i32
    %c0_i32_1 = arith.constant 0 : i32
    return %c0_i32, %c0_i32_0 : i32, i32
  }
  func.func @transform_3(%arg0: i32) -> (i32, i32, i32) {
    %c0_i32 = arith.constant 0 : i32
    %c0_i32_0 = arith.constant 0 : i32
    %c0_i32_1 = arith.constant 0 : i32
    %c0_i32_2 = arith.constant 0 : i32
    return %c0_i32, %c0_i32_0, %c0_i32_1 : i32, i32, i32
  }
  func.func @transform_4(%arg0: i32) -> (i32, i32) {
    %c0_i32 = arith.constant 0 : i32
    %c0_i32_0 = arith.constant 0 : i32
    %c0_i32_1 = arith.constant 0 : i32
    return %c0_i32, %c0_i32_0 : i32, i32
  }
  func.func @transform_5(%arg0: i32) -> (i32, i32, i32) {
    %c0_i32 = arith.constant 0 : i32
    %c0_i32_0 = arith.constant 0 : i32
    %c0_i32_1 = arith.constant 0 : i32
    %c0_i32_2 = arith.constant 0 : i32
    return %c0_i32, %c0_i32_0, %c0_i32_1 : i32, i32, i32
  }
  func.func @transform_6(%arg0: i32) -> (i32, i32) {
    %c0_i32 = arith.constant 0 : i32
    %c0_i32_0 = arith.constant 0 : i32
    %c0_i32_1 = arith.constant 0 : i32
    return %c0_i32, %c0_i32_0 : i32, i32
  }
  func.func @transform_7(%arg0: i32) -> (i32, i32) {
    %c0_i32 = arith.constant 0 : i32
    %c0_i32_0 = arith.constant 0 : i32
    %c0_i32_1 = arith.constant 0 : i32
    return %c0_i32, %c0_i32_0 : i32, i32
  }
  func.func @transform_8(%arg0: i32) -> (i32, i32) {
    %c0_i32 = arith.constant 0 : i32
    %c0_i32_0 = arith.constant 0 : i32
    %c0_i32_1 = arith.constant 0 : i32
    return %c0_i32, %c0_i32_0 : i32, i32
  }
  func.func @transform_9(%arg0: i32) -> (i32, i32) {
    %c0_i32 = arith.constant 0 : i32
    %c0_i32_0 = arith.constant 0 : i32
    return %arg0, %c0_i32 : i32, i32
  }
}

</mosaic_0001>

<bundles_post_ra>
// kernel: net_forward.1
= control target key start
LH: loop header
LB: loop body
LE: loop exit
PB: predicated region body
PF: predicated region fallthrough
CT: control target
= control target key end

     0   :  { %14 = vsyncpa [#allocation4], 0  ;;  %s12934_s0 = inlined_call_operand.vmem [shape: bf16[2,4,1152,32], index: 0, kind: input, shape index: {}]   ;;  %s12935_s1 = inlined_call_operand.vmem [shape: bf16[32,128], index: 1, kind: input, shape index: {}]   ;;  %s12936_s2 = inlined_call_operand.vmem [shape: f32[1,128], index: 2, kind: input, shape index: {}]   ;;  %s12937_s3 = inlined_call_operand.vmem [shape: bf16[25,128,128], index: 3, kind: input, shape index: {}]   ;;  %s12938_s4 = inlined_call_operand.vmem [shape: f32[1,128], index: 4, kind: input, shape index: {}]   ;;  %s12939_s5 = inlined_call_operand.vmem [shape: bf16[16,128,128], index: 5, kind: input, shape index: {}]   ;;  %s12940_s6 = inlined_call_operand.vmem [shape: f32[1,128], index: 6, kind: input, shape index: {}]   ;;  %s12941_s7 = inlined_call_operand.vmem [shape: bf16[128,128], index: 7, kind: input, shape index: {}]   ;;  %s12942_s8 = inlined_call_operand.vmem [shape: f32[1,128], index: 8, kind: input, shape index: {}]   ;;  %s12943_s9 = inlined_call_operand.hbm [shape: f32[16,128], index: 9, kind: output, shape index: {}]  }
   0x1   :  { %16 = vsyncpa [#allocation4 + $0x1], 0  ;;  %s10603_s30 = smov 0   ;;  %s10605_s10 = smov 0  }
   0x2   :  { %s10607_s11 = smov 0   ;;  %s10609_s12 = smov 0  }
   0x3 LB: > { %s10624_s13 = sadd.s32 4294967295, %s10275_s12   ;;  %s6629_s14 = sadd.s32 4294967294, %s10275_s12   ;;  %s10275_s12 = sphi %s10609_s12, %s13059_s12   ;;  %s10271_s11 = sphi %s10607_s11, %s13058_s11   ;;  %s10267_s10 = sphi %s10605_s10, %s13057_s10   ;;  %s10263_s30 = sphi %s10603_s30, %s13056_s30  }
   0x4   : > { %s10628_s15 = sadd.s32 1, %s10275_s12   ;;  %s223_s16 = sadd.s32 1, %s10271_s11 }
   0x5   : > { %s220_s17 = ssub.s32 %s10275_s12, %s10628_s15  ;;  %p233_p0 = scmp.ne.s32.totalorder %s10271_s11, %s10267_s10 }
   0x6   : > { %p221_p1 = scmp.eq.s32.totalorder %s220_s17, 0  ;;  %p234_p2 = scmp.eq.s32.totalorder %s10624_s13, 1 }
   0x7   : > { %p239_p3 = scmp.ne.s32.totalorder %s10267_s10, %s10263_s30  ;;  %p240_p4 = scmp.eq.s32.totalorder %s6629_s14, 1 }
   0x8   : > { %s10639_s18 = scalar_select %p221_p1, %s10271_s11, %s223_s16  }
   0x9   : > { %p10641_p5 = por %p234_p2, %p233_p0  ;;  %p10645_p6 = por %p240_p4, %p239_p3 }
   0xa   : > { %p6632_p7 = scmp.ge.s32.totalorder %s10275_s12, 1  ;;  %p290_p8 = scmp.lt.s32.totalorder %s10275_s12, 3 }
   0xc   : > { %p291_p9 = pnand %p6632_p7, %p290_p8 }
   0xd   : > { %s12944_s21 = sand.u32 (!%p291_p9), 1, %s10267_s10   ;;  %p326_p10 = scmp.lt.s32.totalorder (!%p291_p9), %s10624_s13, 1 }
   0xe   : > { %294 = sbr.rel (%p291_p9) target bundleno = 2663 (0xa67), region = 56  ;;  %s10665_s26 = sshll.u32 (!%p291_p9), %s12944_s21, 3 }
   0xf   : > { %s325_s27 = scalar_lea.vmem (!%p291_p9), [#allocation3], %s10665_s26  ;;  %s10689_s28 = smov (!%p291_p9), 0  }
  0x13   : > { %v10656_v0 = vld [vmem:[%s12935_s1] sm:$0xf]  ;;  %v10661_v1 = vld [vmem:[%s12935_s1] sm:$0xf0]  ;;  %v10670_v2 = vld [vmem:[%s12935_s1 + $0x8] sm:$0xf] }
  0x14   : > { %v10675_v3 = vld [vmem:[%s12935_s1 + $0x8] sm:$0xf0]  ;;  %v10680_v4 = vld [vmem:[%s12936_s2] sm:$0x1]  ;;  %s327_s22 = scalar_select %p326_p10, %s10624_s13, 1 }
  0x16   : > { %s9339_s23 = smul.u32 2304, %s327_s22 }
  0x18   : > { %s10686_s21 = scalar_lea.vmem %s12934_s0, %s9339_s23 }
  0x19 LB: >> { %v6679_v5 = vor.u32 %v10675_v3, %v10670_v2  ;;  %v6675_v6 = vor.u32 %v10661_v1, %v10656_v0  ;;  %s343_s29 = smul.u32 144, %s10279_s28  ;;  %vm423_vm0 = vcmask 261120   ;;  %v10777_v49 = vperm.slane %v10680_v4, 0  ;;  %s342_s28 = sadd.s32 1, %s10279_s28   ;;  %s10279_s28 = sphi %s10689_s28, %s342_s28  }
  0x1a   : >> { %p339_p11 = scmp.ge.s32.totalorder %s342_s28, 8  }
  0x1b   : >> { %457 = vmatpush.bf16.msra.mxu0 %v6679_v5  ;;  %604 = vmatpush.bf16.msra.mxu1 %v6679_v5  ;;  %s344_s14 = sshra.s32 %s343_s29, 3  ;;  %s10782_s22 = scalar_lea.vmem [#allocation2], %s343_s29  ;;  %v10843_v0 = vmov (%p339_p11), 0.0   ;;  %v10845_v1 = vmov (%p339_p11), 0.0   ;;  %v10847_v2 = vmov (%p339_p11), 0.0   ;;  %v10849_v3 = vmov (%p339_p11), 0.0  }
  0x1c   : >> { %769 = vmatpush.bf16.msra.mxu2 %v6679_v5  ;;  %934 = vmatpush.bf16.msra.mxu3 %v6679_v5  ;;  %s6635_s16 = sshll.u32 %s344_s14, 2  ;;  %v10851_v4 = vmov (%p339_p11), 0.0  }
  0x1d   : >> { %s10702_s17 = scalar_lea.vmem %s10686_s21, %s6635_s16  ;;  %s10859_s21 = smov (%p339_p11), 0  }
  0x1e   : >> { %v8939_v7 = vld [vmem:[%s10702_s17] sm:$0xff]  ;;  %v8940_v11 = vld [vmem:[%s10702_s17 + $0x8] sm:$0xff]  ;;  %v8941_v15 = vld [vmem:[%s10702_s17 + $0x10] sm:$0xff] }
  0x1f   : >> { %458 = vmatpush.bf16.msra.mxu0 %v6675_v6  ;;  %605 = vmatpush.bf16.msra.mxu1 %v6675_v6  ;;  %v8948_v8 = vld [vmem:[%s10702_s17 + $0x240] sm:$0xff]  ;;  %v8949_v12 = vld [vmem:[%s10702_s17 + $0x248] sm:$0xff]  ;;  %v8950_v16 = vld [vmem:[%s10702_s17 + $0x250] sm:$0xff] }
  0x20   : >> { %770 = vmatpush.bf16.msra.mxu2 %v6675_v6  ;;  %935 = vmatpush.bf16.msra.mxu3 %v6675_v6  ;;  %v8957_v9 = vld [vmem:[%s10702_s17 + $0x480] sm:$0xff]  ;;  %v8958_v13 = vld [vmem:[%s10702_s17 + $0x488] sm:$0xff]  ;;  %v8959_v17 = vld [vmem:[%s10702_s17 + $0x490] sm:$0xff] }
  0x21   : >> { %v8966_v10 = vld [vmem:[%s10702_s17 + $0x6c0] sm:$0xff]  ;;  %v8967_v14 = vld [vmem:[%s10702_s17 + $0x6c8] sm:$0xff]  ;;  %v8968_v18 = vld [vmem:[%s10702_s17 + $0x6d0] sm:$0xff] }
  0x22   : >> { %6680 = vmatmul.msk.bf16.vlgmr.msra.gmra.mxu0 %vm423_vm0, %v8939_v7  ;;  %6744 = vmatmul.msk.bf16.vlgmr.msra.gmra.mxu1 %vm423_vm0, %v8948_v8  ;;  %v8942_v19 = vld [vmem:[%s10702_s17 + $0x18] sm:$0xff]  ;;  %v8943_v23 = vld [vmem:[%s10702_s17 + $0x20] sm:$0xff]  ;;  %v8944_v27 = vld [vmem:[%s10702_s17 + $0x28] sm:$0xff] }
  0x23   : >> { %6808 = vmatmul.msk.bf16.vlgmr.msra.gmra.mxu2 %vm423_vm0, %v8957_v9  ;;  %6872 = vmatmul.msk.bf16.vlgmr.msra.gmra.mxu3 %vm423_vm0, %v8966_v10  ;;  %v8951_v20 = vld [vmem:[%s10702_s17 + $0x258] sm:$0xff]  ;;  %v8952_v24 = vld [vmem:[%s10702_s17 + $0x260] sm:$0xff]  ;;  %v8953_v28 = vld [vmem:[%s10702_s17 + $0x268] sm:$0xff] }
  0x24   : >> { %v8960_v21 = vld [vmem:[%s10702_s17 + $0x498] sm:$0xff]  ;;  %v8961_v25 = vld [vmem:[%s10702_s17 + $0x4a0] sm:$0xff]  ;;  %v8962_v29 = vld [vmem:[%s10702_s17 + $0x4a8] sm:$0xff] }
  0x25   : >> { %v8969_v22 = vld [vmem:[%s10702_s17 + $0x6d8] sm:$0xff]  ;;  %v8970_v26 = vld [vmem:[%s10702_s17 + $0x6e0] sm:$0xff]  ;;  %v8971_v30 = vld [vmem:[%s10702_s17 + $0x6e8] sm:$0xff] }
  0x26   : >> { %v8945_v31 = vld [vmem:[%s10702_s17 + $0x30] sm:$0xff]  ;;  %v8946_v35 = vld [vmem:[%s10702_s17 + $0x38] sm:$0xff]  ;;  %v8947_v39 = vld [vmem:[%s10702_s17 + $0x40] sm:$0xff] }
  0x27   : >> { %v8954_v32 = vld [vmem:[%s10702_s17 + $0x270] sm:$0xff]  ;;  %v8955_v36 = vld [vmem:[%s10702_s17 + $0x278] sm:$0xff]  ;;  %v8956_v40 = vld [vmem:[%s10702_s17 + $0x280] sm:$0xff] }
  0x28   : >> { %v8963_v33 = vld [vmem:[%s10702_s17 + $0x4b0] sm:$0xff]  ;;  %v8964_v37 = vld [vmem:[%s10702_s17 + $0x4b8] sm:$0xff]  ;;  %v8965_v43 = vld [vmem:[%s10702_s17 + $0x4c0] sm:$0xff] }
  0x29   : >> { %v8972_v34 = vld [vmem:[%s10702_s17 + $0x6f0] sm:$0xff]  ;;  %v8973_v38 = vld [vmem:[%s10702_s17 + $0x6f8] sm:$0xff]  ;;  %v8974_v44 = vld [vmem:[%s10702_s17 + $0x700] sm:$0xff] }
  0x32   : >> { %6681 = vmatmul.msk.bf16.gmra.mxu0 %vm423_vm0, %v8940_v11  ;;  %6745 = vmatmul.msk.bf16.gmra.mxu1 %vm423_vm0, %v8949_v12 }
  0x33   : >> { %6809 = vmatmul.msk.bf16.gmra.mxu2 %vm423_vm0, %v8958_v13  ;;  %6873 = vmatmul.msk.bf16.gmra.mxu3 %vm423_vm0, %v8967_v14 }
  0x42   : >> { %6682 = vmatmul.msk.bf16.gmra.mxu0 %vm423_vm0, %v8941_v15  ;;  %6746 = vmatmul.msk.bf16.gmra.mxu1 %vm423_vm0, %v8950_v16 }
  0x43   : >> { %6810 = vmatmul.msk.bf16.gmra.mxu2 %vm423_vm0, %v8959_v17  ;;  %6874 = vmatmul.msk.bf16.gmra.mxu3 %vm423_vm0, %v8968_v18 }
  0x52   : >> { %6683 = vmatmul.msk.bf16.gmra.mxu0 %vm423_vm0, %v8942_v19  ;;  %6747 = vmatmul.msk.bf16.gmra.mxu1 %vm423_vm0, %v8951_v20 }
  0x53   : >> { %6811 = vmatmul.msk.bf16.gmra.mxu2 %vm423_vm0, %v8960_v21  ;;  %6875 = vmatmul.msk.bf16.gmra.mxu3 %vm423_vm0, %v8969_v22 }
  0x62   : >> { %6684 = vmatmul.msk.bf16.gmra.mxu0 %vm423_vm0, %v8943_v23  ;;  %6748 = vmatmul.msk.bf16.gmra.mxu1 %vm423_vm0, %v8952_v24 }
  0x63   : >> { %6812 = vmatmul.msk.bf16.gmra.mxu2 %vm423_vm0, %v8961_v25  ;;  %6876 = vmatmul.msk.bf16.gmra.mxu3 %vm423_vm0, %v8970_v26 }
  0x72   : >> { %6685 = vmatmul.msk.bf16.gmra.mxu0 %vm423_vm0, %v8944_v27  ;;  %6749 = vmatmul.msk.bf16.gmra.mxu1 %vm423_vm0, %v8953_v28 }
  0x73   : >> { %6813 = vmatmul.msk.bf16.gmra.mxu2 %vm423_vm0, %v8962_v29  ;;  %6877 = vmatmul.msk.bf16.gmra.mxu3 %vm423_vm0, %v8971_v30 }
  0x82   : >> { %6686 = vmatmul.msk.bf16.gmra.mxu0 %vm423_vm0, %v8945_v31  ;;  %6750 = vmatmul.msk.bf16.gmra.mxu1 %vm423_vm0, %v8954_v32 }
  0x83   : >> { %6814 = vmatmul.msk.bf16.gmra.mxu2 %vm423_vm0, %v8963_v33  ;;  %6878 = vmatmul.msk.bf16.gmra.mxu3 %vm423_vm0, %v8972_v34 }
  0x92   : >> { %6687 = vmatmul.msk.bf16.gmra.mxu0 %vm423_vm0, %v8946_v35  ;;  %6751 = vmatmul.msk.bf16.gmra.mxu1 %vm423_vm0, %v8955_v36 }
  0x93   : >> { %6815 = vmatmul.msk.bf16.gmra.mxu2 %vm423_vm0, %v8964_v37  ;;  %6879 = vmatmul.msk.bf16.gmra.mxu3 %vm423_vm0, %v8973_v38 }
  0x9f   : >> { %v460_v41 = vpop.f32.mrf.mxu0  ;;  %v607_v42 = vpop.f32.mrf.mxu1 }
  0xa0   : >> { %v652_v45 = vmax.f32 %v460_v41, %v607_v42 }
  0xa2   : >> { %6688 = vmatmul.msk.bf16.gmra.mxu0 %vm423_vm0, %v8947_v39  ;;  %6752 = vmatmul.msk.bf16.gmra.mxu1 %vm423_vm0, %v8956_v40 }
  0xa3   : >> { %6816 = vmatmul.msk.bf16.gmra.mxu2 %vm423_vm0, %v8965_v43  ;;  %6880 = vmatmul.msk.bf16.gmra.mxu3 %vm423_vm0, %v8974_v44 }
  0xa6   : >> { %v772_v46 = vpop.f32.mrf.mxu2  ;;  %v937_v47 = vpop.f32.mrf.mxu3 }
  0xa7   : >> { %v817_v48 = vmax.f32 %v652_v45, %v772_v46  ;;  %v462_v50 = vpop.f32.mrf.mxu0  ;;  %v609_v51 = vpop.f32.mrf.mxu1 }
  0xa8   : >> { %v653_v55 = vmax.f32 %v462_v50, %v609_v51 }
  0xa9   : >> { %v982_v52 = vmax.f32 %v817_v48, %v937_v47 }
  0xab   : >> { %v1003_v53 = vadd.f32 %v10777_v49, %v982_v52 }
  0xad   : >> { %v1021_v54 = vmax.f32 %v1003_v53, 0.0 }
  0xae   : >> { %v774_v56 = vpop.f32.mrf.mxu2  ;;  %v939_v57 = vpop.f32.mrf.mxu3 }
  0xaf   : >> { %1040 = vst [vmem:[%s10782_s22] sm:$0xff] %v1021_v54  ;;  %v818_v58 = vmax.f32 %v653_v55, %v774_v56  ;;  %v465_v59 = vpop.f32.mrf.mxu0  ;;  %v612_v60 = vpop.f32.mrf.mxu1 }
  0xb0   : >> { %v654_v63 = vmax.f32 %v465_v59, %v612_v60 }
  0xb1   : >> { %v983_v61 = vmax.f32 %v818_v58, %v939_v57 }
  0xb3   : >> { %v1004_v62 = vadd.f32 %v10777_v49, %v983_v61 }
  0xb5   : >> { %v1022_v5 = vmax.f32 %v1004_v62, 0.0 }
  0xb6   : >> { %v777_v6 = vpop.f32.mrf.mxu2  ;;  %v942_v7 = vpop.f32.mrf.mxu3 }
  0xb7   : >> { %1041 = vst [vmem:[%s10782_s22 + $0x8] sm:$0xff] %v1022_v5  ;;  %v819_v8 = vmax.f32 %v654_v63, %v777_v6  ;;  %v467_v9 = vpop.f32.mrf.mxu0  ;;  %v614_v10 = vpop.f32.mrf.mxu1 }
  0xb8   : >> { %v655_v14 = vmax.f32 %v467_v9, %v614_v10 }
  0xb9   : >> { %v984_v11 = vmax.f32 %v819_v8, %v942_v7 }
  0xbb   : >> { %v1005_v12 = vadd.f32 %v10777_v49, %v984_v11 }
  0xbd   : >> { %v1023_v13 = vmax.f32 %v1005_v12, 0.0 }
  0xbe   : >> { %v779_v15 = vpop.f32.mrf.mxu2  ;;  %v944_v16 = vpop.f32.mrf.mxu3 }
  0xbf   : >> { %1042 = vst [vmem:[%s10782_s22 + $0x10] sm:$0xff] %v1023_v13  ;;  %v820_v17 = vmax.f32 %v655_v14, %v779_v15  ;;  %v470_v18 = vpop.f32.mrf.mxu0  ;;  %v617_v19 = vpop.f32.mrf.mxu1 }
  0xc0   : >> { %v656_v22 = vmax.f32 %v470_v18, %v617_v19 }
  0xc1   : >> { %v985_v20 = vmax.f32 %v820_v17, %v944_v16 }
  0xc3   : >> { %v1006_v21 = vadd.f32 %v10777_v49, %v985_v20 }
  0xc5   : >> { %v1024_v23 = vmax.f32 %v1006_v21, 0.0 }
  0xc6   : >> { %v782_v24 = vpop.f32.mrf.mxu2  ;;  %v947_v25 = vpop.f32.mrf.mxu3 }
  0xc7   : >> { %1043 = vst [vmem:[%s10782_s22 + $0x18] sm:$0xff] %v1024_v23  ;;  %v821_v26 = vmax.f32 %v656_v22, %v782_v24  ;;  %v472_v27 = vpop.f32.mrf.mxu0  ;;  %v619_v28 = vpop.f32.mrf.mxu1 }
  0xc8   : >> { %v657_v32 = vmax.f32 %v472_v27, %v619_v28 }
  0xc9   : >> { %v986_v29 = vmax.f32 %v821_v26, %v947_v25 }
  0xcb   : >> { %v1007_v30 = vadd.f32 %v10777_v49, %v986_v29 }
  0xcd   : >> { %v1025_v31 = vmax.f32 %v1007_v30, 0.0 }
  0xce   : >> { %v784_v33 = vpop.f32.mrf.mxu2  ;;  %v949_v34 = vpop.f32.mrf.mxu3 }
  0xcf   : >> { %1044 = vst [vmem:[%s10782_s22 + $0x20] sm:$0xff] %v1025_v31  ;;  %v822_v35 = vmax.f32 %v657_v32, %v784_v33  ;;  %v475_v36 = vpop.f32.mrf.mxu0  ;;  %v622_v37 = vpop.f32.mrf.mxu1 }
  0xd0   : >> { %v658_v40 = vmax.f32 %v475_v36, %v622_v37 }
  0xd1   : >> { %v987_v38 = vmax.f32 %v822_v35, %v949_v34 }
  0xd3   : >> { %v1008_v39 = vadd.f32 %v10777_v49, %v987_v38 }
  0xd5   : >> { %v1026_v41 = vmax.f32 %v1008_v39, 0.0 }
  0xd6   : >> { %v787_v42 = vpop.f32.mrf.mxu2  ;;  %v952_v43 = vpop.f32.mrf.mxu3 }
  0xd7   : >> { %1045 = vst [vmem:[%s10782_s22 + $0x28] sm:$0xff] %v1026_v41  ;;  %v823_v44 = vmax.f32 %v658_v40, %v787_v42  ;;  %v477_v45 = vpop.f32.mrf.mxu0  ;;  %v624_v46 = vpop.f32.mrf.mxu1 }
  0xd8   : >> { %v659_v51 = vmax.f32 %v477_v45, %v624_v46 }
  0xd9   : >> { %v988_v47 = vmax.f32 %v823_v44, %v952_v43 }
  0xdb   : >> { %v1009_v48 = vadd.f32 %v10777_v49, %v988_v47 }
  0xdd   : >> { %v1027_v50 = vmax.f32 %v1009_v48, 0.0 }
  0xde   : >> { %v789_v52 = vpop.f32.mrf.mxu2  ;;  %v954_v53 = vpop.f32.mrf.mxu3 }
  0xdf   : >> { %1046 = vst [vmem:[%s10782_s22 + $0x30] sm:$0xff] %v1027_v50  ;;  %v824_v54 = vmax.f32 %v659_v51, %v789_v52  ;;  %v480_v55 = vpop.f32.mrf.mxu0  ;;  %v627_v56 = vpop.f32.mrf.mxu1 }
  0xe0   : >> { %v660_v59 = vmax.f32 %v480_v55, %v627_v56 }
  0xe1   : >> { %v989_v57 = vmax.f32 %v824_v54, %v954_v53 }
  0xe3   : >> { %v1010_v58 = vadd.f32 %v10777_v49, %v989_v57 }
  0xe5   : >> { %v1028_v60 = vmax.f32 %v1010_v58, 0.0 }
  0xe6   : >> { %v792_v61 = vpop.f32.mrf.mxu2  ;;  %v957_v62 = vpop.f32.mrf.mxu3 }
  0xe7   : >> { %1047 = vst [vmem:[%s10782_s22 + $0x38] sm:$0xff] %v1028_v60  ;;  %v825_v63 = vmax.f32 %v660_v59, %v792_v61  ;;  %v482_v5 = vpop.f32.mrf.mxu0  ;;  %v629_v6 = vpop.f32.mrf.mxu1 }
  0xe8   : >> { %v661_v10 = vmax.f32 %v482_v5, %v629_v6 }
  0xe9   : >> { %v990_v7 = vmax.f32 %v825_v63, %v957_v62 }
  0xeb   : >> { %v1011_v8 = vadd.f32 %v10777_v49, %v990_v7 }
  0xed   : >> { %v1029_v9 = vmax.f32 %v1011_v8, 0.0 }
  0xee   : >> { %v794_v11 = vpop.f32.mrf.mxu2  ;;  %v959_v12 = vpop.f32.mrf.mxu3 }
  0xef   : >> { %1048 = vst [vmem:[%s10782_s22 + $0x40] sm:$0xff] %v1029_v9  ;;  %v826_v13 = vmax.f32 %v661_v10, %v794_v11  ;;  %v485_v14 = vpop.f32.mrf.mxu0  ;;  %v632_v15 = vpop.f32.mrf.mxu1 }
  0xf0   : >> { %v662_v18 = vmax.f32 %v485_v14, %v632_v15 }
  0xf1   : >> { %v991_v16 = vmax.f32 %v826_v13, %v959_v12 }
  0xf3   : >> { %v1012_v17 = vadd.f32 %v10777_v49, %v991_v16 }
  0xf5   : >> { %v1030_v19 = vmax.f32 %v1012_v17, 0.0 }
  0xf6   : >> { %v797_v20 = vpop.f32.mrf.mxu2  ;;  %v962_v21 = vpop.f32.mrf.mxu3 }
  0xf7   : >> { %1049 = vst [vmem:[%s10782_s22 + $0x48] sm:$0xff] %v1030_v19  ;;  %v827_v22 = vmax.f32 %v662_v18, %v797_v20  ;;  %v487_v23 = vpop.f32.mrf.mxu0  ;;  %v634_v24 = vpop.f32.mrf.mxu1 }
  0xf8   : >> { %v663_v28 = vmax.f32 %v487_v23, %v634_v24 }
  0xf9   : >> { %v992_v25 = vmax.f32 %v827_v22, %v962_v21 }
  0xfb   : >> { %v1013_v26 = vadd.f32 %v10777_v49, %v992_v25 }
  0xfd   : >> { %v1031_v27 = vmax.f32 %v1013_v26, 0.0 }
  0xfe   : >> { %v799_v29 = vpop.f32.mrf.mxu2  ;;  %v964_v30 = vpop.f32.mrf.mxu3 }
  0xff   : >> { %1050 = vst [vmem:[%s10782_s22 + $0x50] sm:$0xff] %v1031_v27  ;;  %v828_v31 = vmax.f32 %v663_v28, %v799_v29  ;;  %v490_v32 = vpop.f32.mrf.mxu0  ;;  %v637_v33 = vpop.f32.mrf.mxu1 }
 0x100   : >> { %v664_v36 = vmax.f32 %v490_v32, %v637_v33  ;;  %v10827_v32 = vmov (%p339_p11), 0.0   ;;  %v10829_v33 = vmov (%p339_p11), 0.0  }
 0x101   : >> { %v993_v34 = vmax.f32 %v828_v31, %v964_v30  ;;  %v10825_v31 = vld [vmem:[%s12938_s4] sm:$0x1] (%p339_p11) }
 0x103   : >> { %v1014_v35 = vadd.f32 %v10777_v49, %v993_v34  ;;  %v10831_v34 = vmov (%p339_p11), 0.0  }
 0x105   : >> { %v1032_v37 = vmax.f32 %v1014_v35, 0.0  ;;  %v10835_v35 = vmov (%p339_p11), 0.0  }
 0x106   : >> { %v802_v38 = vpop.f32.mrf.mxu2  ;;  %v967_v39 = vpop.f32.mrf.mxu3 }
 0x107   : >> { %1051 = vst [vmem:[%s10782_s22 + $0x58] sm:$0xff] %v1032_v37  ;;  %v829_v40 = vmax.f32 %v664_v36, %v802_v38  ;;  %v492_v41 = vpop.f32.mrf.mxu0  ;;  %v639_v42 = vpop.f32.mrf.mxu1  ;;  %v10837_v36 = vmov (%p339_p11), 0.0   ;;  %v10839_v37 = vmov (%p339_p11), 0.0   ;;  %v10841_v38 = vmov (%p339_p11), 0.0  }
 0x108   : >> { %v665_v46 = vmax.f32 %v492_v41, %v639_v42  ;;  %v10857_v41 = vmov (%p339_p11), 0.0  }
 0x109   : >> { %v994_v43 = vmax.f32 %v829_v40, %v967_v39  ;;  %v10853_v39 = vmov (%p339_p11), 0.0   ;;  %v10855_v40 = vmov (%p339_p11), 0.0  }
 0x10b   : >> { %v1015_v44 = vadd.f32 %v10777_v49, %v994_v43 }
 0x10d   : >> { %v1033_v45 = vmax.f32 %v1015_v44, 0.0 }
 0x10e   : >> { %v804_v47 = vpop.f32.mrf.mxu2  ;;  %v969_v48 = vpop.f32.mrf.mxu3 }
 0x10f   : >> { %1052 = vst [vmem:[%s10782_s22 + $0x60] sm:$0xff] %v1033_v45  ;;  %v830_v50 = vmax.f32 %v665_v46, %v804_v47  ;;  %v495_v51 = vpop.f32.mrf.mxu0  ;;  %v642_v52 = vpop.f32.mrf.mxu1 }
 0x110   : >> { %v666_v55 = vmax.f32 %v495_v51, %v642_v52 }
 0x111   : >> { %v995_v53 = vmax.f32 %v830_v50, %v969_v48 }
 0x113   : >> { %v1016_v54 = vadd.f32 %v10777_v49, %v995_v53 }
 0x115   : >> { %v1034_v56 = vmax.f32 %v1016_v54, 0.0 }
 0x116   : >> { %v807_v57 = vpop.f32.mrf.mxu2  ;;  %v972_v58 = vpop.f32.mrf.mxu3 }
 0x117   : >> { %1053 = vst [vmem:[%s10782_s22 + $0x68] sm:$0xff] %v1034_v56  ;;  %v831_v59 = vmax.f32 %v666_v55, %v807_v57  ;;  %v497_v60 = vpop.f32.mrf.mxu0  ;;  %v644_v61 = vpop.f32.mrf.mxu1 }
 0x118   : >> { %v667_v6 = vmax.f32 %v497_v60, %v644_v61 }
 0x119   : >> { %v996_v62 = vmax.f32 %v831_v59, %v972_v58 }
 0x11b   : >> { %v1017_v63 = vadd.f32 %v10777_v49, %v996_v62 }
 0x11d   : >> { %v1035_v5 = vmax.f32 %v1017_v63, 0.0 }
 0x11e   : >> { %v809_v7 = vpop.f32.mrf.mxu2  ;;  %v974_v8 = vpop.f32.mrf.mxu3 }
 0x11f   : >> { %1054 = vst [vmem:[%s10782_s22 + $0x70] sm:$0xff] %v1035_v5  ;;  %v832_v9 = vmax.f32 %v667_v6, %v809_v7  ;;  %v500_v10 = vpop.f32.mrf.mxu0  ;;  %v647_v11 = vpop.f32.mrf.mxu1 }
 0x120   : >> { %v668_v14 = vmax.f32 %v500_v10, %v647_v11 }
 0x121   : >> { %v997_v12 = vmax.f32 %v832_v9, %v974_v8 }
 0x123   : >> { %v1018_v13 = vadd.f32 %v10777_v49, %v997_v12 }
 0x125   : >> { %v1036_v15 = vmax.f32 %v1018_v13, 0.0 }
 0x126   : >> { %v812_v16 = vpop.f32.mrf.mxu2  ;;  %v977_v17 = vpop.f32.mrf.mxu3 }
 0x127   : >> { %1055 = vst [vmem:[%s10782_s22 + $0x78] sm:$0xff] %v1036_v15  ;;  %v833_v18 = vmax.f32 %v668_v14, %v812_v16  ;;  %v502_v20 = vpop.f32.mrf.mxu0  ;;  %v649_v21 = vpop.f32.mrf.mxu1 }
 0x128   : >> { %v669_v24 = vmax.f32 %v502_v20, %v649_v21 }
 0x129   : >> { %v998_v19 = vmax.f32 %v833_v18, %v977_v17 }
 0x12b   : >> { %v1019_v22 = vadd.f32 %v10777_v49, %v998_v19 }
 0x12d   : >> { %v1037_v23 = vmax.f32 %v1019_v22, 0.0 }
 0x12e   : >> { %v814_v25 = vpop.f32.mrf.mxu2  ;;  %v979_v27 = vpop.f32.mrf.mxu3 }
 0x12f   : >> { %1056 = vst [vmem:[%s10782_s22 + $0x80] sm:$0xff] %v1037_v23  ;;  %v834_v26 = vmax.f32 %v669_v24, %v814_v25 }
 0x131   : >> { %v999_v28 = vmax.f32 %v834_v26, %v979_v27 }
 0x133   : >> { %v1020_v29 = vadd.f32 %v10777_v49, %v999_v28  ;;  %341 = sbr.rel (!%p339_p11) target bundleno = 25 (0x19), region = 206  ;;  %v10833_v49 = vmov (%p339_p11), 0.0  }
 0x135   : >> { %v1038_v30 = vmax.f32 %v1020_v29, 0.0 }
 0x137   : >> { %1057 = vst [vmem:[%s10782_s22 + $0x88] sm:$0xff] %v1038_v30 }
 0x138 LB: >> { %s8975_s25 = smul.u32 320, %s10347_s21  ;;  %s10347_s21 = sphi %s10859_s21, %s1064_s21   ;;  %v10343_v41 = vphi %v10857_v41, %v12973_v41   ;;  %v10339_v40 = vphi %v10855_v40, %v12972_v40   ;;  %v10335_v39 = vphi %v10853_v39, %v12971_v39   ;;  %v10331_v4 = vphi %v10851_v4, %v12970_v4   ;;  %v10327_v3 = vphi %v10849_v3, %v12969_v3   ;;  %v10323_v2 = vphi %v10847_v2, %v12968_v2   ;;  %v10319_v1 = vphi %v10845_v1, %v12967_v1   ;;  %v10315_v0 = vphi %v10843_v0, %v12966_v0   ;;  %v10311_v38 = vphi %v10841_v38, %v12965_v38   ;;  %v10307_v37 = vphi %v10839_v37, %v12964_v37   ;;  %v10303_v36 = vphi %v10837_v36, %v12963_v36   ;;  %v10299_v35 = vphi %v10835_v35, %v12962_v35   ;;  %v10295_v49 = vphi %v10833_v49, %v12961_v49   ;;  %v10291_v34 = vphi %v10831_v34, %v12960_v34   ;;  %v10287_v33 = vphi %v10829_v33, %v12959_v33   ;;  %v10283_v32 = vphi %v10827_v32, %v12958_v32  }
 0x139   : >> { %s1102_s16 = smul.u32 96, %s10347_s21  ;;  %s1064_s21 = sadd.s32 1, %s10347_s21  }
 0x13a   : >> { %s10916_s14 = scalar_lea.vmem %s12937_s3, %s8975_s25  ;;  %p11150_p12 = scmp.ge.s32.totalorder %s1064_s21, 5  }
 0x13b   : >> { %v8983_v42 = vld [vmem:[%s10916_s14 + $0x38] sm:$0xff]  ;;  %v8982_v43 = vld [vmem:[%s10916_s14 + $0x30] sm:$0xff]  ;;  %v8981_v44 = vld [vmem:[%s10916_s14 + $0x28] sm:$0xff]  ;;  %s10927_s17 = scalar_lea.vmem [#allocation2], %s1102_s16  ;;  %s11371_s29 = smov (%p11150_p12), 0  }
 0x13c   : >> { %1179 = vmatpush.bf16.msra.mxu0 %v8983_v42  ;;  %9275 = vmatpush.bf16.msra.mxu2 %v8983_v42  ;;  %v8980_v45 = vld [vmem:[%s10916_s14 + $0x20] sm:$0xff]  ;;  %v8979_v46 = vld [vmem:[%s10916_s14 + $0x18] sm:$0xff]  ;;  %v8978_v47 = vld [vmem:[%s10916_s14 + $0x10] sm:$0xff] }
 0x13d   : >> { %1216 = vmatpush.bf16.msra.mxu1 %v8983_v42  ;;  %9283 = vmatpush.bf16.msra.mxu3 %v8983_v42  ;;  %v8977_v48 = vld [vmem:[%s10916_s14 + $0x8] sm:$0xff]  ;;  %v8976_v50 = vld [vmem:[%s10916_s14] sm:$0xff]  ;;  %v8991_v59 = vld [vmem:[%s10916_s14 + $0x78] sm:$0xff] }
 0x13e   : >> { %v1106_v51 = vld [vmem:[%s10927_s17] sm:$0xff]  ;;  %v10931_v52 = vld [vmem:[%s10927_s17 + $0x8] sm:$0xff]  ;;  %v8999_v5 = vld [vmem:[%s10916_s14 + $0xb8] sm:$0xff] }
 0x13f   : >> { %v10934_v53 = vld [vmem:[%s10927_s17 + $0x20] sm:$0xff]  ;;  %v10937_v54 = vld [vmem:[%s10927_s17 + $0x28] sm:$0xff]  ;;  %v1114_v60 = vpack.c.bf16 %v10931_v52, %v1106_v51  ;;  %v8990_v6 = vld [vmem:[%s10916_s14 + $0x70] sm:$0xff] }
 0x140   : >> { %1180 = vmatpush.bf16.msra.mxu0 %v8982_v43  ;;  %9276 = vmatpush.bf16.msra.mxu2 %v8982_v43  ;;  %v6884_v55 = vld [vmem:[%s10927_s17 + $0x60] sm:$0xff]  ;;  %v10941_v56 = vld [vmem:[%s10927_s17 + $0x68] sm:$0xff]  ;;  %v10953_v61 = vpack.c.bf16 %v10937_v54, %v10934_v53  ;;  %v8998_v7 = vld [vmem:[%s10916_s14 + $0xb0] sm:$0xff] }
 0x141   : >> { %1217 = vmatpush.bf16.msra.mxu1 %v8982_v43  ;;  %9284 = vmatpush.bf16.msra.mxu3 %v8982_v43  ;;  %v10944_v57 = vld [vmem:[%s10927_s17 + $0x80] sm:$0xff]  ;;  %v10947_v58 = vld [vmem:[%s10927_s17 + $0x88] sm:$0xff]  ;;  %v1127_v62 = vpack.c.bf16 %v10941_v56, %v6884_v55  ;;  %v1108_v12 = vld [vmem:[%s10927_s17 + $0x10] sm:$0xff] }
 0x142   : >> { %v10958_v63 = vpack.c.bf16 %v10947_v58, %v10944_v57  ;;  %v8989_v8 = vld [vmem:[%s10916_s14 + $0x68] sm:$0xff]  ;;  %v8988_v10 = vld [vmem:[%s10916_s14 + $0x60] sm:$0xff]  ;;  %v10971_v13 = vld [vmem:[%s10927_s17 + $0x18] sm:$0xff] }
 0x143   : >> { %v8997_v9 = vld [vmem:[%s10916_s14 + $0xa8] sm:$0xff]  ;;  %v8996_v11 = vld [vmem:[%s10916_s14 + $0xa0] sm:$0xff]  ;;  %v10974_v14 = vld [vmem:[%s10927_s17 + $0x30] sm:$0xff]  ;;  %v1115_v21 = vpack.c.bf16 %v10971_v13, %v1108_v12 }
 0x144   : >> { %1181 = vmatpush.bf16.msra.mxu0 %v8981_v44  ;;  %9277 = vmatpush.bf16.msra.mxu2 %v8981_v44  ;;  %v10977_v15 = vld [vmem:[%s10927_s17 + $0x38] sm:$0xff]  ;;  %v6886_v16 = vld [vmem:[%s10927_s17 + $0x70] sm:$0xff]  ;;  %v8985_v28 = vld [vmem:[%s10916_s14 + $0x48] sm:$0xff] }
 0x145   : >> { %1218 = vmatpush.bf16.msra.mxu1 %v8981_v44  ;;  %9285 = vmatpush.bf16.msra.mxu3 %v8981_v44  ;;  %v10981_v17 = vld [vmem:[%s10927_s17 + $0x78] sm:$0xff]  ;;  %v10984_v18 = vld [vmem:[%s10927_s17 + $0x90] sm:$0xff]  ;;  %v10993_v22 = vpack.c.bf16 %v10977_v15, %v10974_v14  ;;  %v8993_v29 = vld [vmem:[%s10916_s14 + $0x88] sm:$0xff] }
 0x146   : >> { %v10987_v19 = vld [vmem:[%s10927_s17 + $0x98] sm:$0xff]  ;;  %v1128_v23 = vpack.c.bf16 %v10981_v17, %v6886_v16  ;;  %v8986_v26 = vld [vmem:[%s10916_s14 + $0x50] sm:$0xff]  ;;  %v8984_v30 = vld [vmem:[%s10916_s14 + $0x40] sm:$0xff] }
 0x147   : >> { %v8987_v20 = vld [vmem:[%s10916_s14 + $0x58] sm:$0xff]  ;;  %v10998_v24 = vpack.c.bf16 %v10987_v19, %v10984_v18  ;;  %v8994_v27 = vld [vmem:[%s10916_s14 + $0x90] sm:$0xff]  ;;  %v8992_v43 = vld [vmem:[%s10916_s14 + $0x80] sm:$0xff] }
 0x148   : >> { %1182 = vmatpush.bf16.msra.mxu0 %v8980_v45  ;;  %9278 = vmatpush.bf16.msra.mxu2 %v8980_v45  ;;  %v8995_v25 = vld [vmem:[%s10916_s14 + $0x98] sm:$0xff]  ;;  %v9013_v51 = vld [vmem:[%s10916_s14 + $0x128] sm:$0xff]  ;;  %v9012_v55 = vld [vmem:[%s10916_s14 + $0x120] sm:$0xff] }
 0x149   : >> { %1219 = vmatpush.bf16.msra.mxu1 %v8980_v45  ;;  %9286 = vmatpush.bf16.msra.mxu3 %v8980_v45  ;;  %v9007_v42 = vld [vmem:[%s10916_s14 + $0xf8] sm:$0xff]  ;;  %v1286_v45 = vpack.c.bf16 %v1108_v12, %v10931_v52  ;;  %v9004_v52 = vld [vmem:[%s10916_s14 + $0xe0] sm:$0xff] }
 0x14a   : >> { %v9015_v44 = vld [vmem:[%s10916_s14 + $0x138] sm:$0xff]  ;;  %v6958_v12 = vld [vmem:[%s10927_s17 + $0xa0] sm:$0xff] }
 0x14c   : >> { %1183 = vmatpush.bf16.msra.mxu0 %v8979_v46  ;;  %9279 = vmatpush.bf16.msra.mxu2 %v8979_v46 }
 0x14d   : >> { %1220 = vmatpush.bf16.msra.mxu1 %v8979_v46  ;;  %9287 = vmatpush.bf16.msra.mxu3 %v8979_v46  ;;  %v9006_v46 = vld [vmem:[%s10916_s14 + $0xf0] sm:$0xff] }
 0x150   : >> { %1184 = vmatpush.bf16.msra.mxu0 %v8978_v47  ;;  %9280 = vmatpush.bf16.msra.mxu2 %v8978_v47 }
 0x151   : >> { %1221 = vmatpush.bf16.msra.mxu1 %v8978_v47  ;;  %9288 = vmatpush.bf16.msra.mxu3 %v8978_v47  ;;  %v1299_v47 = vpack.c.bf16 %v6886_v16, %v10941_v56  ;;  %v9003_v56 = vld [vmem:[%s10916_s14 + $0xd8] sm:$0xff]  ;;  %v7025_v16 = vld [vmem:[%s10927_s17 + $0xa8] sm:$0xff] }
 0x154   : >> { %1185 = vmatpush.bf16.msra.mxu0 %v8977_v48  ;;  %9281 = vmatpush.bf16.msra.mxu2 %v8977_v48 }
 0x155   : >> { %1222 = vmatpush.bf16.msra.mxu1 %v8977_v48  ;;  %9289 = vmatpush.bf16.msra.mxu3 %v8977_v48  ;;  %v9014_v48 = vld [vmem:[%s10916_s14 + $0x130] sm:$0xff] }
 0x158   : >> { %1186 = vmatpush.bf16.msra.mxu0 %v8976_v50  ;;  %9282 = vmatpush.bf16.msra.mxu2 %v8976_v50 }
 0x159   : >> { %1223 = vmatpush.bf16.msra.mxu1 %v8976_v50  ;;  %9290 = vmatpush.bf16.msra.mxu3 %v8976_v50  ;;  %v9005_v50 = vld [vmem:[%s10916_s14 + $0xe8] sm:$0xff] }
 0x15b   : >> { %1187 = vmatmul.bf16.vlgmr.msra.gmra.mxu0 %v1114_v60  ;;  %1197 = vmatmul.bf16.vlgmr.msra.gmra.mxu2 %v10953_v61  ;;  %v1287_v60 = vpack.c.bf16 %v10934_v53, %v10971_v13  ;;  %v9001_v53 = vld [vmem:[%s10916_s14 + $0xc8] sm:$0xff] }
 0x15c   : >> { %1351 = vmatpush.bf16.msrb.mxu2 %v8991_v59  ;;  %1224 = vmatmul.bf16.vlgmr.msra.gmra.mxu1 %v1127_v62  ;;  %v9002_v62 = vld [vmem:[%s10916_s14 + $0xd0] sm:$0xff]  ;;  %v7016_v13 = vld [vmem:[%s10927_s17 + $0x48] sm:$0xff] }
 0x15d   : >> { %1388 = vmatpush.bf16.msrb.mxu3 %v8991_v59  ;;  %1523 = vmatpush.bf16.msrb.mxu0 %v8999_v5  ;;  %v9011_v59 = vld [vmem:[%s10916_s14 + $0x118] sm:$0xff] }
 0x15e   : >> { %1234 = vmatmul.bf16.vlgmr.msra.gmra.mxu3 %v10958_v63  ;;  %1560 = vmatpush.bf16.msrb.mxu1 %v8999_v5  ;;  %v1300_v5 = vpack.c.bf16 %v10944_v57, %v10981_v17  ;;  %v9008_v57 = vld [vmem:[%s10916_s14 + $0x100] sm:$0xff] }
 0x160   : >> { %1352 = vmatpush.bf16.msrb.mxu2 %v8990_v6 }
 0x161   : >> { %1389 = vmatpush.bf16.msrb.mxu3 %v8990_v6  ;;  %1524 = vmatpush.bf16.msrb.mxu0 %v8998_v7  ;;  %v9010_v6 = vld [vmem:[%s10916_s14 + $0x110] sm:$0xff] }
 0x162   : >> { %1561 = vmatpush.bf16.msrb.mxu1 %v8998_v7  ;;  %v9000_v7 = vld [vmem:[%s10916_s14 + $0xc0] sm:$0xff] }
 0x164   : >> { %1353 = vmatpush.bf16.msrb.mxu2 %v8989_v8 }
 0x165   : >> { %1390 = vmatpush.bf16.msrb.mxu3 %v8989_v8  ;;  %1525 = vmatpush.bf16.msrb.mxu0 %v8997_v9  ;;  %v9009_v8 = vld [vmem:[%s10916_s14 + $0x108] sm:$0xff] }
 0x166   : >> { %1562 = vmatpush.bf16.msrb.mxu1 %v8997_v9  ;;  %v1288_v9 = vpack.c.bf16 %v10974_v14, %v10937_v54  ;;  %v1474_v14 = vpack.c.bf16 %v7025_v16, %v6958_v12 }
 0x168   : >> { %1354 = vmatpush.bf16.msrb.mxu2 %v8988_v10 }
 0x169   : >> { %1391 = vmatpush.bf16.msrb.mxu3 %v8988_v10  ;;  %1526 = vmatpush.bf16.msrb.mxu0 %v8996_v11  ;;  %v1301_v10 = vpack.c.bf16 %v10984_v18, %v10947_v58 }
 0x16a   : >> { %1563 = vmatpush.bf16.msrb.mxu1 %v8996_v11  ;;  %v6949_v11 = vld [vmem:[%s10927_s17 + $0x40] sm:$0xff] }
 0x16b   : >> { %1192 = vmatmul.bf16.gmra.mxu0 %v1115_v21  ;;  %1202 = vmatmul.bf16.gmra.mxu2 %v10993_v22  ;;  %v1289_v17 = vpack.c.bf16 %v6949_v11, %v10977_v15  ;;  %v1461_v54 = vpack.c.bf16 %v7016_v13, %v6949_v11 }
 0x16c   : >> { %1355 = vmatpush.bf16.msrb.mxu2 %v8987_v20  ;;  %1229 = vmatmul.bf16.gmra.mxu1 %v1128_v23 }
 0x16d   : >> { %1392 = vmatpush.bf16.msrb.mxu3 %v8987_v20  ;;  %1527 = vmatpush.bf16.msrb.mxu0 %v8995_v25  ;;  %v1302_v20 = vpack.c.bf16 %v6958_v12, %v10987_v19 }
 0x16e   : >> { %1239 = vmatmul.bf16.gmra.mxu3 %v10998_v24  ;;  %1564 = vmatpush.bf16.msrb.mxu1 %v8995_v25  ;;  %v7150_v25 = vld [vmem:[%s10927_s17 + $0x58] sm:$0xff] }
 0x170   : >> { %1356 = vmatpush.bf16.msrb.mxu2 %v8986_v26 }
 0x171   : >> { %1393 = vmatpush.bf16.msrb.mxu3 %v8986_v26  ;;  %1528 = vmatpush.bf16.msrb.mxu0 %v8994_v27 }
 0x172   : >> { %1565 = vmatpush.bf16.msrb.mxu1 %v8994_v27 }
 0x174   : >> { %1357 = vmatpush.bf16.msrb.mxu2 %v8985_v28 }
 0x175   : >> { %1394 = vmatpush.bf16.msrb.mxu3 %v8985_v28  ;;  %1529 = vmatpush.bf16.msrb.mxu0 %v8993_v29 }
 0x176   : >> { %1566 = vmatpush.bf16.msrb.mxu1 %v8993_v29 }
 0x178   : >> { %1358 = vmatpush.bf16.msrb.mxu2 %v8984_v30 }
 0x179   : >> { %1395 = vmatpush.bf16.msrb.mxu3 %v8984_v30  ;;  %1530 = vmatpush.bf16.msrb.mxu0 %v8992_v43 }
 0x17a   : >> { %1567 = vmatpush.bf16.msrb.mxu1 %v8992_v43 }
 0x17b   : >> { %1359 = vmatmul.bf16.vlgmr.msrb.gmra.mxu2 %v1286_v45 }
 0x17c   : >> { %1695 = vmatpush.bf16.msra.mxu2 %v9007_v42  ;;  %1531 = vmatmul.bf16.vlgmr.msrb.gmra.mxu0 %v1115_v21  ;;  %v7083_v21 = vld [vmem:[%s10927_s17 + $0x50] sm:$0xff] }
 0x17d   : >> { %1732 = vmatpush.bf16.msra.mxu3 %v9007_v42  ;;  %1867 = vmatpush.bf16.msra.mxu0 %v9015_v44  ;;  %v1805_v30 = vpack.c.bf16 %v7150_v25, %v7083_v21 }
 0x17e   : >> { %1904 = vmatpush.bf16.msra.mxu1 %v9015_v44  ;;  %1396 = vmatmul.bf16.vlgmr.msrb.gmra.mxu3 %v1299_v47 }
 0x17f   : >> { %1568 = vmatmul.bf16.vlgmr.msrb.gmra.mxu1 %v1128_v23  ;;  %v7092_v23 = vld [vmem:[%s10927_s17 + $0xb0] sm:$0xff] }
 0x180   : >> { %1696 = vmatpush.bf16.msra.mxu2 %v9006_v46  ;;  %v1646_v29 = vpack.c.bf16 %v7092_v23, %v7025_v16 }
 0x181   : >> { %1733 = vmatpush.bf16.msra.mxu3 %v9006_v46  ;;  %1868 = vmatpush.bf16.msra.mxu0 %v9014_v48 }
 0x182   : >> { %1905 = vmatpush.bf16.msra.mxu1 %v9014_v48 }
 0x184   : >> { %1697 = vmatpush.bf16.msra.mxu2 %v9005_v50 }
 0x185   : >> { %1734 = vmatpush.bf16.msra.mxu3 %v9005_v50  ;;  %1869 = vmatpush.bf16.msra.mxu0 %v9013_v51 }
 0x186   : >> { %1906 = vmatpush.bf16.msra.mxu1 %v9013_v51 }
 0x188   : >> { %1698 = vmatpush.bf16.msra.mxu2 %v9004_v52 }
 0x189   : >> { %1735 = vmatpush.bf16.msra.mxu3 %v9004_v52  ;;  %1870 = vmatpush.bf16.msra.mxu0 %v9012_v55 }
 0x18a   : >> { %1907 = vmatpush.bf16.msra.mxu1 %v9012_v55 }
 0x18b   : >> { %1364 = vmatmul.bf16.gmra.mxu2 %v1287_v60 }
 0x18c   : >> { %1699 = vmatpush.bf16.msra.mxu2 %v9003_v56  ;;  %1536 = vmatmul.bf16.gmra.mxu0 %v10953_v61 }
 0x18d   : >> { %1736 = vmatpush.bf16.msra.mxu3 %v9003_v56  ;;  %1871 = vmatpush.bf16.msra.mxu0 %v9011_v59 }
 0x18e   : >> { %1908 = vmatpush.bf16.msra.mxu1 %v9011_v59  ;;  %1401 = vmatmul.bf16.gmra.mxu3 %v1300_v5 }
 0x18f   : >> { %1573 = vmatmul.bf16.gmra.mxu1 %v10958_v63 }
 0x190   : >> { %1700 = vmatpush.bf16.msra.mxu2 %v9002_v62 }
 0x191   : >> { %1737 = vmatpush.bf16.msra.mxu3 %v9002_v62  ;;  %1872 = vmatpush.bf16.msra.mxu0 %v9010_v6 }
 0x192   : >> { %1909 = vmatpush.bf16.msra.mxu1 %v9010_v6 }
 0x194   : >> { %1701 = vmatpush.bf16.msra.mxu2 %v9001_v53 }
 0x195   : >> { %1738 = vmatpush.bf16.msra.mxu3 %v9001_v53  ;;  %1873 = vmatpush.bf16.msra.mxu0 %v9009_v8 }
 0x196   : >> { %1910 = vmatpush.bf16.msra.mxu1 %v9009_v8 }
 0x198   : >> { %1702 = vmatpush.bf16.msra.mxu2 %v9000_v7 }
 0x199   : >> { %1739 = vmatpush.bf16.msra.mxu3 %v9000_v7  ;;  %1874 = vmatpush.bf16.msra.mxu0 %v9008_v57 }
 0x19a   : >> { %1911 = vmatpush.bf16.msra.mxu1 %v9008_v57 }
 0x19b   : >> { %1369 = vmatmul.bf16.gmra.mxu2 %v1288_v9 }
 0x19c   : >> { %1541 = vmatmul.bf16.gmra.mxu0 %v10993_v22 }
 0x19e   : >> { %1406 = vmatmul.bf16.gmra.mxu3 %v1301_v10 }
 0x19f   : >> { %1578 = vmatmul.bf16.gmra.mxu1 %v10998_v24 }
 0x1ab   : >> { %1374 = vmatmul.bf16.gmra.mxu2 %v1289_v17 }
 0x1ac   : >> { %1546 = vmatmul.bf16.gmra.mxu0 %v1461_v54 }
 0x1ae   : >> { %1411 = vmatmul.bf16.gmra.mxu3 %v1302_v20 }
 0x1af   : >> { %1583 = vmatmul.bf16.gmra.mxu1 %v1474_v14 }
 0x1bb   : >> { %1703 = vmatmul.bf16.vlgmr.msra.gmra.mxu2 %v1287_v60 }
 0x1bc   : >> { %1875 = vmatmul.bf16.vlgmr.msra.gmra.mxu0 %v10953_v61 }
 0x1be   : >> { %1740 = vmatmul.bf16.vlgmr.msra.gmra.mxu3 %v1300_v5 }
 0x1bf   : >> { %1912 = vmatmul.bf16.vlgmr.msra.gmra.mxu1 %v10958_v63 }
 0x1cb   : >> { %1708 = vmatmul.bf16.gmra.mxu2 %v1288_v9 }
 0x1cc   : >> { %1880 = vmatmul.bf16.gmra.mxu0 %v10993_v22  ;;  %v7159_v22 = vld [vmem:[%s10927_s17 + $0xb8] sm:$0xff] }
 0x1cd   : >> { %v1818_v43 = vpack.c.bf16 %v7159_v22, %v7092_v23 }
 0x1ce   : >> { %1745 = vmatmul.bf16.gmra.mxu3 %v1301_v10 }
 0x1cf   : >> { %1917 = vmatmul.bf16.gmra.mxu1 %v10998_v24  ;;  %v1633_v24 = vpack.c.bf16 %v7083_v21, %v7016_v13 }
 0x1d8   : >> { %v1188_v58 = vpop.f32.mrf.mxu0 }
 0x1d9   : >> { %v1225_v15 = vpop.f32.mrf.mxu1  ;;  %v1208_v55 = vadd.f32 %v10343_v41, %v1188_v58 }
 0x1da   : >> { %v1245_v56 = vadd.f32 %v10311_v38, %v1225_v15 }
 0x1db   : >> { %1713 = vmatmul.bf16.gmra.mxu2 %v1289_v17 }
 0x1dc   : >> { %1885 = vmatmul.bf16.gmra.mxu0 %v1461_v54 }
 0x1de   : >> { %1750 = vmatmul.bf16.gmra.mxu3 %v1302_v20  ;;  %v11049_v18 = vpop.f32.mrf.mxu2 }
 0x1df   : >> { %1922 = vmatmul.bf16.gmra.mxu1 %v1474_v14 }
 0x1e0   : >> { %v1190_v63 = vpop.f32.mrf.mxu0 }
 0x1e1   : >> { %v11051_v61 = vpop.f32.mrf.mxu3  ;;  %v1227_v19 = vpop.f32.mrf.mxu1  ;;  %v1209_v57 = vadd.f32 %v10339_v40, %v1190_v63 }
 0x1e2   : >> { %v1246_v9 = vadd.f32 %v10307_v37, %v1227_v19 }
 0x1e6   : >> { %v11056_v26 = vpop.f32.mrf.mxu2 }
 0x1e8   : >> { %v1193_v28 = vpop.f32.mrf.mxu0 }
 0x1e9   : >> { %v11059_v27 = vpop.f32.mrf.mxu3  ;;  %v1230_v42 = vpop.f32.mrf.mxu1  ;;  %v1210_v20 = vadd.f32 %v10335_v39, %v1193_v28 }
 0x1ea   : >> { %v1247_v54 = vadd.f32 %v10303_v36, %v1230_v42 }
 0x1eb   : >> { %1718 = vmatmul.bf16.gmra.mxu2 %v1633_v24 }
 0x1ec   : >> { %1890 = vmatmul.bf16.gmra.mxu0 %v1805_v30 }
 0x1ee   : >> { %1755 = vmatmul.bf16.gmra.mxu3 %v1646_v29  ;;  %v11061_v44 = vpop.f32.mrf.mxu2 }
 0x1ef   : >> { %1927 = vmatmul.bf16.gmra.mxu1 %v1818_v43  ;;  %v1212_v43 = vadd.f32 %v10327_v3, %v11049_v18 }
 0x1f0   : >> { %v1195_v46 = vpop.f32.mrf.mxu0 }
 0x1f1   : >> { %v11063_v45 = vpop.f32.mrf.mxu3  ;;  %v1232_v47 = vpop.f32.mrf.mxu1  ;;  %v1211_v23 = vadd.f32 %v10331_v4, %v1195_v46 }
 0x1f2   : >> { %v1248_v25 = vadd.f32 %v10299_v35, %v1232_v47 }
 0x1f6   : >> { %v11065_v48 = vpop.f32.mrf.mxu2 }
 0x1f9   : >> { %v11067_v50 = vpop.f32.mrf.mxu3  ;;  %v1532_v51 = vpop.f32.mrf.mxu0 }
 0x1fc   : >> { %v1569_v52 = vpop.f32.mrf.mxu1 }
 0x1fe   : >> { %v1360_v59 = vpop.f32.mrf.mxu2 }
 0x1ff   : >> { %v1380_v60 = vadd.f32 %v1360_v59, %v1208_v55 }
 0x201   : >> { %v1397_v62 = vpop.f32.mrf.mxu3  ;;  %v1534_v53 = vpop.f32.mrf.mxu0  ;;  %v11071_v6 = vadd.f32 %v1532_v51, %v1380_v60  ;;  %v1249_v51 = vadd.f32 %v10295_v49, %v11051_v61  ;;  %v1213_v60 = vadd.f32 %v10323_v2, %v11056_v26 }
 0x202   : >> { %v1417_v5 = vadd.f32 %v1397_v62, %v1245_v56  ;;  %v1250_v62 = vadd.f32 %v10291_v34, %v11059_v27 }
 0x204   : >> { %v1571_v7 = vpop.f32.mrf.mxu1  ;;  %v11073_v8 = vadd.f32 %v1569_v52, %v1417_v5 }
 0x206   : >> { %v1362_v10 = vpop.f32.mrf.mxu2 }
 0x207   : >> { %v1381_v11 = vadd.f32 %v1362_v10, %v1209_v57  ;;  %v1251_v10 = vadd.f32 %v10287_v33, %v11063_v45 }
 0x209   : >> { %v1399_v12 = vpop.f32.mrf.mxu3  ;;  %v1537_v13 = vpop.f32.mrf.mxu0  ;;  %v11077_v38 = vadd.f32 %v1534_v53, %v1381_v11 }
 0x20a   : >> { %v1418_v41 = vadd.f32 %v1399_v12, %v1246_v9  ;;  %v1214_v9 = vadd.f32 %v10319_v1, %v11061_v44 }
 0x20c   : >> { %v1574_v16 = vpop.f32.mrf.mxu1  ;;  %v11079_v17 = vadd.f32 %v1571_v7, %v1418_v41 }
 0x20e   : >> { %v1365_v14 = vpop.f32.mrf.mxu2 }
 0x20f   : >> { %v1382_v58 = vadd.f32 %v1365_v14, %v1210_v20 }
 0x211   : >> { %v1402_v15 = vpop.f32.mrf.mxu3  ;;  %v1539_v63 = vpop.f32.mrf.mxu0  ;;  %v11083_v37 = vadd.f32 %v1537_v13, %v1382_v58 }
 0x212   : >> { %v1419_v40 = vadd.f32 %v1402_v15, %v1247_v54 }
 0x214   : >> { %v1576_v19 = vpop.f32.mrf.mxu1  ;;  %v11085_v21 = vadd.f32 %v1574_v16, %v1419_v40 }
 0x216   : >> { %v1367_v22 = vpop.f32.mrf.mxu2 }
 0x217   : >> { %v1383_v24 = vadd.f32 %v1367_v22, %v1211_v23 }
 0x219   : >> { %v1404_v29 = vpop.f32.mrf.mxu3  ;;  %v1542_v28 = vpop.f32.mrf.mxu0  ;;  %v1555_v36 = vadd.f32 %v1539_v63, %v1383_v24 }
 0x21a   : >> { %v1420_v39 = vadd.f32 %v1404_v29, %v1248_v25 }
 0x21c   : >> { %v1579_v30 = vpop.f32.mrf.mxu1  ;;  %v1592_v42 = vadd.f32 %v1576_v19, %v1420_v39 }
 0x21e   : >> { %v1370_v52 = vpop.f32.mrf.mxu2 }
 0x21f   : >> { %v1384_v55 = vadd.f32 %v1370_v52, %v1212_v43 }
 0x221   : >> { %v1407_v56 = vpop.f32.mrf.mxu3  ;;  %v1544_v46 = vpop.f32.mrf.mxu0  ;;  %v1556_v35 = vadd.f32 %v1542_v28, %v1384_v55 }
 0x222   : >> { %v1421_v4 = vadd.f32 %v1407_v56, %v1249_v51 }
 0x224   : >> { %v1581_v47 = vpop.f32.mrf.mxu1  ;;  %v1593_v59 = vadd.f32 %v1579_v30, %v1421_v4 }
 0x226   : >> { %v1372_v5 = vpop.f32.mrf.mxu2 }
 0x227   : >> { %v1385_v53 = vadd.f32 %v1372_v5, %v1213_v60 }
 0x229   : >> { %v1409_v3 = vpop.f32.mrf.mxu3  ;;  %v1547_v7 = vpop.f32.mrf.mxu0  ;;  %v1557_v49 = vadd.f32 %v1544_v46, %v1385_v53 }
 0x22a   : >> { %v1422_v18 = vadd.f32 %v1409_v3, %v1250_v62 }
 0x22c   : >> { %v1584_v61 = vpop.f32.mrf.mxu1  ;;  %v1594_v57 = vadd.f32 %v1581_v47, %v1422_v18 }
 0x22e   : >> { %v1375_v11 = vpop.f32.mrf.mxu2 }
 0x22f   : >> { %v1386_v12 = vadd.f32 %v1375_v11, %v1214_v9 }
 0x231   : >> { %v1412_v2 = vpop.f32.mrf.mxu3  ;;  %v11101_v41 = vpop.f32.mrf.mxu0  ;;  %v1558_v34 = vadd.f32 %v1547_v7, %v1386_v12 }
 0x232   : >> { %v1423_v26 = vadd.f32 %v1412_v2, %v1251_v10 }
 0x234   : >> { %v11103_v27 = vpop.f32.mrf.mxu1  ;;  %v1595_v13 = vadd.f32 %v1584_v61, %v1423_v26 }
 0x236   : >> { %v1377_v16 = vpop.f32.mrf.mxu2 }
 0x239   : >> { %v1414_v20 = vpop.f32.mrf.mxu3  ;;  %v1876_v54 = vpop.f32.mrf.mxu0 }
 0x23c   : >> { %v1913_v14 = vpop.f32.mrf.mxu1 }
 0x23e   : >> { %v1704_v58 = vpop.f32.mrf.mxu2 }
 0x23f   : >> { %v1724_v1 = vadd.f32 %v1704_v58, %v11071_v6 }
 0x241   : >> { %v1741_v44 = vpop.f32.mrf.mxu3  ;;  %v11107_v45 = vadd.f32 %v1876_v54, %v1724_v1   ;;  %v1878_v15 = vpop.f32.mrf.mxu0 }
 0x242   : >> { %v1761_v33 = vadd.f32 %v1741_v44, %v11073_v8 }
 0x244   : >> { %v11109_v40 = vadd.f32 %v1913_v14, %v1761_v33   ;;  %v1915_v19 = vpop.f32.mrf.mxu1  ;;  %v1252_v33 = vadd.f32 %v10283_v32, %v11067_v50 }
 0x246   : >> { %v12947_v63 = vmov %v11109_v40  ;;  %v1706_v23 = vpop.f32.mrf.mxu2 }
 0x247   : >> { %v1725_v25 = vadd.f32 %v1706_v23, %v11077_v38 }
 0x249   : >> { %v1743_v22 = vpop.f32.mrf.mxu3  ;;  %v11113_v40 = vadd.f32 %v1878_v15, %v1725_v25   ;;  %v1881_v39 = vpop.f32.mrf.mxu0 }
 0x24a   : >> { %v1762_v24 = vadd.f32 %v1743_v22, %v11079_v17 }
 0x24b   : >> { %v12948_v29 = vmov %v11113_v40 }
 0x24c   : >> { %v11115_v28 = vadd.f32 %v1915_v19, %v1762_v24   ;;  %v1918_v6 = vpop.f32.mrf.mxu1 }
 0x24e   : >> { %v1709_v30 = vpop.f32.mrf.mxu2 }
 0x24f   : >> { %v1726_v8 = vadd.f32 %v1709_v30, %v11083_v37  ;;  %v9046_v30 = vld [vmem:[%s12939_s5 + $0xf0] sm:$0xff] (%p11150_p12) }
 0x251   : >> { %v1746_v43 = vpop.f32.mrf.mxu3  ;;  %v11119_v39 = vadd.f32 %v1881_v39, %v1726_v8   ;;  %v1883_v55 = vpop.f32.mrf.mxu0  ;;  %v9029_v8 = vld [vmem:[%s12939_s5 + $0x68] sm:$0xff] (%p11150_p12) }
 0x252   : >> { %v1763_v51 = vadd.f32 %v1746_v43, %v11085_v21  ;;  %v9021_v43 = vld [vmem:[%s12939_s5 + $0x28] sm:$0xff] (%p11150_p12) }
 0x253   : >> { %v12949_v52 = vmov %v11119_v39 }
 0x254   : >> { %v11121_v56 = vadd.f32 %v1918_v6, %v1763_v51   ;;  %v1920_v38 = vpop.f32.mrf.mxu1  ;;  %v12971_v39 = vmov %v12949_v52  ;;  %v11237_v51 = vperm.slane (%p11150_p12), %v10825_v31, 0  ;;  %v9020_v31 = vld [vmem:[%s12939_s5 + $0x20] sm:$0xff] (%p11150_p12) }
 0x255   : > { %v9038_v39 = vld [vmem:[%s12939_s5 + $0xb0] sm:$0xff] (%p11150_p12) }
 0x256   : >> { %v1711_v4 = vpop.f32.mrf.mxu2 }
 0x257   : >> { %v1727_v17 = vadd.f32 %v1711_v4, %v1555_v36 }
 0x259   : >> { %v1748_v46 = vpop.f32.mrf.mxu3  ;;  %v11123_v4 = vadd.f32 %v1883_v55, %v1727_v17   ;;  %v1886_v5 = vpop.f32.mrf.mxu0  ;;  %v9037_v55 = vld [vmem:[%s12939_s5 + $0xa8] sm:$0xff] (%p11150_p12)  ;;  %v1946_v17 = vadd.f32 (%p11150_p12), %v11237_v51, %v12949_v52  ;;  %v1944_v52 = vadd.f32 (%p11150_p12), %v11237_v51, %v11107_v45 }
 0x25a   : >> { %v1764_v47 = vadd.f32 %v1748_v46, %v1592_v42 }
 0x25b   : >> { %v12950_v60 = vmov %v11123_v4 }
 0x25c   : >> { %v11125_v62 = vadd.f32 %v1920_v38, %v1764_v47   ;;  %v1923_v53 = vpop.f32.mrf.mxu1  ;;  %v12965_v38 = vmov %v12947_v63  ;;  %v12970_v4 = vmov %v12950_v60  ;;  %v1947_v46 = vadd.f32 (%p11150_p12), %v11237_v51, %v12950_v60  ;;  %v9036_v47 = vld [vmem:[%s12939_s5 + $0xa0] sm:$0xff] (%p11150_p12) }
 0x25d   : > { %v9045_v38 = vld [vmem:[%s12939_s5 + $0xe8] sm:$0xff] (%p11150_p12)  ;;  %v9028_v4 = vld [vmem:[%s12939_s5 + $0x60] sm:$0xff] (%p11150_p12)  ;;  %v1945_v60 = vadd.f32 (%p11150_p12), %v11237_v51, %v12948_v29 }
 0x25e   : >> { %v1714_v37 = vpop.f32.mrf.mxu2 }
 0x25f   : >> { %v1728_v3 = vadd.f32 %v1714_v37, %v1556_v35  ;;  %v1215_v35 = vadd.f32 %v10315_v0, %v11065_v48  ;;  %v12964_v37 = vmov %v11115_v28 }
 0x260   : > { %v1955_v37 = vadd.f32 (%p11150_p12), %v11237_v51, %v11125_v62 }
 0x261   : >> { %v1751_v18 = vpop.f32.mrf.mxu3  ;;  %v11127_v3 = vadd.f32 %v1886_v5, %v1728_v3   ;;  %v1888_v9 = vpop.f32.mrf.mxu0  ;;  %v1387_v40 = vadd.f32 %v1377_v16, %v1215_v35  ;;  %v12962_v35 = vmov %v11125_v62  ;;  %v9047_v16 = vld [vmem:[%s12939_s5 + $0xf8] sm:$0xff] (%p11150_p12)  ;;  %v9044_v5 = vld [vmem:[%s12939_s5 + $0xe0] sm:$0xff] (%p11150_p12) }
 0x262   : >> { %v1765_v21 = vadd.f32 %v1751_v18, %v1593_v59  ;;  %2279 = vmatpush.bf16.msra.mxu3 (%p11150_p12), %v9047_v16  ;;  %v1953_v18 = vadd.f32 (%p11150_p12), %v11237_v51, %v11115_v28  ;;  %v9019_v28 = vld [vmem:[%s12939_s5 + $0x18] sm:$0xff] (%p11150_p12) }
 0x263   : >> { %v12951_v7 = vmov %v11127_v3 }
 0x264   : >> { %v11129_v61 = vadd.f32 %v1923_v53, %v1765_v21   ;;  %v1925_v10 = vpop.f32.mrf.mxu1  ;;  %v12969_v3 = vmov %v12951_v7  ;;  %v1954_v53 = vadd.f32 (%p11150_p12), %v11237_v51, %v11121_v56  ;;  %v1948_v21 = vadd.f32 (%p11150_p12), %v11237_v51, %v12951_v7 }
 0x265   : > { %v1952_v3 = vadd.f32 (%p11150_p12), %v11237_v51, %v12947_v63  ;;  %v9027_v63 = vld [vmem:[%s12939_s5 + $0x58] sm:$0xff] (%p11150_p12) }
 0x266   : >> { %v1716_v11 = vpop.f32.mrf.mxu2  ;;  %2280 = vmatpush.bf16.msra.mxu3 (%p11150_p12), %v9046_v30  ;;  %v1956_v62 = vadd.f32 (%p11150_p12), %v11237_v51, %v11129_v61 }
 0x267   : >> { %v1729_v36 = vadd.f32 %v1716_v11, %v1557_v49  ;;  %v1424_v49 = vadd.f32 %v1414_v20, %v1252_v33  ;;  %v9022_v20 = vld [vmem:[%s12939_s5 + $0x30] sm:$0xff] (%p11150_p12)  ;;  %v9043_v11 = vld [vmem:[%s12939_s5 + $0xd8] sm:$0xff] (%p11150_p12) }
 0x269   : >> { %v1753_v12 = vpop.f32.mrf.mxu3  ;;  %v11131_v2 = vadd.f32 %v1888_v9, %v1729_v36   ;;  %v1891_v14 = vpop.f32.mrf.mxu0  ;;  %v1596_v25 = vadd.f32 %v11103_v27, %v1424_v49  ;;  %v12961_v49 = vmov %v11129_v61  ;;  %v12963_v36 = vmov %v11121_v56  ;;  %v9023_v27 = vld [vmem:[%s12939_s5 + $0x38] sm:$0xff] (%p11150_p12) }
 0x26a   : >> { %v1766_v42 = vadd.f32 %v1753_v12, %v1594_v57  ;;  %2112 = vmatpush.bf16.msra.mxu1 (%p11150_p12), %v9023_v27  ;;  %2281 = vmatpush.bf16.msra.mxu3 (%p11150_p12), %v9045_v38  ;;  %v1981_v36 = vmax.f32 (%p11150_p12), %v1946_v17, %v1947_v46  ;;  %v1982_v12 = vmax.f32 (%p11150_p12), %v1954_v53, %v1955_v37  ;;  %v9017_v49 = vld [vmem:[%s12939_s5 + $0x8] sm:$0xff] (%p11150_p12)  ;;  %v11343_v53 = vmov (%p11150_p12), 0.0  }
 0x26b   : >> { %v12952_v26 = vmov %v11131_v2  ;;  %v1559_v2 = vadd.f32 %v11101_v41, %v1387_v40  ;;  %v12972_v40 = vmov %v12948_v29  ;;  %v12973_v41 = vmov %v11107_v45 }
 0x26c   : >> { %v11133_v54 = vadd.f32 %v1925_v10, %v1766_v42   ;;  %v1928_v59 = vpop.f32.mrf.mxu1  ;;  %v9031_v41 = vld [vmem:[%s12939_s5 + $0x78] sm:$0xff] (%p11150_p12)  ;;  %v1949_v56 = vadd.f32 (%p11150_p12), %v11237_v51, %v12952_v26  ;;  %v1960_v42 = vmax.f32 (%p11150_p12), %v1944_v52, %v1945_v60  ;;  %v11345_v37 = vmov (%p11150_p12), 0.0  }
 0x26d   : > { %2051 = vmatpush.bf16.msra.mxu0 (%p11150_p12), %v9031_v41  ;;  %v9035_v10 = vld [vmem:[%s12939_s5 + $0x98] sm:$0xff] (%p11150_p12)  ;;  %v9040_v41 = vld [vmem:[%s12939_s5 + $0xc0] sm:$0xff] (%p11150_p12)  ;;  %v11347_v52 = vmov (%p11150_p12), 0.0   ;;  %v11349_v60 = vmov (%p11150_p12), 0.0  }
 0x26e   : >> { %v1719_v58 = vpop.f32.mrf.mxu2  ;;  %2113 = vmatpush.bf16.msra.mxu1 (%p11150_p12), %v9022_v20  ;;  %v1957_v45 = vadd.f32 (%p11150_p12), %v11237_v51, %v11133_v54  ;;  %2282 = vmatpush.bf16.msra.mxu3 (%p11150_p12), %v9044_v5  ;;  %v11341_v5 = vmov (%p11150_p12), 0.0  }
 0x26f   : >> { %v1730_v1 = vadd.f32 %v1719_v58, %v1558_v34  ;;  %v9018_v58 = vld [vmem:[%s12939_s5 + $0x10] sm:$0xff] (%p11150_p12) }
 0x270   : > { %v2126_v35 = vmax.f32 (%p11150_p12), %v1956_v62, %v1957_v45  ;;  %v11359_v62 = vmov (%p11150_p12), 0.0   ;;  %v11361_v45 = vmov (%p11150_p12), 0.0  }
 0x271   : >> { %v1756_v44 = vpop.f32.mrf.mxu3  ;;  %v11139_v1 = vadd.f32 %v1891_v14, %v1730_v1   ;;  %v1893_v48 = vpop.f32.mrf.mxu0  ;;  %v9026_v14 = vld [vmem:[%s12939_s5 + $0x50] sm:$0xff] (%p11150_p12) }
 0x272   : >> { %v1767_v15 = vadd.f32 %v1756_v44, %v1595_v13  ;;  %v9039_v13 = vld [vmem:[%s12939_s5 + $0xb8] sm:$0xff] (%p11150_p12)  ;;  %2114 = vmatpush.bf16.msra.mxu1 (%p11150_p12), %v9021_v43  ;;  %2283 = vmatpush.bf16.msra.mxu3 (%p11150_p12), %v9043_v11  ;;  %v9034_v44 = vld [vmem:[%s12939_s5 + $0x90] sm:$0xff] (%p11150_p12) }
 0x273   : >> { %v12953_v19 = vmov %v11139_v1  ;;  %2195 = vmatpush.bf16.msra.mxu2 (%p11150_p12), %v9039_v13 }
 0x274   : >> { %v11141_v33 = vadd.f32 %v1928_v59, %v1767_v15   ;;  %v1930_v24 = vpop.f32.mrf.mxu1  ;;  %v12967_v1 = vmov %v12953_v19  ;;  %v1950_v29 = vadd.f32 (%p11150_p12), %v11237_v51, %v12953_v19  ;;  %v1983_v15 = vmax.f32 (%p11150_p12), %v1981_v36, %v1982_v12  ;;  %v9025_v19 = vld [vmem:[%s12939_s5 + $0x48] sm:$0xff] (%p11150_p12) }
 0x276   : >> { %v12954_v57 = vmov %v11141_v33  ;;  %v1721_v23 = vpop.f32.mrf.mxu2  ;;  %2115 = vmatpush.bf16.msra.mxu1 (%p11150_p12), %v9020_v31 }
 0x277   : >> { %v1731_v22 = vadd.f32 %v1721_v23, %v1559_v2  ;;  %v12959_v33 = vmov %v12954_v57  ;;  %v12968_v2 = vmov %v12952_v26  ;;  %2196 = vmatpush.bf16.msra.mxu2 (%p11150_p12), %v9038_v39  ;;  %v1958_v61 = vadd.f32 (%p11150_p12), %v11237_v51, %v12954_v57  ;;  %v9033_v23 = vld [vmem:[%s12939_s5 + $0x88] sm:$0xff] (%p11150_p12) }
 0x278   : > { %v1961_v26 = vmax.f32 (%p11150_p12), %v1952_v3, %v1953_v18  ;;  %v9042_v33 = vld [vmem:[%s12939_s5 + $0xd0] sm:$0xff] (%p11150_p12)  ;;  %v11351_v3 = vmov (%p11150_p12), 0.0   ;;  %v11353_v18 = vmov (%p11150_p12), 0.0  }
 0x279   : >> { %v1758_v0 = vpop.f32.mrf.mxu3  ;;  %2284 = vmatpush.bf16.msra.mxu3 (%p11150_p12), %v9042_v33 }
 0x27a   : >> { %v1768_v34 = vadd.f32 %v1758_v0, %v1596_v25  ;;  %v11145_v0 = vadd.f32 %v1893_v48, %v1731_v22   ;;  %2116 = vmatpush.bf16.msra.mxu1 (%p11150_p12), %v9019_v28  ;;  %v1962_v40 = vmax.f32 (%p11150_p12), %v1960_v42, %v1961_v26  ;;  %v9041_v25 = vld [vmem:[%s12939_s5 + $0xc8] sm:$0xff] (%p11150_p12)  ;;  %v1984_v22 = vmax.f32 (%p11150_p12), %v1983_v15, 0.0  ;;  %v9024_v48 = vld [vmem:[%s12939_s5 + $0x40] sm:$0xff] (%p11150_p12) }
 0x27b   : > { %1063 = sbr.rel (!%p11150_p12) target bundleno = 312 (0x138), region = 217  ;;  %2197 = vmatpush.bf16.msra.mxu2 (%p11150_p12), %v9037_v55  ;;  %v11367_v28 = vmov (%p11150_p12), 0.0  }
 0x27c   : >> { %v12955_v6 = vmov %v11145_v0  ;;  %v11147_v32 = vadd.f32 %v1930_v24, %v1768_v34   ;;  %v12960_v34 = vmov %v11133_v54  ;;  %v2125_v54 = vmax.f32 (%p11150_p12), %v1948_v21, %v1949_v56 }
 0x27d   : >> { %v12966_v0 = vmov %v12955_v6  ;;  %v1951_v7 = vadd.f32 (%p11150_p12), %v11237_v51, %v12955_v6  ;;  %v9016_v34 = vld [vmem:[%s12939_s5] sm:$0xff] (%p11150_p12)  ;;  %2285 = vmatpush.bf16.msra.mxu3 (%p11150_p12), %v9041_v25  ;;  %v1985_v27 = vpack.c.bf16 (%p11150_p12), %v1984_v22, %v1984_v22  ;;  %v11355_v21 = vmov (%p11150_p12), 0.0  }
 0x27e   : >> { %v12956_v50 = vmov %v11147_v32  ;;  %2117 = vmatpush.bf16.msra.mxu1 (%p11150_p12), %v9018_v58  ;;  %v2127_v57 = vmax.f32 (%p11150_p12), %v2125_v54, %v2126_v35  ;;  %v1963_v0 = vmax.f32 (%p11150_p12), %v1962_v40, 0.0  ;;  %v11357_v56 = vmov (%p11150_p12), 0.0  }
 0x27f   : >> { %v12958_v32 = vmov %v12956_v50  ;;  %v1959_v9 = vadd.f32 (%p11150_p12), %v11237_v51, %v12956_v50  ;;  %2198 = vmatpush.bf16.msra.mxu2 (%p11150_p12), %v9036_v47  ;;  %v2209_v59 = vmax.f32 (%p11150_p12), %v1950_v29, %v1951_v7  ;;  %v9032_v50 = vld [vmem:[%s12939_s5 + $0x80] sm:$0xff] (%p11150_p12)  ;;  %v11339_v47 = vmov (%p11150_p12), 0.0  }
 0x280   : > { %v9030_v32 = vld [vmem:[%s12939_s5 + $0x70] sm:$0xff]  ;;  %v2128_v24 = vmax.f32 %v2127_v57, 0.0  ;;  %v1964_v13 = vpack.c.bf16 %v1963_v0, %v1963_v0  ;;  %v11363_v29 = vmov 0.0   ;;  %v11369_v7 = vmov 0.0  }
 0x281   : > { %2052 = vmatpush.bf16.msra.mxu0 %v9030_v32  ;;  %v2210_v1 = vmax.f32 %v1958_v61, %v1959_v9  ;;  %2286 = vmatpush.bf16.msra.mxu3 %v9040_v41 }
 0x282   : > { %2118 = vmatpush.bf16.msra.mxu1 %v9017_v49  ;;  %v2129_v16 = vpack.c.bf16 %v2128_v24, %v2128_v24 }
 0x283   : > { %2199 = vmatpush.bf16.msra.mxu2 %v9035_v10  ;;  %v2211_v2 = vmax.f32 %v2209_v59, %v2210_v1 }
 0x285   : > { %2053 = vmatpush.bf16.msra.mxu0 %v9029_v8  ;;  %v2212_v6 = vmax.f32 %v2211_v2, 0.0 }
 0x286   : > { %2119 = vmatpush.bf16.msra.mxu1 %v9016_v34 }
 0x287   : > { %2200 = vmatpush.bf16.msra.mxu2 %v9034_v44  ;;  %v2213_v32 = vpack.c.bf16 %v2212_v6, %v2212_v6 }
 0x289   : > { %2054 = vmatpush.bf16.msra.mxu0 %v9028_v4  ;;  %2120 = vmatmul.bf16.vlgmr.msra.gmra.mxu1 %v1964_v13 }
 0x28a   : > { %2287 = vmatmul.bf16.vlgmr.msra.gmra.mxu3 %v2213_v32 }
 0x28b   : > { %2201 = vmatpush.bf16.msra.mxu2 %v9033_v23 }
 0x28d   : > { %2055 = vmatpush.bf16.msra.mxu0 %v9027_v63  ;;  %v11365_v63 = vmov 0.0  }
 0x28f   : > { %2202 = vmatpush.bf16.msra.mxu2 %v9032_v50 }
 0x291   : > { %2056 = vmatpush.bf16.msra.mxu0 %v9026_v14 }
 0x292   : > { %2203 = vmatmul.bf16.vlgmr.msra.gmra.mxu2 %v2129_v16 }
 0x295   : > { %2057 = vmatpush.bf16.msra.mxu0 %v9025_v19 }
 0x299   : > { %2058 = vmatpush.bf16.msra.mxu0 %v9024_v48 }
 0x29c   : > { %2059 = vmatmul.bf16.vlgmr.msra.gmra.mxu0 %v1985_v27 }
 0x306   : > { %v2121_v39 = vpop.f32.mrf.mxu1 }
 0x30d   : > { %v2288_v43 = vpop.f32.mrf.mxu3 }
 0x30e   : > { %v2123_v4 = vpop.f32.mrf.mxu1 }
 0x315   : > { %v2204_v8 = vpop.f32.mrf.mxu2  ;;  %v2290_v46 = vpop.f32.mrf.mxu3 }
 0x319   : > { %v2060_v20 = vpop.f32.mrf.mxu0 }
 0x31a   : > { %v2122_v30 = vadd.f32 %v2121_v39, %v2060_v20 }
 0x31c   : > { %v2208_v55 = vadd.f32 %v2204_v8, %v2122_v30 }
 0x31d   : > { %v2206_v17 = vpop.f32.mrf.mxu2 }
 0x31e   : > { %v11337_v31 = vadd.f32 %v2288_v43, %v2208_v55 }
 0x321   : > { %v2062_v38 = vpop.f32.mrf.mxu0 }
 0x322 LB: >> { %s9048_s14 = smul.u32 320, %s10415_s29  ;;  %s10415_s29 = sphi %s11371_s29, %s2298_s29   ;;  %v10411_v7 = vphi %v11369_v7, %v13000_v7   ;;  %v10407_v28 = vphi %v11367_v28, %v12999_v28   ;;  %v10403_v63 = vphi %v11365_v63, %v12998_v63   ;;  %v10399_v29 = vphi %v11363_v29, %v12997_v29   ;;  %v10395_v45 = vphi %v11361_v45, %v12996_v45   ;;  %v10391_v62 = vphi %v11359_v62, %v12995_v62   ;;  %v10387_v56 = vphi %v11357_v56, %v12994_v56   ;;  %v10383_v21 = vphi %v11355_v21, %v12993_v21   ;;  %v10379_v18 = vphi %v11353_v18, %v12992_v18   ;;  %v10375_v3 = vphi %v11351_v3, %v12991_v3   ;;  %v10371_v60 = vphi %v11349_v60, %v12990_v60   ;;  %v10367_v52 = vphi %v11347_v52, %v12989_v52   ;;  %v10363_v37 = vphi %v11345_v37, %v12988_v37   ;;  %v10359_v53 = vphi %v11343_v53, %v12987_v53   ;;  %v10355_v5 = vphi %v11341_v5, %v12986_v5   ;;  %v10351_v47 = vphi %v11339_v47, %v12985_v47  }
 0x323   : >> { %s6214_s22 = smul.u32 96, %s10415_s29  ;;  %s2298_s29 = sadd.s32 1, %s10415_s29  }
 0x324   : >> { %s11428_s21 = scalar_lea.vmem %s12937_s3, %s9048_s14  ;;  %p11662_p13 = scmp.ge.s32.totalorder %s2298_s29, 5  }
 0x325   : >> { %v9056_v61 = vld [vmem:[%s11428_s21 + $0x38] sm:$0xff]  ;;  %v9055_v9 = vld [vmem:[%s11428_s21 + $0x30] sm:$0xff]  ;;  %v9054_v10 = vld [vmem:[%s11428_s21 + $0x28] sm:$0xff]  ;;  %s11439_s23 = scalar_lea.vmem [#allocation2], %s6214_s22  ;;  %s11881_s17 = smov (%p11662_p13), 0  }
 0x326   : >> { %2414 = vmatpush.bf16.msra.mxu0 %v9056_v61  ;;  %9291 = vmatpush.bf16.msra.mxu2 %v9056_v61  ;;  %v9053_v11 = vld [vmem:[%s11428_s21 + $0x20] sm:$0xff]  ;;  %v9052_v36 = vld [vmem:[%s11428_s21 + $0x18] sm:$0xff]  ;;  %v9051_v12 = vld [vmem:[%s11428_s21 + $0x10] sm:$0xff] }
 0x327   : >> { %2451 = vmatpush.bf16.msra.mxu1 %v9056_v61  ;;  %9299 = vmatpush.bf16.msra.mxu3 %v9056_v61  ;;  %v9050_v42 = vld [vmem:[%s11428_s21 + $0x8] sm:$0xff]  ;;  %v9049_v26 = vld [vmem:[%s11428_s21] sm:$0xff]  ;;  %v9064_v15 = vld [vmem:[%s11428_s21 + $0x78] sm:$0xff] }
 0x328   : >> { %v7370_v54 = vld [vmem:[%s11439_s23 + $0xc0] sm:$0xff]  ;;  %v11443_v14 = vld [vmem:[%s11439_s23 + $0xc8] sm:$0xff]  ;;  %v9072_v2 = vld [vmem:[%s11428_s21 + $0xb8] sm:$0xff] }
 0x329   : >> { %v11446_v58 = vld [vmem:[%s11439_s23 + $0xe0] sm:$0xff]  ;;  %v11449_v35 = vld [vmem:[%s11439_s23 + $0xe8] sm:$0xff]  ;;  %v2349_v40 = vpack.c.bf16 %v11443_v14, %v7370_v54  ;;  %v9063_v23 = vld [vmem:[%s11428_s21 + $0x70] sm:$0xff] }
 0x32a   : >> { %2415 = vmatpush.bf16.msra.mxu0 %v9055_v9  ;;  %9292 = vmatpush.bf16.msra.mxu2 %v9055_v9  ;;  %v7379_v59 = vld [vmem:[%s11439_s23 + $0x120] sm:$0xff]  ;;  %v11453_v1 = vld [vmem:[%s11439_s23 + $0x128] sm:$0xff]  ;;  %v11465_v19 = vpack.c.bf16 %v11449_v35, %v11446_v58  ;;  %v9071_v25 = vld [vmem:[%s11428_s21 + $0xb0] sm:$0xff] }
 0x32b   : >> { %2452 = vmatpush.bf16.msra.mxu1 %v9055_v9  ;;  %9300 = vmatpush.bf16.msra.mxu3 %v9055_v9  ;;  %v11456_v44 = vld [vmem:[%s11439_s23 + $0x140] sm:$0xff]  ;;  %v11459_v33 = vld [vmem:[%s11439_s23 + $0x148] sm:$0xff]  ;;  %v2362_v49 = vpack.c.bf16 %v11453_v1, %v7379_v59  ;;  %v7372_v24 = vld [vmem:[%s11439_s23 + $0xd0] sm:$0xff] }
 0x32c   : >> { %v11470_v57 = vpack.c.bf16 %v11459_v33, %v11456_v44  ;;  %v9062_v22 = vld [vmem:[%s11428_s21 + $0x68] sm:$0xff]  ;;  %v9061_v48 = vld [vmem:[%s11428_s21 + $0x60] sm:$0xff]  ;;  %v11483_v6 = vld [vmem:[%s11439_s23 + $0xd8] sm:$0xff] }
 0x32d   : >> { %v9070_v0 = vld [vmem:[%s11428_s21 + $0xa8] sm:$0xff]  ;;  %v9069_v34 = vld [vmem:[%s11428_s21 + $0xa0] sm:$0xff]  ;;  %v11486_v50 = vld [vmem:[%s11439_s23 + $0xf0] sm:$0xff]  ;;  %v2350_v39 = vpack.c.bf16 %v11483_v6, %v7372_v24 }
 0x32e   : >> { %2416 = vmatpush.bf16.msra.mxu0 %v9054_v10  ;;  %9293 = vmatpush.bf16.msra.mxu2 %v9054_v10  ;;  %v11489_v41 = vld [vmem:[%s11439_s23 + $0xf8] sm:$0xff]  ;;  %v7381_v27 = vld [vmem:[%s11439_s23 + $0x130] sm:$0xff]  ;;  %v9058_v17 = vld [vmem:[%s11428_s21 + $0x48] sm:$0xff] }
 0x32f   : >> { %2453 = vmatpush.bf16.msra.mxu1 %v9054_v10  ;;  %9301 = vmatpush.bf16.msra.mxu3 %v9054_v10  ;;  %v11493_v13 = vld [vmem:[%s11439_s23 + $0x138] sm:$0xff]  ;;  %v11496_v16 = vld [vmem:[%s11439_s23 + $0x150] sm:$0xff]  ;;  %v11505_v30 = vpack.c.bf16 %v11489_v41, %v11486_v50  ;;  %v9066_v46 = vld [vmem:[%s11428_s21 + $0x88] sm:$0xff] }
 0x330   : >> { %v11499_v32 = vld [vmem:[%s11439_s23 + $0x158] sm:$0xff]  ;;  %v2363_v8 = vpack.c.bf16 %v11493_v13, %v7381_v27  ;;  %v9059_v38 = vld [vmem:[%s11428_s21 + $0x50] sm:$0xff]  ;;  %v9057_v61 = vld [vmem:[%s11428_s21 + $0x40] sm:$0xff] }
 0x331   : >> { %v9060_v20 = vld [vmem:[%s11428_s21 + $0x58] sm:$0xff]  ;;  %v11510_v43 = vpack.c.bf16 %v11499_v32, %v11496_v16  ;;  %v9067_v4 = vld [vmem:[%s11428_s21 + $0x90] sm:$0xff]  ;;  %v9065_v10 = vld [vmem:[%s11428_s21 + $0x80] sm:$0xff] }
 0x332   : >> { %2417 = vmatpush.bf16.msra.mxu0 %v9053_v11  ;;  %9294 = vmatpush.bf16.msra.mxu2 %v9053_v11  ;;  %v9068_v55 = vld [vmem:[%s11428_s21 + $0x98] sm:$0xff]  ;;  %v9078_v54 = vld [vmem:[%s11428_s21 + $0xe8] sm:$0xff]  ;;  %v9077_v59 = vld [vmem:[%s11428_s21 + $0xe0] sm:$0xff] }
 0x333   : >> { %2454 = vmatpush.bf16.msra.mxu1 %v9053_v11  ;;  %9302 = vmatpush.bf16.msra.mxu3 %v9053_v11  ;;  %v9080_v9 = vld [vmem:[%s11428_s21 + $0xf8] sm:$0xff] }
 0x334   : >> { %v9088_v11 = vld [vmem:[%s11428_s21 + $0x138] sm:$0xff] }
 0x336   : >> { %2418 = vmatpush.bf16.msra.mxu0 %v9052_v36  ;;  %9295 = vmatpush.bf16.msra.mxu2 %v9052_v36 }
 0x337   : >> { %2455 = vmatpush.bf16.msra.mxu1 %v9052_v36  ;;  %9303 = vmatpush.bf16.msra.mxu3 %v9052_v36  ;;  %v2521_v36 = vpack.c.bf16 %v7372_v24, %v11443_v14  ;;  %v9086_v14 = vld [vmem:[%s11428_s21 + $0x128] sm:$0xff]  ;;  %v7444_v24 = vld [vmem:[%s11439_s23 + $0x100] sm:$0xff] }
 0x33a   : >> { %2419 = vmatpush.bf16.msra.mxu0 %v9051_v12  ;;  %9296 = vmatpush.bf16.msra.mxu2 %v9051_v12 }
 0x33b   : >> { %2456 = vmatpush.bf16.msra.mxu1 %v9051_v12  ;;  %9304 = vmatpush.bf16.msra.mxu3 %v9051_v12  ;;  %v9079_v12 = vld [vmem:[%s11428_s21 + $0xf0] sm:$0xff] }
 0x33e   : >> { %2420 = vmatpush.bf16.msra.mxu0 %v9050_v42  ;;  %9297 = vmatpush.bf16.msra.mxu2 %v9050_v42 }
 0x33f   : >> { %2457 = vmatpush.bf16.msra.mxu1 %v9050_v42  ;;  %9305 = vmatpush.bf16.msra.mxu3 %v9050_v42  ;;  %v2534_v42 = vpack.c.bf16 %v7381_v27, %v11453_v1  ;;  %v9085_v1 = vld [vmem:[%s11428_s21 + $0x120] sm:$0xff]  ;;  %v7511_v27 = vld [vmem:[%s11439_s23 + $0x108] sm:$0xff] }
 0x342   : >> { %2421 = vmatpush.bf16.msra.mxu0 %v9049_v26  ;;  %9298 = vmatpush.bf16.msra.mxu2 %v9049_v26 }
 0x343   : >> { %2458 = vmatpush.bf16.msra.mxu1 %v9049_v26  ;;  %9306 = vmatpush.bf16.msra.mxu3 %v9049_v26  ;;  %v9087_v26 = vld [vmem:[%s11428_s21 + $0x130] sm:$0xff] }
 0x345   : >> { %2422 = vmatmul.bf16.vlgmr.msra.gmra.mxu0 %v2349_v40  ;;  %2432 = vmatmul.bf16.vlgmr.msra.gmra.mxu2 %v11465_v19  ;;  %v9084_v40 = vld [vmem:[%s11428_s21 + $0x118] sm:$0xff] }
 0x346   : >> { %2586 = vmatpush.bf16.msrb.mxu2 %v9064_v15  ;;  %2459 = vmatmul.bf16.vlgmr.msra.gmra.mxu1 %v2362_v49  ;;  %v2522_v49 = vpack.c.bf16 %v11446_v58, %v11483_v6  ;;  %v9074_v58 = vld [vmem:[%s11428_s21 + $0xc8] sm:$0xff]  ;;  %v7453_v6 = vld [vmem:[%s11439_s23 + $0x160] sm:$0xff] }
 0x347   : >> { %2623 = vmatpush.bf16.msrb.mxu3 %v9064_v15  ;;  %2758 = vmatpush.bf16.msrb.mxu0 %v9072_v2  ;;  %v9076_v15 = vld [vmem:[%s11428_s21 + $0xd8] sm:$0xff] }
 0x348   : >> { %2469 = vmatmul.bf16.vlgmr.msra.gmra.mxu3 %v11470_v57  ;;  %2795 = vmatpush.bf16.msrb.mxu1 %v9072_v2  ;;  %v9075_v2 = vld [vmem:[%s11428_s21 + $0xd0] sm:$0xff] }
 0x34a   : >> { %2587 = vmatpush.bf16.msrb.mxu2 %v9063_v23 }
 0x34b   : >> { %2624 = vmatpush.bf16.msrb.mxu3 %v9063_v23  ;;  %2759 = vmatpush.bf16.msrb.mxu0 %v9071_v25  ;;  %v2535_v23 = vpack.c.bf16 %v11456_v44, %v11493_v13  ;;  %v9081_v44 = vld [vmem:[%s11428_s21 + $0x100] sm:$0xff]  ;;  %v7520_v13 = vld [vmem:[%s11439_s23 + $0x168] sm:$0xff] }
 0x34c   : >> { %2796 = vmatpush.bf16.msrb.mxu1 %v9071_v25  ;;  %v9083_v25 = vld [vmem:[%s11428_s21 + $0x110] sm:$0xff] }
 0x34e   : >> { %2588 = vmatpush.bf16.msrb.mxu2 %v9062_v22 }
 0x34f   : >> { %2625 = vmatpush.bf16.msrb.mxu3 %v9062_v22  ;;  %2760 = vmatpush.bf16.msrb.mxu0 %v9070_v0  ;;  %v9073_v22 = vld [vmem:[%s11428_s21 + $0xc0] sm:$0xff] }
 0x350   : >> { %2797 = vmatpush.bf16.msrb.mxu1 %v9070_v0  ;;  %v9082_v0 = vld [vmem:[%s11428_s21 + $0x108] sm:$0xff] }
 0x352   : >> { %2589 = vmatpush.bf16.msrb.mxu2 %v9061_v48 }
 0x353   : >> { %2626 = vmatpush.bf16.msrb.mxu3 %v9061_v48  ;;  %2761 = vmatpush.bf16.msrb.mxu0 %v9069_v34  ;;  %v2523_v48 = vpack.c.bf16 %v11486_v50, %v11449_v35  ;;  %v2696_v35 = vpack.c.bf16 %v7511_v27, %v7444_v24  ;;  %v2709_v50 = vpack.c.bf16 %v7520_v13, %v7453_v6 }
 0x354   : >> { %2798 = vmatpush.bf16.msrb.mxu1 %v9069_v34  ;;  %v2536_v34 = vpack.c.bf16 %v11496_v16, %v11459_v33 }
 0x355   : >> { %2427 = vmatmul.bf16.gmra.mxu0 %v2350_v39  ;;  %2437 = vmatmul.bf16.gmra.mxu2 %v11505_v30 }
 0x356   : >> { %2590 = vmatpush.bf16.msrb.mxu2 %v9060_v20  ;;  %2464 = vmatmul.bf16.gmra.mxu1 %v2363_v8 }
 0x357   : >> { %2627 = vmatpush.bf16.msrb.mxu3 %v9060_v20  ;;  %2762 = vmatpush.bf16.msrb.mxu0 %v9068_v55  ;;  %v2524_v20 = vpack.c.bf16 %v7444_v24, %v11489_v41 }
 0x358   : >> { %2474 = vmatmul.bf16.gmra.mxu3 %v11510_v43  ;;  %2799 = vmatpush.bf16.msrb.mxu1 %v9068_v55  ;;  %v7587_v55 = vld [vmem:[%s11439_s23 + $0x170] sm:$0xff] }
 0x35a   : >> { %2591 = vmatpush.bf16.msrb.mxu2 %v9059_v38 }
 0x35b   : >> { %2628 = vmatpush.bf16.msrb.mxu3 %v9059_v38  ;;  %2763 = vmatpush.bf16.msrb.mxu0 %v9067_v4  ;;  %v7645_v38 = vld [vmem:[%s11439_s23 + $0x118] sm:$0xff] }
 0x35c   : >> { %2800 = vmatpush.bf16.msrb.mxu1 %v9067_v4 }
 0x35e   : >> { %2592 = vmatpush.bf16.msrb.mxu2 %v9058_v17 }
 0x35f   : >> { %2629 = vmatpush.bf16.msrb.mxu3 %v9058_v17  ;;  %2764 = vmatpush.bf16.msrb.mxu0 %v9066_v46 }
 0x360   : >> { %2801 = vmatpush.bf16.msrb.mxu1 %v9066_v46 }
 0x362   : >> { %2593 = vmatpush.bf16.msrb.mxu2 %v9057_v61 }
 0x363   : >> { %2630 = vmatpush.bf16.msrb.mxu3 %v9057_v61  ;;  %2765 = vmatpush.bf16.msrb.mxu0 %v9065_v10  ;;  %v2881_v61 = vpack.c.bf16 %v7587_v55, %v7520_v13 }
 0x364   : >> { %2802 = vmatpush.bf16.msrb.mxu1 %v9065_v10 }
 0x365   : >> { %2594 = vmatmul.bf16.vlgmr.msrb.gmra.mxu2 %v2521_v36 }
 0x366   : >> { %2930 = vmatpush.bf16.msra.mxu2 %v9080_v9  ;;  %2766 = vmatmul.bf16.vlgmr.msrb.gmra.mxu0 %v2350_v39  ;;  %v2537_v39 = vpack.c.bf16 %v7453_v6, %v11499_v32 }
 0x367   : >> { %2967 = vmatpush.bf16.msra.mxu3 %v9080_v9  ;;  %3102 = vmatpush.bf16.msra.mxu0 %v9088_v11 }
 0x368   : >> { %3139 = vmatpush.bf16.msra.mxu1 %v9088_v11  ;;  %2631 = vmatmul.bf16.vlgmr.msrb.gmra.mxu3 %v2534_v42 }
 0x369   : >> { %2803 = vmatmul.bf16.vlgmr.msrb.gmra.mxu1 %v2363_v8  ;;  %v7578_v8 = vld [vmem:[%s11439_s23 + $0x110] sm:$0xff] }
 0x36a   : >> { %2931 = vmatpush.bf16.msra.mxu2 %v9079_v12  ;;  %v3040_v9 = vpack.c.bf16 %v7645_v38, %v7578_v8 }
 0x36b   : >> { %2968 = vmatpush.bf16.msra.mxu3 %v9079_v12  ;;  %3103 = vmatpush.bf16.msra.mxu0 %v9087_v26 }
 0x36c   : >> { %3140 = vmatpush.bf16.msra.mxu1 %v9087_v26 }
 0x36e   : >> { %2932 = vmatpush.bf16.msra.mxu2 %v9078_v54 }
 0x36f   : >> { %2969 = vmatpush.bf16.msra.mxu3 %v9078_v54  ;;  %3104 = vmatpush.bf16.msra.mxu0 %v9086_v14 }
 0x370   : >> { %3141 = vmatpush.bf16.msra.mxu1 %v9086_v14 }
 0x372   : >> { %2933 = vmatpush.bf16.msra.mxu2 %v9077_v59 }
 0x373   : >> { %2970 = vmatpush.bf16.msra.mxu3 %v9077_v59  ;;  %3105 = vmatpush.bf16.msra.mxu0 %v9085_v1 }
 0x374   : >> { %3142 = vmatpush.bf16.msra.mxu1 %v9085_v1 }
 0x375   : >> { %2599 = vmatmul.bf16.gmra.mxu2 %v2522_v49 }
 0x376   : >> { %2934 = vmatpush.bf16.msra.mxu2 %v9076_v15  ;;  %2771 = vmatmul.bf16.gmra.mxu0 %v11465_v19 }
 0x377   : >> { %2971 = vmatpush.bf16.msra.mxu3 %v9076_v15  ;;  %3106 = vmatpush.bf16.msra.mxu0 %v9084_v40 }
 0x378   : >> { %3143 = vmatpush.bf16.msra.mxu1 %v9084_v40  ;;  %2636 = vmatmul.bf16.gmra.mxu3 %v2535_v23 }
 0x379   : >> { %2808 = vmatmul.bf16.gmra.mxu1 %v11470_v57 }
 0x37a   : >> { %2935 = vmatpush.bf16.msra.mxu2 %v9075_v2 }
 0x37b   : >> { %2972 = vmatpush.bf16.msra.mxu3 %v9075_v2  ;;  %3107 = vmatpush.bf16.msra.mxu0 %v9083_v25 }
 0x37c   : >> { %3144 = vmatpush.bf16.msra.mxu1 %v9083_v25 }
 0x37e   : >> { %2936 = vmatpush.bf16.msra.mxu2 %v9074_v58 }
 0x37f   : >> { %2973 = vmatpush.bf16.msra.mxu3 %v9074_v58  ;;  %3108 = vmatpush.bf16.msra.mxu0 %v9082_v0 }
 0x380   : >> { %3145 = vmatpush.bf16.msra.mxu1 %v9082_v0 }
 0x382   : >> { %2937 = vmatpush.bf16.msra.mxu2 %v9073_v22 }
 0x383   : >> { %2974 = vmatpush.bf16.msra.mxu3 %v9073_v22  ;;  %3109 = vmatpush.bf16.msra.mxu0 %v9081_v44 }
 0x384   : >> { %3146 = vmatpush.bf16.msra.mxu1 %v9081_v44 }
 0x385   : >> { %2604 = vmatmul.bf16.gmra.mxu2 %v2523_v48 }
 0x386   : >> { %2776 = vmatmul.bf16.gmra.mxu0 %v11505_v30 }
 0x388   : >> { %2641 = vmatmul.bf16.gmra.mxu3 %v2536_v34 }
 0x389   : >> { %2813 = vmatmul.bf16.gmra.mxu1 %v11510_v43 }
 0x395   : >> { %2609 = vmatmul.bf16.gmra.mxu2 %v2524_v20 }
 0x396   : >> { %2781 = vmatmul.bf16.gmra.mxu0 %v2696_v35 }
 0x398   : >> { %2646 = vmatmul.bf16.gmra.mxu3 %v2537_v39 }
 0x399   : >> { %2818 = vmatmul.bf16.gmra.mxu1 %v2709_v50 }
 0x3a5   : >> { %2938 = vmatmul.bf16.vlgmr.msra.gmra.mxu2 %v2522_v49 }
 0x3a6   : >> { %3110 = vmatmul.bf16.vlgmr.msra.gmra.mxu0 %v11465_v19 }
 0x3a8   : >> { %2975 = vmatmul.bf16.vlgmr.msra.gmra.mxu3 %v2535_v23 }
 0x3a9   : >> { %3147 = vmatmul.bf16.vlgmr.msra.gmra.mxu1 %v11470_v57 }
 0x3b5   : >> { %2943 = vmatmul.bf16.gmra.mxu2 %v2523_v48 }
 0x3b6   : >> { %3115 = vmatmul.bf16.gmra.mxu0 %v11505_v30  ;;  %v7654_v30 = vld [vmem:[%s11439_s23 + $0x178] sm:$0xff] }
 0x3b7   : >> { %v3053_v11 = vpack.c.bf16 %v7654_v30, %v7587_v55 }
 0x3b8   : >> { %2980 = vmatmul.bf16.gmra.mxu3 %v2536_v34 }
 0x3b9   : >> { %3152 = vmatmul.bf16.gmra.mxu1 %v11510_v43  ;;  %v2868_v43 = vpack.c.bf16 %v7578_v8, %v7511_v27 }
 0x3c2   : >> { %v2423_v33 = vpop.f32.mrf.mxu0 }
 0x3c3   : >> { %v2460_v41 = vpop.f32.mrf.mxu1  ;;  %v2443_v15 = vadd.f32 %v10411_v7, %v2423_v33 }
 0x3c4   : >> { %v2480_v40 = vadd.f32 %v10379_v18, %v2460_v41 }
 0x3c5   : >> { %2948 = vmatmul.bf16.gmra.mxu2 %v2524_v20 }
 0x3c6   : >> { %3120 = vmatmul.bf16.gmra.mxu0 %v2696_v35 }
 0x3c8   : >> { %2985 = vmatmul.bf16.gmra.mxu3 %v2537_v39  ;;  %v11561_v16 = vpop.f32.mrf.mxu2 }
 0x3c9   : >> { %3157 = vmatmul.bf16.gmra.mxu1 %v2709_v50 }
 0x3ca   : >> { %v2425_v57 = vpop.f32.mrf.mxu0 }
 0x3cb   : >> { %v11563_v19 = vpop.f32.mrf.mxu3  ;;  %v2462_v32 = vpop.f32.mrf.mxu1  ;;  %v2444_v48 = vadd.f32 %v10407_v28, %v2425_v57 }
 0x3cc   : >> { %v2481_v34 = vadd.f32 %v10375_v3, %v2462_v32 }
 0x3d0   : >> { %v11568_v4 = vpop.f32.mrf.mxu2 }
 0x3d2   : >> { %v2428_v46 = vpop.f32.mrf.mxu0 }
 0x3d3   : >> { %v11571_v17 = vpop.f32.mrf.mxu3  ;;  %v2465_v10 = vpop.f32.mrf.mxu1  ;;  %v2445_v35 = vadd.f32 %v10403_v63, %v2428_v46 }
 0x3d4   : >> { %v2482_v50 = vadd.f32 %v10371_v60, %v2465_v10 }
 0x3d5   : >> { %2953 = vmatmul.bf16.gmra.mxu2 %v2868_v43 }
 0x3d6   : >> { %3125 = vmatmul.bf16.gmra.mxu0 %v3040_v9 }
 0x3d8   : >> { %2990 = vmatmul.bf16.gmra.mxu3 %v2881_v61  ;;  %v11573_v36 = vpop.f32.mrf.mxu2 }
 0x3d9   : >> { %3162 = vmatmul.bf16.gmra.mxu1 %v3053_v11 }
 0x3da   : >> { %v2430_v42 = vpop.f32.mrf.mxu0 }
 0x3db   : >> { %v11575_v12 = vpop.f32.mrf.mxu3  ;;  %v2467_v26 = vpop.f32.mrf.mxu1  ;;  %v2446_v38 = vadd.f32 %v10399_v29, %v2430_v42 }
 0x3dc   : >> { %v2483_v30 = vadd.f32 %v10367_v52, %v2467_v26 }
 0x3e0   : >> { %v11577_v54 = vpop.f32.mrf.mxu2 }
 0x3e3   : >> { %v11579_v14 = vpop.f32.mrf.mxu3  ;;  %v2767_v59 = vpop.f32.mrf.mxu0 }
 0x3e6   : >> { %v2804_v1 = vpop.f32.mrf.mxu1 }
 0x3e8   : >> { %v2595_v49 = vpop.f32.mrf.mxu2 }
 0x3e9   : >> { %v2615_v2 = vadd.f32 %v2595_v49, %v2443_v15 }
 0x3eb   : >> { %v2632_v23 = vpop.f32.mrf.mxu3  ;;  %v2769_v25 = vpop.f32.mrf.mxu0  ;;  %v11583_v22 = vadd.f32 %v2767_v59, %v2615_v2  ;;  %v2447_v59 = vadd.f32 %v10395_v45, %v11561_v16 }
 0x3ec   : >> { %v2652_v58 = vadd.f32 %v2632_v23, %v2480_v40  ;;  %v2448_v23 = vadd.f32 %v10391_v62, %v11568_v4 }
 0x3ee   : >> { %v2806_v0 = vpop.f32.mrf.mxu1  ;;  %v11585_v44 = vadd.f32 %v2804_v1, %v2652_v58  ;;  %v2484_v1 = vadd.f32 %v10363_v37, %v11563_v19  ;;  %v2485_v58 = vadd.f32 %v10359_v53, %v11571_v17 }
 0x3f0   : >> { %v2597_v24 = vpop.f32.mrf.mxu2 }
 0x3f1   : >> { %v2616_v6 = vadd.f32 %v2597_v24, %v2444_v48  ;;  %v2449_v24 = vadd.f32 %v10387_v56, %v11573_v36 }
 0x3f3   : >> { %v2634_v27 = vpop.f32.mrf.mxu3  ;;  %v2772_v13 = vpop.f32.mrf.mxu0  ;;  %v11589_v18 = vadd.f32 %v2769_v25, %v2616_v6  ;;  %v2486_v6 = vadd.f32 %v10355_v5, %v11575_v12 }
 0x3f4   : >> { %v2653_v7 = vadd.f32 %v2634_v27, %v2481_v34 }
 0x3f6   : >> { %v2809_v20 = vpop.f32.mrf.mxu1  ;;  %v11591_v39 = vadd.f32 %v2806_v0, %v2653_v7 }
 0x3f8   : >> { %v2600_v33 = vpop.f32.mrf.mxu2 }
 0x3f9   : >> { %v2617_v41 = vadd.f32 %v2600_v33, %v2445_v35 }
 0x3fb   : >> { %v2637_v8 = vpop.f32.mrf.mxu3  ;;  %v2774_v57 = vpop.f32.mrf.mxu0  ;;  %v11595_v3 = vadd.f32 %v2772_v13, %v2617_v41 }
 0x3fc   : >> { %v2654_v28 = vadd.f32 %v2637_v8, %v2482_v50 }
 0x3fe   : >> { %v2811_v32 = vpop.f32.mrf.mxu1  ;;  %v11597_v55 = vadd.f32 %v2809_v20, %v2654_v28 }
 0x400   : >> { %v2602_v43 = vpop.f32.mrf.mxu2 }
 0x401   : >> { %v2618_v61 = vadd.f32 %v2602_v43, %v2446_v38 }
 0x403   : >> { %v2639_v9 = vpop.f32.mrf.mxu3  ;;  %v2777_v46 = vpop.f32.mrf.mxu0  ;;  %v2790_v60 = vadd.f32 %v2774_v57, %v2618_v61 }
 0x404   : >> { %v2655_v63 = vadd.f32 %v2639_v9, %v2483_v30 }
 0x406   : >> { %v2814_v10 = vpop.f32.mrf.mxu1  ;;  %v2827_v11 = vadd.f32 %v2811_v32, %v2655_v63 }
 0x408   : >> { %v2605_v15 = vpop.f32.mrf.mxu2 }
 0x409   : >> { %v2619_v40 = vadd.f32 %v2605_v15, %v2447_v59 }
 0x40b   : >> { %v2642_v49 = vpop.f32.mrf.mxu3  ;;  %v2779_v42 = vpop.f32.mrf.mxu0  ;;  %v2791_v52 = vadd.f32 %v2777_v46, %v2619_v40 }
 0x40c   : >> { %v2656_v29 = vadd.f32 %v2642_v49, %v2484_v1 }
 0x40e   : >> { %v2816_v26 = vpop.f32.mrf.mxu1  ;;  %v2828_v2 = vadd.f32 %v2814_v10, %v2656_v29 }
 0x410   : >> { %v2607_v25 = vpop.f32.mrf.mxu2 }
 0x411   : >> { %v2620_v0 = vadd.f32 %v2607_v25, %v2448_v23 }
 0x413   : >> { %v2644_v45 = vpop.f32.mrf.mxu3  ;;  %v2782_v48 = vpop.f32.mrf.mxu0  ;;  %v2792_v37 = vadd.f32 %v2779_v42, %v2620_v0 }
 0x414   : >> { %v2657_v16 = vadd.f32 %v2644_v45, %v2485_v58 }
 0x416   : >> { %v2819_v19 = vpop.f32.mrf.mxu1  ;;  %v2829_v34 = vadd.f32 %v2816_v26, %v2657_v16 }
 0x418   : >> { %v2610_v27 = vpop.f32.mrf.mxu2 }
 0x419   : >> { %v2621_v7 = vadd.f32 %v2610_v27, %v2449_v24 }
 0x41b   : >> { %v2647_v62 = vpop.f32.mrf.mxu3  ;;  %v11613_v13 = vpop.f32.mrf.mxu0  ;;  %v2793_v53 = vadd.f32 %v2782_v48, %v2621_v7 }
 0x41c   : >> { %v2658_v4 = vadd.f32 %v2647_v62, %v2486_v6 }
 0x41e   : >> { %v11615_v17 = vpop.f32.mrf.mxu1  ;;  %v2830_v20 = vadd.f32 %v2819_v19, %v2658_v4 }
 0x420   : >> { %v2612_v35 = vpop.f32.mrf.mxu2 }
 0x423   : >> { %v2649_v50 = vpop.f32.mrf.mxu3  ;;  %v3111_v33 = vpop.f32.mrf.mxu0 }
 0x426   : >> { %v3148_v41 = vpop.f32.mrf.mxu1 }
 0x428   : >> { %v2939_v8 = vpop.f32.mrf.mxu2 }
 0x429   : >> { %v2959_v56 = vadd.f32 %v2939_v8, %v11583_v22 }
 0x42b   : >> { %v2976_v36 = vpop.f32.mrf.mxu3  ;;  %v11619_v7 = vadd.f32 %v3111_v33, %v2959_v56   ;;  %v3113_v28 = vpop.f32.mrf.mxu0 }
 0x42c   : >> { %v2996_v5 = vadd.f32 %v2976_v36, %v11585_v44 }
 0x42d   : >> { %v12974_v12 = vmov %v11619_v7 }
 0x42e   : >> { %v11621_v57 = vadd.f32 %v3148_v41, %v2996_v5   ;;  %v3150_v32 = vpop.f32.mrf.mxu1  ;;  %v2487_v5 = vadd.f32 %v10351_v47, %v11579_v14 }
 0x430   : >> { %v2941_v38 = vpop.f32.mrf.mxu2 }
 0x431   : >> { %v2960_v30 = vadd.f32 %v2941_v38, %v11589_v18 }
 0x433   : >> { %v2978_v43 = vpop.f32.mrf.mxu3  ;;  %v11625_v28 = vadd.f32 %v3113_v28, %v2960_v30   ;;  %v3116_v63 = vpop.f32.mrf.mxu0 }
 0x434   : >> { %v2997_v61 = vadd.f32 %v2978_v43, %v11591_v39 }
 0x435   : >> { %v12975_v9 = vmov %v11625_v28 }
 0x436   : >> { %v11627_v46 = vadd.f32 %v3150_v32, %v2997_v61   ;;  %v3153_v22 = vpop.f32.mrf.mxu1 }
 0x438   : >> { %v2944_v10 = vpop.f32.mrf.mxu2 }
 0x439   : >> { %v2961_v44 = vadd.f32 %v2944_v10, %v11595_v3  ;;  %v9111_v10 = vld [vmem:[%s12939_s5 + $0x1b0] sm:$0xff] (%p11662_p13) }
 0x43b   : >> { %v2981_v59 = vpop.f32.mrf.mxu3  ;;  %v11631_v63 = vadd.f32 %v3116_v63, %v2961_v44   ;;  %v3118_v40 = vpop.f32.mrf.mxu0  ;;  %v9119_v44 = vld [vmem:[%s12939_s5 + $0x1f0] sm:$0xff] (%p11662_p13) }
 0x43c   : >> { %v2998_v1 = vadd.f32 %v2981_v59, %v11597_v55  ;;  %v9094_v59 = vld [vmem:[%s12939_s5 + $0x128] sm:$0xff] (%p11662_p13) }
 0x43d   : >> { %v12976_v15 = vmov %v11631_v63 }
 0x43e   : >> { %v11633_v49 = vadd.f32 %v3153_v22, %v2998_v1   ;;  %v3155_v18 = vpop.f32.mrf.mxu1  ;;  %v9102_v1 = vld [vmem:[%s12939_s5 + $0x168] sm:$0xff] (%p11662_p13) }
 0x440   : >> { %v2946_v29 = vpop.f32.mrf.mxu2 }
 0x441   : >> { %v2962_v39 = vadd.f32 %v2946_v29, %v2790_v60 }
 0x443   : >> { %v2983_v42 = vpop.f32.mrf.mxu3  ;;  %v11635_v29 = vadd.f32 %v3118_v40, %v2962_v39   ;;  %v3121_v25 = vpop.f32.mrf.mxu0  ;;  %v9110_v40 = vld [vmem:[%s12939_s5 + $0x1a8] sm:$0xff] (%p11662_p13)  ;;  %v9101_v39 = vld [vmem:[%s12939_s5 + $0x160] sm:$0xff] (%p11662_p13) }
 0x444   : >> { %v2999_v26 = vadd.f32 %v2983_v42, %v2827_v11  ;;  %v3176_v42 = vadd.f32 (%p11662_p13), %v12974_v12, %v11237_v51 }
 0x445   : >> { %v12977_v23 = vmov %v11635_v29 }
 0x446   : >> { %v11637_v58 = vadd.f32 %v3155_v18, %v2999_v26   ;;  %v3158_v0 = vpop.f32.mrf.mxu1  ;;  %v12992_v18 = vmov %v11621_v57  ;;  %v12997_v29 = vmov %v12977_v23  ;;  %v3177_v26 = vadd.f32 (%p11662_p13), %v12975_v9, %v11237_v51 }
 0x447   : > { %v9118_v18 = vld [vmem:[%s12939_s5 + $0x1e8] sm:$0xff] (%p11662_p13)  ;;  %v9093_v29 = vld [vmem:[%s12939_s5 + $0x120] sm:$0xff] (%p11662_p13) }
 0x448   : >> { %v2949_v3 = vpop.f32.mrf.mxu2 }
 0x449   : >> { %v2963_v45 = vadd.f32 %v2949_v3, %v2791_v52  ;;  %v2450_v52 = vadd.f32 %v10383_v21, %v11577_v54  ;;  %v12991_v3 = vmov %v11627_v46 }
 0x44a   : > { %v3184_v3 = vadd.f32 (%p11662_p13), %v11621_v57, %v11237_v51 }
 0x44b   : >> { %v2986_v16 = vpop.f32.mrf.mxu3  ;;  %v11639_v45 = vadd.f32 %v3121_v25, %v2963_v45   ;;  %v3123_v24 = vpop.f32.mrf.mxu0  ;;  %v2622_v32 = vadd.f32 %v2612_v35, %v2450_v52  ;;  %v12989_v52 = vmov %v11637_v58  ;;  %v9120_v35 = vld [vmem:[%s12939_s5 + $0x1f8] sm:$0xff] (%p11662_p13)  ;;  %v9109_v25 = vld [vmem:[%s12939_s5 + $0x1a0] sm:$0xff] (%p11662_p13) }
 0x44c   : >> { %v3000_v55 = vadd.f32 %v2986_v16, %v2828_v2  ;;  %3514 = vmatpush.bf16.msra.mxu3 (%p11662_p13), %v9120_v35  ;;  %v3186_v16 = vadd.f32 (%p11662_p13), %v11633_v49, %v11237_v51  ;;  %v9099_v52 = vld [vmem:[%s12939_s5 + $0x150] sm:$0xff] (%p11662_p13) }
 0x44d   : >> { %v12978_v48 = vmov %v11639_v45 }
 0x44e   : >> { %v11641_v19 = vadd.f32 %v3158_v0, %v3000_v55   ;;  %v3160_v6 = vpop.f32.mrf.mxu1  ;;  %v12996_v45 = vmov %v12978_v48  ;;  %v9117_v0 = vld [vmem:[%s12939_s5 + $0x1e0] sm:$0xff] (%p11662_p13)  ;;  %v3187_v55 = vadd.f32 (%p11662_p13), %v11637_v58, %v11237_v51  ;;  %v9100_v58 = vld [vmem:[%s12939_s5 + $0x158] sm:$0xff] (%p11662_p13) }
 0x44f   : > { %v3185_v45 = vadd.f32 (%p11662_p13), %v11627_v46, %v11237_v51 }
 0x450   : >> { %v2951_v27 = vpop.f32.mrf.mxu2  ;;  %3515 = vmatpush.bf16.msra.mxu3 (%p11662_p13), %v9119_v44  ;;  %v3188_v46 = vadd.f32 (%p11662_p13), %v11641_v19, %v11237_v51 }
 0x451   : >> { %v2964_v60 = vadd.f32 %v2951_v27, %v2792_v37  ;;  %v2659_v37 = vadd.f32 %v2649_v50, %v2487_v5  ;;  %v9103_v50 = vld [vmem:[%s12939_s5 + $0x170] sm:$0xff] (%p11662_p13)  ;;  %v9108_v27 = vld [vmem:[%s12939_s5 + $0x198] sm:$0xff] (%p11662_p13) }
 0x453   : >> { %v2988_v7 = vpop.f32.mrf.mxu3  ;;  %v11643_v62 = vadd.f32 %v3123_v24, %v2964_v60   ;;  %v3126_v41 = vpop.f32.mrf.mxu0  ;;  %v2831_v43 = vadd.f32 %v11615_v17, %v2659_v37  ;;  %v12988_v37 = vmov %v11641_v19  ;;  %v12990_v60 = vmov %v11633_v49  ;;  %v9104_v17 = vld [vmem:[%s12939_s5 + $0x178] sm:$0xff] (%p11662_p13) }
 0x454   : >> { %v3001_v11 = vadd.f32 %v2988_v7, %v2829_v34  ;;  %v13000_v7 = vmov %v12974_v12  ;;  %3346 = vmatpush.bf16.msra.mxu1 (%p11662_p13), %v9104_v17  ;;  %3516 = vmatpush.bf16.msra.mxu3 (%p11662_p13), %v9118_v18  ;;  %v3178_v12 = vadd.f32 (%p11662_p13), %v12976_v15, %v11237_v51  ;;  %v3180_v24 = vadd.f32 (%p11662_p13), %v12978_v48, %v11237_v51  ;;  %v9092_v49 = vld [vmem:[%s12939_s5 + $0x118] sm:$0xff] (%p11662_p13)  ;;  %v9090_v37 = vld [vmem:[%s12939_s5 + $0x108] sm:$0xff] (%p11662_p13)  ;;  %v9113_v17 = vld [vmem:[%s12939_s5 + $0x1c0] sm:$0xff] (%p11662_p13) }
 0x455   : >> { %v12979_v4 = vmov %v11643_v62  ;;  %v2794_v62 = vadd.f32 %v11613_v13, %v2622_v32  ;;  %v9096_v13 = vld [vmem:[%s12939_s5 + $0x138] sm:$0xff] (%p11662_p13)  ;;  %v3192_v7 = vmax.f32 (%p11662_p13), %v3176_v42, %v3177_v26 }
 0x456   : >> { %v11645_v33 = vadd.f32 %v3160_v6, %v3001_v11   ;;  %v3163_v2 = vpop.f32.mrf.mxu1  ;;  %3262 = vmatpush.bf16.msra.mxu0 (%p11662_p13), %v9096_v13  ;;  %v3181_v57 = vadd.f32 (%p11662_p13), %v12979_v4, %v11237_v51  ;;  %v9116_v60 = vld [vmem:[%s12939_s5 + $0x1d8] sm:$0xff] (%p11662_p13)  ;;  %v3193_v11 = vmax.f32 (%p11662_p13), %v3184_v3, %v3185_v45  ;;  %v9105_v13 = vld [vmem:[%s12939_s5 + $0x180] sm:$0xff] (%p11662_p13)  ;;  %v11849_v3 = vmov (%p11662_p13), 0.0  }
 0x457   : > { %v11851_v45 = vmov (%p11662_p13), 0.0  }
 0x458   : >> { %v2954_v8 = vpop.f32.mrf.mxu2  ;;  %3347 = vmatpush.bf16.msra.mxu1 (%p11662_p13), %v9103_v50  ;;  %3517 = vmatpush.bf16.msra.mxu3 (%p11662_p13), %v9117_v0  ;;  %v3194_v32 = vmax.f32 (%p11662_p13), %v3192_v7, %v3193_v11 }
 0x459   : >> { %v2965_v56 = vadd.f32 %v2954_v8, %v2793_v53  ;;  %v9091_v8 = vld [vmem:[%s12939_s5 + $0x110] sm:$0xff] (%p11662_p13) }
 0x45b   : >> { %v2991_v36 = vpop.f32.mrf.mxu3  ;;  %v11651_v56 = vadd.f32 %v3126_v41, %v2965_v56   ;;  %v3128_v54 = vpop.f32.mrf.mxu0  ;;  %v3360_v41 = vmax.f32 (%p11662_p13), %v3180_v24, %v3181_v57  ;;  %v11863_v24 = vmov (%p11662_p13), 0.0   ;;  %v11865_v57 = vmov (%p11662_p13), 0.0  }
 0x45c   : >> { %v3002_v28 = vadd.f32 %v2991_v36, %v2830_v20  ;;  %v9112_v20 = vld [vmem:[%s12939_s5 + $0x1b8] sm:$0xff] (%p11662_p13)  ;;  %3348 = vmatpush.bf16.msra.mxu1 (%p11662_p13), %v9102_v1  ;;  %3518 = vmatpush.bf16.msra.mxu3 (%p11662_p13), %v9116_v60 }
 0x45d   : >> { %v12980_v38 = vmov %v11651_v56  ;;  %3430 = vmatpush.bf16.msra.mxu2 (%p11662_p13), %v9112_v20 }
 0x45e   : >> { %v11653_v5 = vadd.f32 %v3163_v2, %v3002_v28   ;;  %v3165_v63 = vpop.f32.mrf.mxu1  ;;  %v12994_v56 = vmov %v12980_v38  ;;  %v12999_v28 = vmov %v12975_v9  ;;  %v3179_v9 = vadd.f32 (%p11662_p13), %v12977_v23, %v11237_v51 }
 0x45f   : > { %v3182_v23 = vadd.f32 (%p11662_p13), %v12980_v38, %v11237_v51  ;;  %v9115_v28 = vld [vmem:[%s12939_s5 + $0x1d0] sm:$0xff] (%p11662_p13) }
 0x460   : >> { %v12981_v34 = vmov %v11653_v5  ;;  %v2956_v30 = vpop.f32.mrf.mxu2  ;;  %3349 = vmatpush.bf16.msra.mxu1 (%p11662_p13), %v9101_v39  ;;  %3519 = vmatpush.bf16.msra.mxu3 (%p11662_p13), %v9115_v28 }
 0x461   : >> { %v2966_v61 = vadd.f32 %v2956_v30, %v2794_v62  ;;  %v12986_v5 = vmov %v12981_v34  ;;  %v12995_v62 = vmov %v12979_v4  ;;  %3431 = vmatpush.bf16.msra.mxu2 (%p11662_p13), %v9111_v10  ;;  %v3190_v19 = vadd.f32 (%p11662_p13), %v12981_v34, %v11237_v51  ;;  %v9098_v34 = vld [vmem:[%s12939_s5 + $0x148] sm:$0xff] (%p11662_p13) }
 0x462   : > { %v3276_v4 = vmax.f32 (%p11662_p13), %v3178_v12, %v3179_v9  ;;  %v9107_v5 = vld [vmem:[%s12939_s5 + $0x190] sm:$0xff] (%p11662_p13)  ;;  %v11853_v12 = vmov (%p11662_p13), 0.0   ;;  %v11855_v9 = vmov (%p11662_p13), 0.0  }
 0x463   : >> { %v2993_v21 = vpop.f32.mrf.mxu3 }
 0x464   : >> { %v3003_v53 = vadd.f32 %v2993_v21, %v2831_v43  ;;  %v11657_v21 = vadd.f32 %v3128_v54, %v2966_v61   ;;  %3350 = vmatpush.bf16.msra.mxu1 (%p11662_p13), %v9100_v58  ;;  %v9106_v43 = vld [vmem:[%s12939_s5 + $0x188] sm:$0xff] (%p11662_p13)  ;;  %v11875_v58 = vmov (%p11662_p13), 0.0  }
 0x465   : > { %2297 = sbr.rel (!%p11662_p13) target bundleno = 802 (0x322), region = 228  ;;  %3432 = vmatpush.bf16.msra.mxu2 (%p11662_p13), %v9110_v40  ;;  %v9114_v61 = vld [vmem:[%s12939_s5 + $0x1c8] sm:$0xff] (%p11662_p13) }
 0x466   : >> { %v12982_v22 = vmov %v11657_v21  ;;  %v11659_v47 = vadd.f32 %v3165_v63, %v3003_v53   ;;  %v12987_v53 = vmov %v11645_v33  ;;  %v12998_v63 = vmov %v12976_v15  ;;  %3520 = vmatpush.bf16.msra.mxu3 (%p11662_p13), %v9114_v61 }
 0x467   : >> { %v12993_v21 = vmov %v12982_v22  ;;  %v3189_v15 = vadd.f32 (%p11662_p13), %v11645_v33, %v11237_v51  ;;  %v3183_v48 = vadd.f32 (%p11662_p13), %v12982_v22, %v11237_v51  ;;  %v3277_v33 = vmax.f32 (%p11662_p13), %v3186_v16, %v3187_v55  ;;  %v9089_v53 = vld [vmem:[%s12939_s5 + $0x100] sm:$0xff] (%p11662_p13) }
 0x468   : >> { %v12983_v14 = vmov %v11659_v47  ;;  %3351 = vmatpush.bf16.msra.mxu1 (%p11662_p13), %v9099_v52  ;;  %v3195_v21 = vmax.f32 (%p11662_p13), %v3194_v32, 0.0  ;;  %v9097_v63 = vld [vmem:[%s12939_s5 + $0x140] sm:$0xff] (%p11662_p13)  ;;  %v11857_v16 = vmov (%p11662_p13), 0.0   ;;  %v11861_v55 = vmov (%p11662_p13), 0.0  }
 0x469   : >> { %v12985_v47 = vmov %v12983_v14  ;;  %v3191_v6 = vadd.f32 (%p11662_p13), %v12983_v14, %v11237_v51  ;;  %3433 = vmatpush.bf16.msra.mxu2 (%p11662_p13), %v9109_v25  ;;  %v3361_v2 = vmax.f32 (%p11662_p13), %v3188_v46, %v3189_v15  ;;  %v3444_v56 = vmax.f32 (%p11662_p13), %v3182_v23, %v3183_v48 }
 0x46a   : > { %v9095_v47 = vld [vmem:[%s12939_s5 + $0x130] sm:$0xff]  ;;  %v3278_v38 = vmax.f32 %v3276_v4, %v3277_v33  ;;  %v3196_v20 = vpack.c.bf16 %v3195_v21, %v3195_v21  ;;  %3521 = vmatpush.bf16.msra.mxu3 %v9113_v17  ;;  %v11867_v46 = vmov 0.0   ;;  %v11869_v15 = vmov 0.0  }
 0x46b   : > { %3263 = vmatpush.bf16.msra.mxu0 %v9095_v47  ;;  %v3445_v36 = vmax.f32 %v3190_v19, %v3191_v6  ;;  %v3362_v62 = vmax.f32 %v3360_v41, %v3361_v2  ;;  %v11871_v23 = vmov 0.0   ;;  %v11877_v48 = vmov 0.0  }
 0x46c   : > { %v3279_v54 = vmax.f32 %v3278_v38, 0.0  ;;  %3352 = vmatpush.bf16.msra.mxu1 %v9098_v34  ;;  %v11879_v19 = vmov 0.0  }
 0x46d   : > { %3434 = vmatpush.bf16.msra.mxu2 %v9108_v27  ;;  %v3446_v30 = vmax.f32 %v3444_v56, %v3445_v36  ;;  %v3363_v22 = vmax.f32 %v3362_v62, 0.0 }
 0x46e   : > { %v3280_v35 = vpack.c.bf16 %v3279_v54, %v3279_v54 }
 0x46f   : > { %3264 = vmatpush.bf16.msra.mxu0 %v9094_v59  ;;  %v3447_v14 = vmax.f32 %v3446_v30, 0.0  ;;  %v3364_v47 = vpack.c.bf16 %v3363_v22, %v3363_v22 }
 0x470   : > { %3353 = vmatpush.bf16.msra.mxu1 %v9097_v63 }
 0x471   : > { %3435 = vmatpush.bf16.msra.mxu2 %v9107_v5  ;;  %v3448_v50 = vpack.c.bf16 %v3447_v14, %v3447_v14 }
 0x473   : > { %3265 = vmatpush.bf16.msra.mxu0 %v9093_v29  ;;  %3354 = vmatmul.bf16.vlgmr.msra.gmra.mxu1 %v3280_v35 }
 0x474   : > { %3522 = vmatmul.bf16.vlgmr.msra.gmra.mxu3 %v3448_v50 }
 0x475   : > { %3436 = vmatpush.bf16.msra.mxu2 %v9106_v43 }
 0x477   : > { %3266 = vmatpush.bf16.msra.mxu0 %v9092_v49  ;;  %v11873_v49 = vmov 0.0  }
 0x479   : > { %3437 = vmatpush.bf16.msra.mxu2 %v9105_v13 }
 0x47b   : > { %3267 = vmatpush.bf16.msra.mxu0 %v9091_v8 }
 0x47c   : > { %3438 = vmatmul.bf16.vlgmr.msra.gmra.mxu2 %v3364_v47 }
 0x47f   : > { %3268 = vmatpush.bf16.msra.mxu0 %v9090_v37 }
 0x483   : > { %3269 = vmatpush.bf16.msra.mxu0 %v9089_v53 }
 0x486   : > { %3270 = vmatmul.bf16.vlgmr.msra.gmra.mxu0 %v3196_v20 }
 0x4f0   : > { %v3355_v44 = vpop.f32.mrf.mxu1 }
 0x4f7   : > { %v3523_v18 = vpop.f32.mrf.mxu3 }
 0x4f8   : > { %v3357_v42 = vpop.f32.mrf.mxu1 }
 0x4ff   : > { %v3439_v40 = vpop.f32.mrf.mxu2  ;;  %v3525_v0 = vpop.f32.mrf.mxu3 }
 0x503   : > { %v3271_v10 = vpop.f32.mrf.mxu0 }
 0x504   : > { %v3275_v59 = vadd.f32 %v3271_v10, %v11337_v31  ;;  %v11859_v31 = vmov 0.0  }
 0x506   : > { %v3359_v1 = vadd.f32 %v3355_v44, %v3275_v59 }
 0x507   : > { %v3441_v25 = vpop.f32.mrf.mxu2 }
 0x508   : > { %v3443_v29 = vadd.f32 %v3439_v40, %v3359_v1 }
 0x50a   : > { %v11847_v26 = vadd.f32 %v3523_v18, %v3443_v29 }
 0x50b   : > { %v3273_v39 = vpop.f32.mrf.mxu0 }
 0x50c LB: >> { %s9121_s21 = smul.u32 320, %s10483_s17  ;;  %s10483_s17 = sphi %s11881_s17, %s3533_s17   ;;  %v10479_v19 = vphi %v11879_v19, %v13027_v19   ;;  %v10475_v48 = vphi %v11877_v48, %v13026_v48   ;;  %v10471_v58 = vphi %v11875_v58, %v13025_v58   ;;  %v10467_v49 = vphi %v11873_v49, %v13024_v49   ;;  %v10463_v23 = vphi %v11871_v23, %v13023_v23   ;;  %v10459_v15 = vphi %v11869_v15, %v13022_v15   ;;  %v10455_v46 = vphi %v11867_v46, %v13021_v46   ;;  %v10451_v57 = vphi %v11865_v57, %v13020_v57   ;;  %v10447_v24 = vphi %v11863_v24, %v13019_v24   ;;  %v10443_v55 = vphi %v11861_v55, %v13018_v55   ;;  %v10439_v31 = vphi %v11859_v31, %v13017_v31   ;;  %v10435_v16 = vphi %v11857_v16, %v13016_v16   ;;  %v10431_v9 = vphi %v11855_v9, %v13015_v9   ;;  %v10427_v12 = vphi %v11853_v12, %v13014_v12   ;;  %v10423_v45 = vphi %v11851_v45, %v13013_v45   ;;  %v10419_v3 = vphi %v11849_v3, %v13012_v3  }
 0x50d   : >> { %s6271_s24 = smul.u32 96, %s10483_s17  ;;  %s3533_s17 = sadd.s32 1, %s10483_s17  }
 0x50e   : >> { %s11938_s29 = scalar_lea.vmem %s12937_s3, %s9121_s21  ;;  %p12172_p0 = scmp.ge.s32.totalorder %s3533_s17, 5  }
 0x50f   : >> { %v9129_v6 = vld [vmem:[%s11938_s29 + $0x38] sm:$0xff]  ;;  %v9128_v27 = vld [vmem:[%s11938_s29 + $0x30] sm:$0xff]  ;;  %v9127_v60 = vld [vmem:[%s11938_s29 + $0x28] sm:$0xff]  ;;  %s11949_s25 = scalar_lea.vmem [#allocation2], %s6271_s24  ;;  %s12391_s23 = smov (%p12172_p0), 0  }
 0x510   : >> { %3649 = vmatpush.bf16.msra.mxu0 %v9129_v6  ;;  %9307 = vmatpush.bf16.msra.mxu2 %v9129_v6  ;;  %v9126_v7 = vld [vmem:[%s11938_s29 + $0x20] sm:$0xff]  ;;  %v9125_v11 = vld [vmem:[%s11938_s29 + $0x18] sm:$0xff]  ;;  %v9124_v4 = vld [vmem:[%s11938_s29 + $0x10] sm:$0xff] }
 0x511   : >> { %3686 = vmatpush.bf16.msra.mxu1 %v9129_v6  ;;  %9315 = vmatpush.bf16.msra.mxu3 %v9129_v6  ;;  %v9123_v33 = vld [vmem:[%s11938_s29 + $0x8] sm:$0xff]  ;;  %v9122_v41 = vld [vmem:[%s11938_s29] sm:$0xff]  ;;  %v9137_v38 = vld [vmem:[%s11938_s29 + $0x78] sm:$0xff] }
 0x512   : >> { %v7881_v8 = vld [vmem:[%s11949_s25 + $0x180] sm:$0xff]  ;;  %v11953_v52 = vld [vmem:[%s11949_s25 + $0x188] sm:$0xff]  ;;  %v9145_v43 = vld [vmem:[%s11938_s29 + $0xb8] sm:$0xff] }
 0x513   : >> { %v11956_v2 = vld [vmem:[%s11949_s25 + $0x1a0] sm:$0xff]  ;;  %v11959_v56 = vld [vmem:[%s11949_s25 + $0x1a8] sm:$0xff]  ;;  %v3584_v37 = vpack.c.bf16 %v11953_v52, %v7881_v8  ;;  %v9136_v61 = vld [vmem:[%s11938_s29 + $0x70] sm:$0xff] }
 0x514   : >> { %3650 = vmatpush.bf16.msra.mxu0 %v9128_v27  ;;  %9308 = vmatpush.bf16.msra.mxu2 %v9128_v27  ;;  %v7890_v36 = vld [vmem:[%s11949_s25 + $0x1e0] sm:$0xff]  ;;  %v11963_v5 = vld [vmem:[%s11949_s25 + $0x1e8] sm:$0xff]  ;;  %v11975_v34 = vpack.c.bf16 %v11959_v56, %v11956_v2  ;;  %v9144_v21 = vld [vmem:[%s11938_s29 + $0xb0] sm:$0xff] }
 0x515   : >> { %3687 = vmatpush.bf16.msra.mxu1 %v9128_v27  ;;  %9316 = vmatpush.bf16.msra.mxu3 %v9128_v27  ;;  %v11966_v28 = vld [vmem:[%s11949_s25 + $0x200] sm:$0xff]  ;;  %v11969_v32 = vld [vmem:[%s11949_s25 + $0x208] sm:$0xff]  ;;  %v3597_v62 = vpack.c.bf16 %v11963_v5, %v7890_v36  ;;  %v7883_v14 = vld [vmem:[%s11949_s25 + $0x190] sm:$0xff] }
 0x516   : >> { %v11980_v30 = vpack.c.bf16 %v11969_v32, %v11966_v28  ;;  %v9135_v54 = vld [vmem:[%s11938_s29 + $0x68] sm:$0xff]  ;;  %v9134_v63 = vld [vmem:[%s11938_s29 + $0x60] sm:$0xff]  ;;  %v11993_v13 = vld [vmem:[%s11949_s25 + $0x198] sm:$0xff] }
 0x517   : >> { %v9143_v53 = vld [vmem:[%s11938_s29 + $0xa8] sm:$0xff]  ;;  %v9142_v22 = vld [vmem:[%s11938_s29 + $0xa0] sm:$0xff]  ;;  %v11996_v17 = vld [vmem:[%s11949_s25 + $0x1b0] sm:$0xff]  ;;  %v3585_v59 = vpack.c.bf16 %v11993_v13, %v7883_v14 }
 0x518   : >> { %3651 = vmatpush.bf16.msra.mxu0 %v9127_v60  ;;  %9309 = vmatpush.bf16.msra.mxu2 %v9127_v60  ;;  %v11999_v20 = vld [vmem:[%s11949_s25 + $0x1b8] sm:$0xff]  ;;  %v7892_v35 = vld [vmem:[%s11949_s25 + $0x1f0] sm:$0xff]  ;;  %v9131_v25 = vld [vmem:[%s11938_s29 + $0x48] sm:$0xff] }
 0x519   : >> { %3688 = vmatpush.bf16.msra.mxu1 %v9127_v60  ;;  %9317 = vmatpush.bf16.msra.mxu3 %v9127_v60  ;;  %v12003_v47 = vld [vmem:[%s11949_s25 + $0x1f8] sm:$0xff]  ;;  %v12006_v50 = vld [vmem:[%s11949_s25 + $0x210] sm:$0xff]  ;;  %v12015_v1 = vpack.c.bf16 %v11999_v20, %v11996_v17  ;;  %v9139_v0 = vld [vmem:[%s11938_s29 + $0x88] sm:$0xff] }
 0x51a   : >> { %v12009_v10 = vld [vmem:[%s11949_s25 + $0x218] sm:$0xff]  ;;  %v3598_v40 = vpack.c.bf16 %v12003_v47, %v7892_v35  ;;  %v9132_v39 = vld [vmem:[%s11938_s29 + $0x50] sm:$0xff]  ;;  %v9130_v6 = vld [vmem:[%s11938_s29 + $0x40] sm:$0xff] }
 0x51b   : >> { %v9133_v44 = vld [vmem:[%s11938_s29 + $0x58] sm:$0xff]  ;;  %v12020_v18 = vpack.c.bf16 %v12009_v10, %v12006_v50  ;;  %v9140_v42 = vld [vmem:[%s11938_s29 + $0x90] sm:$0xff]  ;;  %v9138_v60 = vld [vmem:[%s11938_s29 + $0x80] sm:$0xff] }
 0x51c   : >> { %3652 = vmatpush.bf16.msra.mxu0 %v9126_v7  ;;  %9310 = vmatpush.bf16.msra.mxu2 %v9126_v7  ;;  %v9141_v29 = vld [vmem:[%s11938_s29 + $0x98] sm:$0xff]  ;;  %v9151_v8 = vld [vmem:[%s11938_s29 + $0xe8] sm:$0xff]  ;;  %v9150_v36 = vld [vmem:[%s11938_s29 + $0xe0] sm:$0xff] }
 0x51d   : >> { %3689 = vmatpush.bf16.msra.mxu1 %v9126_v7  ;;  %9318 = vmatpush.bf16.msra.mxu3 %v9126_v7  ;;  %v9153_v27 = vld [vmem:[%s11938_s29 + $0xf8] sm:$0xff] }
 0x51e   : >> { %v9161_v7 = vld [vmem:[%s11938_s29 + $0x138] sm:$0xff] }
 0x520   : >> { %3653 = vmatpush.bf16.msra.mxu0 %v9125_v11  ;;  %9311 = vmatpush.bf16.msra.mxu2 %v9125_v11 }
 0x521   : >> { %3690 = vmatpush.bf16.msra.mxu1 %v9125_v11  ;;  %9319 = vmatpush.bf16.msra.mxu3 %v9125_v11  ;;  %v3756_v11 = vpack.c.bf16 %v7883_v14, %v11953_v52  ;;  %v9159_v52 = vld [vmem:[%s11938_s29 + $0x128] sm:$0xff]  ;;  %v7955_v14 = vld [vmem:[%s11949_s25 + $0x1c0] sm:$0xff] }
 0x524   : >> { %3654 = vmatpush.bf16.msra.mxu0 %v9124_v4  ;;  %9312 = vmatpush.bf16.msra.mxu2 %v9124_v4 }
 0x525   : >> { %3691 = vmatpush.bf16.msra.mxu1 %v9124_v4  ;;  %9320 = vmatpush.bf16.msra.mxu3 %v9124_v4  ;;  %v9152_v4 = vld [vmem:[%s11938_s29 + $0xf0] sm:$0xff] }
 0x528   : >> { %3655 = vmatpush.bf16.msra.mxu0 %v9123_v33  ;;  %9313 = vmatpush.bf16.msra.mxu2 %v9123_v33 }
 0x529   : >> { %3692 = vmatpush.bf16.msra.mxu1 %v9123_v33  ;;  %9321 = vmatpush.bf16.msra.mxu3 %v9123_v33  ;;  %v3769_v33 = vpack.c.bf16 %v7892_v35, %v11963_v5  ;;  %v9158_v5 = vld [vmem:[%s11938_s29 + $0x120] sm:$0xff]  ;;  %v8022_v35 = vld [vmem:[%s11949_s25 + $0x1c8] sm:$0xff] }
 0x52c   : >> { %3656 = vmatpush.bf16.msra.mxu0 %v9122_v41  ;;  %9314 = vmatpush.bf16.msra.mxu2 %v9122_v41 }
 0x52d   : >> { %3693 = vmatpush.bf16.msra.mxu1 %v9122_v41  ;;  %9322 = vmatpush.bf16.msra.mxu3 %v9122_v41  ;;  %v9160_v41 = vld [vmem:[%s11938_s29 + $0x130] sm:$0xff] }
 0x52f   : >> { %3657 = vmatmul.bf16.vlgmr.msra.gmra.mxu0 %v3584_v37  ;;  %3667 = vmatmul.bf16.vlgmr.msra.gmra.mxu2 %v11975_v34  ;;  %v9157_v37 = vld [vmem:[%s11938_s29 + $0x118] sm:$0xff] }
 0x530   : >> { %3821 = vmatpush.bf16.msrb.mxu2 %v9137_v38  ;;  %3694 = vmatmul.bf16.vlgmr.msra.gmra.mxu1 %v3597_v62  ;;  %v3757_v62 = vpack.c.bf16 %v11956_v2, %v11993_v13  ;;  %v9147_v2 = vld [vmem:[%s11938_s29 + $0xc8] sm:$0xff]  ;;  %v7964_v13 = vld [vmem:[%s11949_s25 + $0x220] sm:$0xff] }
 0x531   : >> { %3858 = vmatpush.bf16.msrb.mxu3 %v9137_v38  ;;  %3993 = vmatpush.bf16.msrb.mxu0 %v9145_v43  ;;  %v9149_v38 = vld [vmem:[%s11938_s29 + $0xd8] sm:$0xff] }
 0x532   : >> { %3704 = vmatmul.bf16.vlgmr.msra.gmra.mxu3 %v11980_v30  ;;  %4030 = vmatpush.bf16.msrb.mxu1 %v9145_v43  ;;  %v9148_v43 = vld [vmem:[%s11938_s29 + $0xd0] sm:$0xff] }
 0x534   : >> { %3822 = vmatpush.bf16.msrb.mxu2 %v9136_v61 }
 0x535   : >> { %3859 = vmatpush.bf16.msrb.mxu3 %v9136_v61  ;;  %3994 = vmatpush.bf16.msrb.mxu0 %v9144_v21  ;;  %v3770_v61 = vpack.c.bf16 %v11966_v28, %v12003_v47  ;;  %v9154_v28 = vld [vmem:[%s11938_s29 + $0x100] sm:$0xff]  ;;  %v8031_v47 = vld [vmem:[%s11949_s25 + $0x228] sm:$0xff] }
 0x536   : >> { %4031 = vmatpush.bf16.msrb.mxu1 %v9144_v21  ;;  %v9156_v21 = vld [vmem:[%s11938_s29 + $0x110] sm:$0xff] }
 0x538   : >> { %3823 = vmatpush.bf16.msrb.mxu2 %v9135_v54 }
 0x539   : >> { %3860 = vmatpush.bf16.msrb.mxu3 %v9135_v54  ;;  %3995 = vmatpush.bf16.msrb.mxu0 %v9143_v53  ;;  %v9146_v54 = vld [vmem:[%s11938_s29 + $0xc0] sm:$0xff] }
 0x53a   : >> { %4032 = vmatpush.bf16.msrb.mxu1 %v9143_v53  ;;  %v9155_v53 = vld [vmem:[%s11938_s29 + $0x108] sm:$0xff] }
 0x53c   : >> { %3824 = vmatpush.bf16.msrb.mxu2 %v9134_v63 }
 0x53d   : >> { %3861 = vmatpush.bf16.msrb.mxu3 %v9134_v63  ;;  %3996 = vmatpush.bf16.msrb.mxu0 %v9142_v22  ;;  %v3758_v63 = vpack.c.bf16 %v11996_v17, %v11959_v56  ;;  %v3931_v56 = vpack.c.bf16 %v8022_v35, %v7955_v14  ;;  %v3944_v17 = vpack.c.bf16 %v8031_v47, %v7964_v13 }
 0x53e   : >> { %4033 = vmatpush.bf16.msrb.mxu1 %v9142_v22  ;;  %v3771_v22 = vpack.c.bf16 %v12006_v50, %v11969_v32 }
 0x53f   : >> { %3662 = vmatmul.bf16.gmra.mxu0 %v3585_v59  ;;  %3672 = vmatmul.bf16.gmra.mxu2 %v12015_v1 }
 0x540   : >> { %3825 = vmatpush.bf16.msrb.mxu2 %v9133_v44  ;;  %3699 = vmatmul.bf16.gmra.mxu1 %v3598_v40 }
 0x541   : >> { %3862 = vmatpush.bf16.msrb.mxu3 %v9133_v44  ;;  %3997 = vmatpush.bf16.msrb.mxu0 %v9141_v29  ;;  %v3759_v44 = vpack.c.bf16 %v7955_v14, %v11999_v20 }
 0x542   : >> { %3709 = vmatmul.bf16.gmra.mxu3 %v12020_v18  ;;  %4034 = vmatpush.bf16.msrb.mxu1 %v9141_v29  ;;  %v8098_v29 = vld [vmem:[%s11949_s25 + $0x230] sm:$0xff] }
 0x544   : >> { %3826 = vmatpush.bf16.msrb.mxu2 %v9132_v39 }
 0x545   : >> { %3863 = vmatpush.bf16.msrb.mxu3 %v9132_v39  ;;  %3998 = vmatpush.bf16.msrb.mxu0 %v9140_v42  ;;  %v8156_v39 = vld [vmem:[%s11949_s25 + $0x1d8] sm:$0xff] }
 0x546   : >> { %4035 = vmatpush.bf16.msrb.mxu1 %v9140_v42 }
 0x548   : >> { %3827 = vmatpush.bf16.msrb.mxu2 %v9131_v25 }
 0x549   : >> { %3864 = vmatpush.bf16.msrb.mxu3 %v9131_v25  ;;  %3999 = vmatpush.bf16.msrb.mxu0 %v9139_v0 }
 0x54a   : >> { %4036 = vmatpush.bf16.msrb.mxu1 %v9139_v0 }
 0x54c   : >> { %3828 = vmatpush.bf16.msrb.mxu2 %v9130_v6 }
 0x54d   : >> { %3865 = vmatpush.bf16.msrb.mxu3 %v9130_v6  ;;  %4000 = vmatpush.bf16.msrb.mxu0 %v9138_v60  ;;  %v4116_v6 = vpack.c.bf16 %v8098_v29, %v8031_v47 }
 0x54e   : >> { %4037 = vmatpush.bf16.msrb.mxu1 %v9138_v60 }
 0x54f   : >> { %3829 = vmatmul.bf16.vlgmr.msrb.gmra.mxu2 %v3756_v11 }
 0x550   : >> { %4165 = vmatpush.bf16.msra.mxu2 %v9153_v27  ;;  %4001 = vmatmul.bf16.vlgmr.msrb.gmra.mxu0 %v3585_v59  ;;  %v3772_v59 = vpack.c.bf16 %v7964_v13, %v12009_v10 }
 0x551   : >> { %4202 = vmatpush.bf16.msra.mxu3 %v9153_v27  ;;  %4337 = vmatpush.bf16.msra.mxu0 %v9161_v7 }
 0x552   : >> { %4374 = vmatpush.bf16.msra.mxu1 %v9161_v7  ;;  %3866 = vmatmul.bf16.vlgmr.msrb.gmra.mxu3 %v3769_v33 }
 0x553   : >> { %4038 = vmatmul.bf16.vlgmr.msrb.gmra.mxu1 %v3598_v40  ;;  %v8089_v40 = vld [vmem:[%s11949_s25 + $0x1d0] sm:$0xff] }
 0x554   : >> { %4166 = vmatpush.bf16.msra.mxu2 %v9152_v4  ;;  %v4275_v27 = vpack.c.bf16 %v8156_v39, %v8089_v40 }
 0x555   : >> { %4203 = vmatpush.bf16.msra.mxu3 %v9152_v4  ;;  %4338 = vmatpush.bf16.msra.mxu0 %v9160_v41 }
 0x556   : >> { %4375 = vmatpush.bf16.msra.mxu1 %v9160_v41 }
 0x558   : >> { %4167 = vmatpush.bf16.msra.mxu2 %v9151_v8 }
 0x559   : >> { %4204 = vmatpush.bf16.msra.mxu3 %v9151_v8  ;;  %4339 = vmatpush.bf16.msra.mxu0 %v9159_v52 }
 0x55a   : >> { %4376 = vmatpush.bf16.msra.mxu1 %v9159_v52 }
 0x55c   : >> { %4168 = vmatpush.bf16.msra.mxu2 %v9150_v36 }
 0x55d   : >> { %4205 = vmatpush.bf16.msra.mxu3 %v9150_v36  ;;  %4340 = vmatpush.bf16.msra.mxu0 %v9158_v5 }
 0x55e   : >> { %4377 = vmatpush.bf16.msra.mxu1 %v9158_v5 }
 0x55f   : >> { %3834 = vmatmul.bf16.gmra.mxu2 %v3757_v62 }
 0x560   : >> { %4169 = vmatpush.bf16.msra.mxu2 %v9149_v38  ;;  %4006 = vmatmul.bf16.gmra.mxu0 %v11975_v34 }
 0x561   : >> { %4206 = vmatpush.bf16.msra.mxu3 %v9149_v38  ;;  %4341 = vmatpush.bf16.msra.mxu0 %v9157_v37 }
 0x562   : >> { %4378 = vmatpush.bf16.msra.mxu1 %v9157_v37  ;;  %3871 = vmatmul.bf16.gmra.mxu3 %v3770_v61 }
 0x563   : >> { %4043 = vmatmul.bf16.gmra.mxu1 %v11980_v30 }
 0x564   : >> { %4170 = vmatpush.bf16.msra.mxu2 %v9148_v43 }
 0x565   : >> { %4207 = vmatpush.bf16.msra.mxu3 %v9148_v43  ;;  %4342 = vmatpush.bf16.msra.mxu0 %v9156_v21 }
 0x566   : >> { %4379 = vmatpush.bf16.msra.mxu1 %v9156_v21 }
 0x568   : >> { %4171 = vmatpush.bf16.msra.mxu2 %v9147_v2 }
 0x569   : >> { %4208 = vmatpush.bf16.msra.mxu3 %v9147_v2  ;;  %4343 = vmatpush.bf16.msra.mxu0 %v9155_v53 }
 0x56a   : >> { %4380 = vmatpush.bf16.msra.mxu1 %v9155_v53 }
 0x56c   : >> { %4172 = vmatpush.bf16.msra.mxu2 %v9146_v54 }
 0x56d   : >> { %4209 = vmatpush.bf16.msra.mxu3 %v9146_v54  ;;  %4344 = vmatpush.bf16.msra.mxu0 %v9154_v28 }
 0x56e   : >> { %4381 = vmatpush.bf16.msra.mxu1 %v9154_v28 }
 0x56f   : >> { %3839 = vmatmul.bf16.gmra.mxu2 %v3758_v63 }
 0x570   : >> { %4011 = vmatmul.bf16.gmra.mxu0 %v12015_v1 }
 0x572   : >> { %3876 = vmatmul.bf16.gmra.mxu3 %v3771_v22 }
 0x573   : >> { %4048 = vmatmul.bf16.gmra.mxu1 %v12020_v18 }
 0x57f   : >> { %3844 = vmatmul.bf16.gmra.mxu2 %v3759_v44 }
 0x580   : >> { %4016 = vmatmul.bf16.gmra.mxu0 %v3931_v56 }
 0x582   : >> { %3881 = vmatmul.bf16.gmra.mxu3 %v3772_v59 }
 0x583   : >> { %4053 = vmatmul.bf16.gmra.mxu1 %v3944_v17 }
 0x58f   : >> { %4173 = vmatmul.bf16.vlgmr.msra.gmra.mxu2 %v3757_v62 }
 0x590   : >> { %4345 = vmatmul.bf16.vlgmr.msra.gmra.mxu0 %v11975_v34 }
 0x592   : >> { %4210 = vmatmul.bf16.vlgmr.msra.gmra.mxu3 %v3770_v61 }
 0x593   : >> { %4382 = vmatmul.bf16.vlgmr.msra.gmra.mxu1 %v11980_v30 }
 0x59f   : >> { %4178 = vmatmul.bf16.gmra.mxu2 %v3758_v63 }
 0x5a0   : >> { %4350 = vmatmul.bf16.gmra.mxu0 %v12015_v1  ;;  %v8165_v1 = vld [vmem:[%s11949_s25 + $0x238] sm:$0xff] }
 0x5a1   : >> { %v4288_v7 = vpack.c.bf16 %v8165_v1, %v8098_v29 }
 0x5a2   : >> { %4215 = vmatmul.bf16.gmra.mxu3 %v3771_v22 }
 0x5a3   : >> { %4387 = vmatmul.bf16.gmra.mxu1 %v12020_v18  ;;  %v4103_v18 = vpack.c.bf16 %v8089_v40, %v8022_v35 }
 0x5ac   : >> { %v3658_v32 = vpop.f32.mrf.mxu0 }
 0x5ad   : >> { %v3695_v20 = vpop.f32.mrf.mxu1  ;;  %v3678_v38 = vadd.f32 %v10479_v19, %v3658_v32 }
 0x5ae   : >> { %v3715_v37 = vadd.f32 %v10447_v24, %v3695_v20 }
 0x5af   : >> { %4183 = vmatmul.bf16.gmra.mxu2 %v3759_v44 }
 0x5b0   : >> { %4355 = vmatmul.bf16.gmra.mxu0 %v3931_v56 }
 0x5b2   : >> { %4220 = vmatmul.bf16.gmra.mxu3 %v3772_v59  ;;  %v12071_v50 = vpop.f32.mrf.mxu2 }
 0x5b3   : >> { %4392 = vmatmul.bf16.gmra.mxu1 %v3944_v17 }
 0x5b4   : >> { %v3660_v30 = vpop.f32.mrf.mxu0 }
 0x5b5   : >> { %v12073_v34 = vpop.f32.mrf.mxu3  ;;  %v3697_v10 = vpop.f32.mrf.mxu1  ;;  %v3679_v63 = vadd.f32 %v10475_v48, %v3660_v30 }
 0x5b6   : >> { %v3716_v22 = vadd.f32 %v10443_v55, %v3697_v10 }
 0x5ba   : >> { %v12078_v42 = vpop.f32.mrf.mxu2 }
 0x5bc   : >> { %v3663_v0 = vpop.f32.mrf.mxu0 }
 0x5bd   : >> { %v12081_v25 = vpop.f32.mrf.mxu3  ;;  %v3700_v60 = vpop.f32.mrf.mxu1  ;;  %v3680_v56 = vadd.f32 %v10471_v58, %v3663_v0 }
 0x5be   : >> { %v3717_v17 = vadd.f32 %v10439_v31, %v3700_v60 }
 0x5bf   : >> { %4188 = vmatmul.bf16.gmra.mxu2 %v4103_v18 }
 0x5c0   : >> { %4360 = vmatmul.bf16.gmra.mxu0 %v4275_v27 }
 0x5c2   : >> { %4225 = vmatmul.bf16.gmra.mxu3 %v4116_v6  ;;  %v12083_v11 = vpop.f32.mrf.mxu2 }
 0x5c3   : >> { %4397 = vmatmul.bf16.gmra.mxu1 %v4288_v7 }
 0x5c4   : >> { %v3665_v33 = vpop.f32.mrf.mxu0 }
 0x5c5   : >> { %v12085_v4 = vpop.f32.mrf.mxu3  ;;  %v3702_v41 = vpop.f32.mrf.mxu1  ;;  %v3681_v39 = vadd.f32 %v10467_v49, %v3665_v33 }
 0x5c6   : >> { %v3718_v1 = vadd.f32 %v10435_v16, %v3702_v41 }
 0x5ca   : >> { %v12087_v8 = vpop.f32.mrf.mxu2 }
 0x5cd   : >> { %v12089_v52 = vpop.f32.mrf.mxu3  ;;  %v4002_v36 = vpop.f32.mrf.mxu0 }
 0x5d0   : >> { %v4039_v5 = vpop.f32.mrf.mxu1 }
 0x5d2   : >> { %v3830_v62 = vpop.f32.mrf.mxu2 }
 0x5d3   : >> { %v3850_v43 = vadd.f32 %v3830_v62, %v3678_v38 }
 0x5d5   : >> { %v3867_v61 = vpop.f32.mrf.mxu3  ;;  %v4004_v21 = vpop.f32.mrf.mxu0  ;;  %v12093_v54 = vadd.f32 %v4002_v36, %v3850_v43  ;;  %v3682_v36 = vadd.f32 %v10463_v23, %v12071_v50 }
 0x5d6   : >> { %v3887_v2 = vadd.f32 %v3867_v61, %v3715_v37  ;;  %v3683_v61 = vadd.f32 %v10459_v15, %v12078_v42 }
 0x5d8   : >> { %v4041_v53 = vpop.f32.mrf.mxu1  ;;  %v12095_v28 = vadd.f32 %v4039_v5, %v3887_v2  ;;  %v3719_v5 = vadd.f32 %v10431_v9, %v12073_v34  ;;  %v3720_v2 = vadd.f32 %v10427_v12, %v12081_v25 }
 0x5da   : >> { %v3832_v14 = vpop.f32.mrf.mxu2 }
 0x5db   : >> { %v3851_v13 = vadd.f32 %v3832_v14, %v3679_v63  ;;  %v3684_v14 = vadd.f32 %v10455_v46, %v12083_v11 }
 0x5dd   : >> { %v3869_v35 = vpop.f32.mrf.mxu3  ;;  %v4007_v47 = vpop.f32.mrf.mxu0  ;;  %v12099_v24 = vadd.f32 %v4004_v21, %v3851_v13  ;;  %v3721_v13 = vadd.f32 %v10423_v45, %v12085_v4 }
 0x5de   : >> { %v3888_v19 = vadd.f32 %v3869_v35, %v3716_v22 }
 0x5e0   : >> { %v4044_v44 = vpop.f32.mrf.mxu1  ;;  %v12101_v59 = vadd.f32 %v4041_v53, %v3888_v19 }
 0x5e2   : >> { %v3835_v32 = vpop.f32.mrf.mxu2 }
 0x5e3   : >> { %v3852_v20 = vadd.f32 %v3835_v32, %v3680_v56 }
 0x5e5   : >> { %v3872_v40 = vpop.f32.mrf.mxu3  ;;  %v4009_v30 = vpop.f32.mrf.mxu0  ;;  %v12105_v55 = vadd.f32 %v4007_v47, %v3852_v20 }
 0x5e6   : >> { %v3889_v48 = vadd.f32 %v3872_v40, %v3717_v17 }
 0x5e8   : >> { %v4046_v10 = vpop.f32.mrf.mxu1  ;;  %v12107_v29 = vadd.f32 %v4044_v44, %v3889_v48 }
 0x5ea   : >> { %v3837_v18 = vpop.f32.mrf.mxu2 }
 0x5eb   : >> { %v3853_v6 = vadd.f32 %v3837_v18, %v3681_v39 }
 0x5ed   : >> { %v3874_v27 = vpop.f32.mrf.mxu3  ;;  %v4012_v0 = vpop.f32.mrf.mxu0  ;;  %v4025_v31 = vadd.f32 %v4009_v30, %v3853_v6 }
 0x5ee   : >> { %v3890_v58 = vadd.f32 %v3874_v27, %v3718_v1 }
 0x5f0   : >> { %v4049_v60 = vpop.f32.mrf.mxu1  ;;  %v4062_v7 = vadd.f32 %v4046_v10, %v3890_v58 }
 0x5f2   : >> { %v3840_v38 = vpop.f32.mrf.mxu2 }
 0x5f3   : >> { %v3854_v37 = vadd.f32 %v3840_v38, %v3682_v36 }
 0x5f5   : >> { %v3877_v62 = vpop.f32.mrf.mxu3  ;;  %v4014_v33 = vpop.f32.mrf.mxu0  ;;  %v4026_v16 = vadd.f32 %v4012_v0, %v3854_v37 }
 0x5f6   : >> { %v3891_v49 = vadd.f32 %v3877_v62, %v3719_v5 }
 0x5f8   : >> { %v4051_v41 = vpop.f32.mrf.mxu1  ;;  %v4063_v43 = vadd.f32 %v4049_v60, %v3891_v49 }
 0x5fa   : >> { %v3842_v21 = vpop.f32.mrf.mxu2 }
 0x5fb   : >> { %v3855_v53 = vadd.f32 %v3842_v21, %v3683_v61 }
 0x5fd   : >> { %v3879_v23 = vpop.f32.mrf.mxu3  ;;  %v4017_v63 = vpop.f32.mrf.mxu0  ;;  %v4027_v9 = vadd.f32 %v4014_v33, %v3855_v53 }
 0x5fe   : >> { %v3892_v50 = vadd.f32 %v3879_v23, %v3720_v2 }
 0x600   : >> { %v4054_v34 = vpop.f32.mrf.mxu1  ;;  %v4064_v22 = vadd.f32 %v4051_v41, %v3892_v50 }
 0x602   : >> { %v3845_v35 = vpop.f32.mrf.mxu2 }
 0x603   : >> { %v3856_v19 = vadd.f32 %v3845_v35, %v3684_v14 }
 0x605   : >> { %v3882_v15 = vpop.f32.mrf.mxu3  ;;  %v12123_v47 = vpop.f32.mrf.mxu0  ;;  %v4028_v12 = vadd.f32 %v4017_v63, %v3856_v19 }
 0x606   : >> { %v3893_v42 = vadd.f32 %v3882_v15, %v3721_v13 }
 0x608   : >> { %v12125_v25 = vpop.f32.mrf.mxu1  ;;  %v4065_v44 = vadd.f32 %v4054_v34, %v3893_v42 }
 0x60a   : >> { %v3847_v56 = vpop.f32.mrf.mxu2 }
 0x60d   : >> { %v3884_v17 = vpop.f32.mrf.mxu3  ;;  %v4346_v32 = vpop.f32.mrf.mxu0 }
 0x610   : >> { %v4383_v20 = vpop.f32.mrf.mxu1 }
 0x612   : >> { %v4174_v40 = vpop.f32.mrf.mxu2 }
 0x613   : >> { %v4194_v46 = vadd.f32 %v4174_v40, %v12093_v54 }
 0x615   : >> { %v4211_v11 = vpop.f32.mrf.mxu3  ;;  %v12129_v19 = vadd.f32 %v4346_v32, %v4194_v46   ;;  %v4348_v48 = vpop.f32.mrf.mxu0 }
 0x616   : >> { %v4231_v45 = vadd.f32 %v4211_v11, %v12095_v28 }
 0x617   : >> { %v13001_v4 = vmov %v12129_v19 }
 0x618   : >> { %v12131_v30 = vadd.f32 %v4383_v20, %v4231_v45   ;;  %v4385_v10 = vpop.f32.mrf.mxu1  ;;  %v3722_v45 = vadd.f32 %v10419_v3, %v12089_v52 }
 0x61a   : >> { %v4176_v39 = vpop.f32.mrf.mxu2 }
 0x61b   : >> { %v4195_v1 = vadd.f32 %v4176_v39, %v12099_v24 }
 0x61d   : >> { %v4213_v18 = vpop.f32.mrf.mxu3  ;;  %v12135_v48 = vadd.f32 %v4348_v48, %v4195_v1   ;;  %v4351_v58 = vpop.f32.mrf.mxu0 }
 0x61e   : >> { %v4232_v6 = vadd.f32 %v4213_v18, %v12101_v59 }
 0x61f   : >> { %v13002_v27 = vmov %v12135_v48 }
 0x620   : >> { %v12137_v0 = vadd.f32 %v4385_v10, %v4232_v6   ;;  %v4388_v54 = vpop.f32.mrf.mxu1 }
 0x622   : >> { %v4179_v60 = vpop.f32.mrf.mxu2 }
 0x623   : >> { %v4196_v28 = vadd.f32 %v4179_v60, %v12105_v55  ;;  %v9184_v60 = vld [vmem:[%s12939_s5 + $0x2b0] sm:$0xff] (%p12172_p0) }
 0x625   : >> { %v4216_v36 = vpop.f32.mrf.mxu3  ;;  %v12141_v58 = vadd.f32 %v4351_v58, %v4196_v28   ;;  %v4353_v37 = vpop.f32.mrf.mxu0  ;;  %v9192_v28 = vld [vmem:[%s12939_s5 + $0x2f0] sm:$0xff] (%p12172_p0) }
 0x626   : >> { %v4233_v5 = vadd.f32 %v4216_v36, %v12107_v29  ;;  %v9167_v36 = vld [vmem:[%s12939_s5 + $0x228] sm:$0xff] (%p12172_p0) }
 0x627   : >> { %v13003_v38 = vmov %v12141_v58 }
 0x628   : >> { %v12143_v62 = vadd.f32 %v4388_v54, %v4233_v5   ;;  %v4390_v24 = vpop.f32.mrf.mxu1  ;;  %v9175_v5 = vld [vmem:[%s12939_s5 + $0x268] sm:$0xff] (%p12172_p0) }
 0x62a   : >> { %v4181_v49 = vpop.f32.mrf.mxu2 }
 0x62b   : >> { %v4197_v59 = vadd.f32 %v4181_v49, %v4025_v31 }
 0x62d   : >> { %v4218_v33 = vpop.f32.mrf.mxu3  ;;  %v12145_v49 = vadd.f32 %v4353_v37, %v4197_v59   ;;  %v4356_v21 = vpop.f32.mrf.mxu0  ;;  %v9183_v37 = vld [vmem:[%s12939_s5 + $0x2a8] sm:$0xff] (%p12172_p0)  ;;  %v9174_v59 = vld [vmem:[%s12939_s5 + $0x260] sm:$0xff] (%p12172_p0) }
 0x62e   : >> { %v4234_v41 = vadd.f32 %v4218_v33, %v4062_v7  ;;  %v4411_v33 = vadd.f32 (%p12172_p0), %v13001_v4, %v11237_v51 }
 0x62f   : >> { %v13004_v61 = vmov %v12145_v49 }
 0x630   : >> { %v12147_v2 = vadd.f32 %v4390_v24, %v4234_v41   ;;  %v4393_v53 = vpop.f32.mrf.mxu1  ;;  %v13019_v24 = vmov %v12131_v30  ;;  %v13024_v49 = vmov %v13004_v61  ;;  %v4412_v41 = vadd.f32 (%p12172_p0), %v13002_v27, %v11237_v51 }
 0x631   : > { %v9191_v24 = vld [vmem:[%s12939_s5 + $0x2e8] sm:$0xff] (%p12172_p0)  ;;  %v9166_v49 = vld [vmem:[%s12939_s5 + $0x220] sm:$0xff] (%p12172_p0) }
 0x632   : >> { %v4184_v55 = vpop.f32.mrf.mxu2 }
 0x633   : >> { %v4198_v23 = vadd.f32 %v4184_v55, %v4026_v16  ;;  %v3685_v16 = vadd.f32 %v10451_v57, %v12087_v8  ;;  %v13018_v55 = vmov %v12137_v0 }
 0x634   : > { %v4419_v55 = vadd.f32 (%p12172_p0), %v12131_v30, %v11237_v51 }
 0x635   : >> { %v4221_v50 = vpop.f32.mrf.mxu3  ;;  %v12149_v23 = vadd.f32 %v4356_v21, %v4198_v23   ;;  %v4358_v14 = vpop.f32.mrf.mxu0  ;;  %v3857_v10 = vadd.f32 %v3847_v56, %v3685_v16  ;;  %v13016_v16 = vmov %v12147_v2  ;;  %v9193_v56 = vld [vmem:[%s12939_s5 + $0x2f8] sm:$0xff] (%p12172_p0)  ;;  %v9182_v21 = vld [vmem:[%s12939_s5 + $0x2a0] sm:$0xff] (%p12172_p0) }
 0x636   : >> { %v4235_v29 = vadd.f32 %v4221_v50, %v4063_v43  ;;  %4749 = vmatpush.bf16.msra.mxu3 (%p12172_p0), %v9193_v56  ;;  %v4421_v50 = vadd.f32 (%p12172_p0), %v12143_v62, %v11237_v51  ;;  %v9172_v16 = vld [vmem:[%s12939_s5 + $0x250] sm:$0xff] (%p12172_p0) }
 0x637   : >> { %v13005_v63 = vmov %v12149_v23 }
 0x638   : >> { %v12151_v34 = vadd.f32 %v4393_v53, %v4235_v29   ;;  %v4395_v13 = vpop.f32.mrf.mxu1  ;;  %v13023_v23 = vmov %v13005_v63  ;;  %v9190_v53 = vld [vmem:[%s12939_s5 + $0x2e0] sm:$0xff] (%p12172_p0)  ;;  %v4422_v29 = vadd.f32 (%p12172_p0), %v12147_v2, %v11237_v51  ;;  %v9173_v2 = vld [vmem:[%s12939_s5 + $0x258] sm:$0xff] (%p12172_p0) }
 0x639   : > { %v4420_v23 = vadd.f32 (%p12172_p0), %v12137_v0, %v11237_v51 }
 0x63a   : >> { %v4186_v35 = vpop.f32.mrf.mxu2  ;;  %4750 = vmatpush.bf16.msra.mxu3 (%p12172_p0), %v9192_v28  ;;  %v4423_v0 = vadd.f32 (%p12172_p0), %v12151_v34, %v11237_v51 }
 0x63b   : >> { %v4199_v31 = vadd.f32 %v4186_v35, %v4027_v9  ;;  %v3894_v9 = vadd.f32 %v3884_v17, %v3722_v45  ;;  %v9176_v17 = vld [vmem:[%s12939_s5 + $0x270] sm:$0xff] (%p12172_p0)  ;;  %v9181_v35 = vld [vmem:[%s12939_s5 + $0x298] sm:$0xff] (%p12172_p0) }
 0x63d   : >> { %v4223_v19 = vpop.f32.mrf.mxu3  ;;  %v12153_v15 = vadd.f32 %v4358_v14, %v4199_v31   ;;  %v4361_v20 = vpop.f32.mrf.mxu0  ;;  %v4066_v18 = vadd.f32 %v12125_v25, %v3894_v9  ;;  %v13015_v9 = vmov %v12151_v34  ;;  %v13017_v31 = vmov %v12143_v62  ;;  %v9177_v25 = vld [vmem:[%s12939_s5 + $0x278] sm:$0xff] (%p12172_p0) }
 0x63e   : >> { %v4236_v7 = vadd.f32 %v4223_v19, %v4064_v22  ;;  %v13027_v19 = vmov %v13001_v4  ;;  %4581 = vmatpush.bf16.msra.mxu1 (%p12172_p0), %v9177_v25  ;;  %4751 = vmatpush.bf16.msra.mxu3 (%p12172_p0), %v9191_v24  ;;  %v4413_v4 = vadd.f32 (%p12172_p0), %v13003_v38, %v11237_v51  ;;  %v4415_v14 = vadd.f32 (%p12172_p0), %v13005_v63, %v11237_v51  ;;  %v9165_v62 = vld [vmem:[%s12939_s5 + $0x218] sm:$0xff] (%p12172_p0)  ;;  %v9163_v9 = vld [vmem:[%s12939_s5 + $0x208] sm:$0xff] (%p12172_p0)  ;;  %v9186_v25 = vld [vmem:[%s12939_s5 + $0x2c0] sm:$0xff] (%p12172_p0) }
 0x63f   : >> { %v13006_v42 = vmov %v12153_v15  ;;  %v4029_v15 = vadd.f32 %v12123_v47, %v3857_v10  ;;  %v9169_v47 = vld [vmem:[%s12939_s5 + $0x238] sm:$0xff] (%p12172_p0)  ;;  %v4427_v19 = vmax.f32 (%p12172_p0), %v4411_v33, %v4412_v41 }
 0x640   : >> { %v12155_v32 = vadd.f32 %v4395_v13, %v4236_v7   ;;  %v4398_v43 = vpop.f32.mrf.mxu1  ;;  %4497 = vmatpush.bf16.msra.mxu0 (%p12172_p0), %v9169_v47  ;;  %v4416_v30 = vadd.f32 (%p12172_p0), %v13006_v42, %v11237_v51  ;;  %v9189_v31 = vld [vmem:[%s12939_s5 + $0x2d8] sm:$0xff] (%p12172_p0)  ;;  %v4428_v7 = vmax.f32 (%p12172_p0), %v4419_v55, %v4420_v23  ;;  %v9178_v47 = vld [vmem:[%s12939_s5 + $0x280] sm:$0xff] (%p12172_p0)  ;;  %v12359_v55 = vmov (%p12172_p0), 0.0  }
 0x641   : > { %v12361_v23 = vmov (%p12172_p0), 0.0  }
 0x642   : >> { %v4189_v40 = vpop.f32.mrf.mxu2  ;;  %4582 = vmatpush.bf16.msra.mxu1 (%p12172_p0), %v9176_v17  ;;  %4752 = vmatpush.bf16.msra.mxu3 (%p12172_p0), %v9190_v53  ;;  %v4429_v10 = vmax.f32 (%p12172_p0), %v4427_v19, %v4428_v7 }
 0x643   : >> { %v4200_v46 = vadd.f32 %v4189_v40, %v4028_v12  ;;  %v9164_v40 = vld [vmem:[%s12939_s5 + $0x210] sm:$0xff] (%p12172_p0) }
 0x645   : >> { %v4226_v11 = vpop.f32.mrf.mxu3  ;;  %v12161_v46 = vadd.f32 %v4361_v20, %v4200_v46   ;;  %v4363_v8 = vpop.f32.mrf.mxu0  ;;  %v4595_v20 = vmax.f32 (%p12172_p0), %v4415_v14, %v4416_v30  ;;  %v12373_v14 = vmov (%p12172_p0), 0.0   ;;  %v12375_v30 = vmov (%p12172_p0), 0.0  }
 0x646   : >> { %v4237_v48 = vadd.f32 %v4226_v11, %v4065_v44  ;;  %v9185_v44 = vld [vmem:[%s12939_s5 + $0x2b8] sm:$0xff] (%p12172_p0)  ;;  %4583 = vmatpush.bf16.msra.mxu1 (%p12172_p0), %v9175_v5  ;;  %4753 = vmatpush.bf16.msra.mxu3 (%p12172_p0), %v9189_v31 }
 0x647   : >> { %v13007_v39 = vmov %v12161_v46  ;;  %4665 = vmatpush.bf16.msra.mxu2 (%p12172_p0), %v9185_v44 }
 0x648   : >> { %v12163_v45 = vadd.f32 %v4398_v43, %v4237_v48   ;;  %v4400_v58 = vpop.f32.mrf.mxu1  ;;  %v13021_v46 = vmov %v13007_v39  ;;  %v13026_v48 = vmov %v13002_v27  ;;  %v4414_v27 = vadd.f32 (%p12172_p0), %v13004_v61, %v11237_v51 }
 0x649   : > { %v4417_v61 = vadd.f32 (%p12172_p0), %v13007_v39, %v11237_v51  ;;  %v9188_v48 = vld [vmem:[%s12939_s5 + $0x2d0] sm:$0xff] (%p12172_p0) }
 0x64a   : >> { %v13008_v22 = vmov %v12163_v45  ;;  %v4191_v1 = vpop.f32.mrf.mxu2  ;;  %4584 = vmatpush.bf16.msra.mxu1 (%p12172_p0), %v9174_v59  ;;  %4754 = vmatpush.bf16.msra.mxu3 (%p12172_p0), %v9188_v48 }
 0x64b   : >> { %v4201_v6 = vadd.f32 %v4191_v1, %v4029_v15  ;;  %v13013_v45 = vmov %v13008_v22  ;;  %v13022_v15 = vmov %v13006_v42  ;;  %4666 = vmatpush.bf16.msra.mxu2 (%p12172_p0), %v9184_v60  ;;  %v4425_v34 = vadd.f32 (%p12172_p0), %v13008_v22, %v11237_v51  ;;  %v9171_v22 = vld [vmem:[%s12939_s5 + $0x248] sm:$0xff] (%p12172_p0) }
 0x64c   : > { %v4511_v42 = vmax.f32 (%p12172_p0), %v4413_v4, %v4414_v27  ;;  %v9180_v45 = vld [vmem:[%s12939_s5 + $0x290] sm:$0xff] (%p12172_p0)  ;;  %v12363_v4 = vmov (%p12172_p0), 0.0   ;;  %v12365_v27 = vmov (%p12172_p0), 0.0  }
 0x64d   : >> { %v4228_v57 = vpop.f32.mrf.mxu3 }
 0x64e   : >> { %v4238_v12 = vadd.f32 %v4228_v57, %v4066_v18  ;;  %v12167_v57 = vadd.f32 %v4363_v8, %v4201_v6   ;;  %4585 = vmatpush.bf16.msra.mxu1 (%p12172_p0), %v9173_v2  ;;  %v9179_v18 = vld [vmem:[%s12939_s5 + $0x288] sm:$0xff] (%p12172_p0)  ;;  %v12385_v2 = vmov (%p12172_p0), 0.0  }
 0x64f   : > { %3532 = sbr.rel (!%p12172_p0) target bundleno = 1292 (0x50c), region = 239  ;;  %4667 = vmatpush.bf16.msra.mxu2 (%p12172_p0), %v9183_v37  ;;  %v9187_v6 = vld [vmem:[%s12939_s5 + $0x2c8] sm:$0xff] (%p12172_p0) }
 0x650   : >> { %v13009_v54 = vmov %v12167_v57  ;;  %v12169_v3 = vadd.f32 %v4400_v58, %v4238_v12   ;;  %v13014_v12 = vmov %v12155_v32  ;;  %v13025_v58 = vmov %v13003_v38  ;;  %4755 = vmatpush.bf16.msra.mxu3 (%p12172_p0), %v9187_v6 }
 0x651   : >> { %v13020_v57 = vmov %v13009_v54  ;;  %v4424_v38 = vadd.f32 (%p12172_p0), %v12155_v32, %v11237_v51  ;;  %v4418_v63 = vadd.f32 (%p12172_p0), %v13009_v54, %v11237_v51  ;;  %v4512_v32 = vmax.f32 (%p12172_p0), %v4421_v50, %v4422_v29  ;;  %v9162_v12 = vld [vmem:[%s12939_s5 + $0x200] sm:$0xff] (%p12172_p0) }
 0x652   : >> { %v13010_v52 = vmov %v12169_v3  ;;  %4586 = vmatpush.bf16.msra.mxu1 (%p12172_p0), %v9172_v16  ;;  %v4430_v57 = vmax.f32 (%p12172_p0), %v4429_v10, 0.0  ;;  %v9170_v58 = vld [vmem:[%s12939_s5 + $0x240] sm:$0xff] (%p12172_p0)  ;;  %v12367_v50 = vmov (%p12172_p0), 0.0   ;;  %v12371_v29 = vmov (%p12172_p0), 0.0  }
 0x653   : >> { %v13012_v3 = vmov %v13010_v52  ;;  %v4426_v13 = vadd.f32 (%p12172_p0), %v13010_v52, %v11237_v51  ;;  %4668 = vmatpush.bf16.msra.mxu2 (%p12172_p0), %v9182_v21  ;;  %v4596_v43 = vmax.f32 (%p12172_p0), %v4423_v0, %v4424_v38  ;;  %v4679_v46 = vmax.f32 (%p12172_p0), %v4417_v61, %v4418_v63 }
 0x654   : > { %v9168_v3 = vld [vmem:[%s12939_s5 + $0x230] sm:$0xff]  ;;  %v4513_v39 = vmax.f32 %v4511_v42, %v4512_v32  ;;  %v4431_v44 = vpack.c.bf16 %v4430_v57, %v4430_v57  ;;  %4756 = vmatpush.bf16.msra.mxu3 %v9186_v25  ;;  %v12377_v0 = vmov 0.0   ;;  %v12379_v38 = vmov 0.0  }
 0x655   : > { %4498 = vmatpush.bf16.msra.mxu0 %v9168_v3  ;;  %v4680_v11 = vmax.f32 %v4425_v34, %v4426_v13  ;;  %v4597_v15 = vmax.f32 %v4595_v20, %v4596_v43  ;;  %v12381_v61 = vmov 0.0   ;;  %v12387_v63 = vmov 0.0  }
 0x656   : > { %v4514_v8 = vmax.f32 %v4513_v39, 0.0  ;;  %4587 = vmatpush.bf16.msra.mxu1 %v9171_v22  ;;  %v12389_v34 = vmov 0.0  }
 0x657   : > { %4669 = vmatpush.bf16.msra.mxu2 %v9181_v35  ;;  %v4681_v1 = vmax.f32 %v4679_v46, %v4680_v11  ;;  %v4598_v54 = vmax.f32 %v4597_v15, 0.0 }
 0x658   : > { %v4515_v56 = vpack.c.bf16 %v4514_v8, %v4514_v8 }
 0x659   : > { %4499 = vmatpush.bf16.msra.mxu0 %v9167_v36  ;;  %v4682_v52 = vmax.f32 %v4681_v1, 0.0  ;;  %v4599_v3 = vpack.c.bf16 %v4598_v54, %v4598_v54 }
 0x65a   : > { %4588 = vmatpush.bf16.msra.mxu1 %v9170_v58 }
 0x65b   : > { %4670 = vmatpush.bf16.msra.mxu2 %v9180_v45  ;;  %v4683_v17 = vpack.c.bf16 %v4682_v52, %v4682_v52 }
 0x65d   : > { %4500 = vmatpush.bf16.msra.mxu0 %v9166_v49  ;;  %4589 = vmatmul.bf16.vlgmr.msra.gmra.mxu1 %v4515_v56 }
 0x65e   : > { %4757 = vmatmul.bf16.vlgmr.msra.gmra.mxu3 %v4683_v17 }
 0x65f   : > { %4671 = vmatpush.bf16.msra.mxu2 %v9179_v18 }
 0x661   : > { %4501 = vmatpush.bf16.msra.mxu0 %v9165_v62  ;;  %v12383_v62 = vmov 0.0  }
 0x663   : > { %4672 = vmatpush.bf16.msra.mxu2 %v9178_v47 }
 0x665   : > { %4502 = vmatpush.bf16.msra.mxu0 %v9164_v40 }
 0x666   : > { %4673 = vmatmul.bf16.vlgmr.msra.gmra.mxu2 %v4599_v3 }
 0x669   : > { %4503 = vmatpush.bf16.msra.mxu0 %v9163_v9 }
 0x66d   : > { %4504 = vmatpush.bf16.msra.mxu0 %v9162_v12 }
 0x670   : > { %4505 = vmatmul.bf16.vlgmr.msra.gmra.mxu0 %v4431_v44 }
 0x6da   : > { %v4590_v28 = vpop.f32.mrf.mxu1 }
 0x6e1   : > { %v4758_v24 = vpop.f32.mrf.mxu3 }
 0x6e2   : > { %v4592_v33 = vpop.f32.mrf.mxu1 }
 0x6e9   : > { %v4674_v37 = vpop.f32.mrf.mxu2  ;;  %v4760_v53 = vpop.f32.mrf.mxu3 }
 0x6ed   : > { %v4506_v60 = vpop.f32.mrf.mxu0 }
 0x6ee   : > { %v4510_v36 = vadd.f32 %v4506_v60, %v11847_v26  ;;  %v12369_v26 = vmov 0.0  }
 0x6f0   : > { %v4594_v5 = vadd.f32 %v4590_v28, %v4510_v36 }
 0x6f1   : > { %v4676_v21 = vpop.f32.mrf.mxu2 }
 0x6f2   : > { %v4678_v49 = vadd.f32 %v4674_v37, %v4594_v5 }
 0x6f4   : > { %v12357_v41 = vadd.f32 %v4758_v24, %v4678_v49 }
 0x6f5   : > { %v4508_v59 = vpop.f32.mrf.mxu0 }
 0x6f6 LB: >> { %s9194_s29 = smul.u32 320, %s10551_s23  ;;  %s10551_s23 = sphi %s12391_s23, %s4768_s23   ;;  %v10547_v34 = vphi %v12389_v34, %v13054_v34   ;;  %v10543_v63 = vphi %v12387_v63, %v13053_v63   ;;  %v10539_v2 = vphi %v12385_v2, %v13052_v2   ;;  %v10535_v62 = vphi %v12383_v62, %v13051_v62   ;;  %v10531_v61 = vphi %v12381_v61, %v13050_v61   ;;  %v10527_v38 = vphi %v12379_v38, %v13049_v38   ;;  %v10523_v0 = vphi %v12377_v0, %v13048_v0   ;;  %v10519_v30 = vphi %v12375_v30, %v13047_v30   ;;  %v10515_v14 = vphi %v12373_v14, %v13046_v14   ;;  %v10511_v29 = vphi %v12371_v29, %v13045_v29   ;;  %v10507_v26 = vphi %v12369_v26, %v13044_v26   ;;  %v10503_v50 = vphi %v12367_v50, %v13043_v50   ;;  %v10499_v27 = vphi %v12365_v27, %v13042_v27   ;;  %v10495_v4 = vphi %v12363_v4, %v13041_v4   ;;  %v10491_v23 = vphi %v12361_v23, %v13040_v23   ;;  %v10487_v55 = vphi %v12359_v55, %v13039_v55  }
 0x6f7   : >> { %s6328_s28 = smul.u32 96, %s10551_s23  ;;  %s4768_s23 = sadd.s32 1, %s10551_s23  }
 0x6f8   : >> { %s12448_s17 = scalar_lea.vmem %s12937_s3, %s9194_s29  ;;  %p12682_p1 = scmp.ge.s32.totalorder %s4768_s23, 5  }
 0x6f9   : >> { %v9202_v13 = vld [vmem:[%s12448_s17 + $0x38] sm:$0xff]  ;;  %v9201_v35 = vld [vmem:[%s12448_s17 + $0x30] sm:$0xff]  ;;  %v9200_v31 = vld [vmem:[%s12448_s17 + $0x28] sm:$0xff]  ;;  %s12459_s14 = scalar_lea.vmem [#allocation2], %s6328_s28  ;;  %s8934_s25 = sshll.u32 (%p12682_p1), %s10624_s13, 3 }
 0x6fa   : >> { %4884 = vmatpush.bf16.msra.mxu0 %v9202_v13  ;;  %9323 = vmatpush.bf16.msra.mxu2 %v9202_v13  ;;  %v9199_v19 = vld [vmem:[%s12448_s17 + $0x20] sm:$0xff]  ;;  %v9198_v7 = vld [vmem:[%s12448_s17 + $0x18] sm:$0xff]  ;;  %v9197_v42 = vld [vmem:[%s12448_s17 + $0x10] sm:$0xff]  ;;  %s6110_s23 = sshll.u32 (%p12682_p1), %s325_s27, 4  ;;  %s13055_s21 = sand.u32 (%p12682_p1), 1, %s10267_s10   ;;  %s6111_s23 = int_to_ptr.vmem [resolvable:$true] %s6110_s23 }
 0x6fb   : >> { %4921 = vmatpush.bf16.msra.mxu1 %v9202_v13  ;;  %9331 = vmatpush.bf16.msra.mxu3 %v9202_v13  ;;  %v9196_v32 = vld [vmem:[%s12448_s17 + $0x8] sm:$0xff]  ;;  %v9195_v20 = vld [vmem:[%s12448_s17] sm:$0xff]  ;;  %v9210_v39 = vld [vmem:[%s12448_s17 + $0x78] sm:$0xff]  ;;  %s6098_s22 = scalar_lea.sflag (%p12682_p1), [#allocation4], %s13055_s21 }
 0x6fc   : >> { %v8392_v40 = vld [vmem:[%s12459_s14 + $0x240] sm:$0xff]  ;;  %v12463_v16 = vld [vmem:[%s12459_s14 + $0x248] sm:$0xff]  ;;  %v9218_v18 = vld [vmem:[%s12448_s17 + $0xb8] sm:$0xff] }
 0x6fd   : >> { %v12466_v43 = vld [vmem:[%s12459_s14 + $0x260] sm:$0xff]  ;;  %v12469_v46 = vld [vmem:[%s12459_s14 + $0x268] sm:$0xff]  ;;  %v4819_v9 = vpack.c.bf16 %v12463_v16, %v8392_v40  ;;  %v9209_v6 = vld [vmem:[%s12448_s17 + $0x70] sm:$0xff] }
 0x6fe   : >> { %4885 = vmatpush.bf16.msra.mxu0 %v9201_v35  ;;  %9324 = vmatpush.bf16.msra.mxu2 %v9201_v35  ;;  %v8401_v11 = vld [vmem:[%s12459_s14 + $0x2a0] sm:$0xff]  ;;  %v12473_v45 = vld [vmem:[%s12459_s14 + $0x2a8] sm:$0xff]  ;;  %v12485_v22 = vpack.c.bf16 %v12469_v46, %v12466_v43  ;;  %v9217_v57 = vld [vmem:[%s12448_s17 + $0xb0] sm:$0xff] }
 0x6ff   : >> { %4922 = vmatpush.bf16.msra.mxu1 %v9201_v35  ;;  %9332 = vmatpush.bf16.msra.mxu3 %v9201_v35  ;;  %v12476_v48 = vld [vmem:[%s12459_s14 + $0x2c0] sm:$0xff]  ;;  %v12479_v10 = vld [vmem:[%s12459_s14 + $0x2c8] sm:$0xff]  ;;  %v4832_v15 = vpack.c.bf16 %v12473_v45, %v8401_v11  ;;  %v8394_v52 = vld [vmem:[%s12459_s14 + $0x250] sm:$0xff] }
 0x700   : >> { %v12490_v1 = vpack.c.bf16 %v12479_v10, %v12476_v48  ;;  %v9208_v8 = vld [vmem:[%s12448_s17 + $0x68] sm:$0xff]  ;;  %v9207_v58 = vld [vmem:[%s12448_s17 + $0x60] sm:$0xff]  ;;  %v12503_v47 = vld [vmem:[%s12459_s14 + $0x258] sm:$0xff] }
 0x701   : >> { %v9216_v12 = vld [vmem:[%s12448_s17 + $0xa8] sm:$0xff]  ;;  %v9215_v54 = vld [vmem:[%s12448_s17 + $0xa0] sm:$0xff]  ;;  %v12506_v25 = vld [vmem:[%s12459_s14 + $0x270] sm:$0xff]  ;;  %v4820_v36 = vpack.c.bf16 %v12503_v47, %v8394_v52 }
 0x702   : >> { %4886 = vmatpush.bf16.msra.mxu0 %v9200_v31  ;;  %9325 = vmatpush.bf16.msra.mxu2 %v9200_v31  ;;  %v12509_v44 = vld [vmem:[%s12459_s14 + $0x278] sm:$0xff]  ;;  %v8403_v56 = vld [vmem:[%s12459_s14 + $0x2b0] sm:$0xff]  ;;  %v9204_v21 = vld [vmem:[%s12448_s17 + $0x48] sm:$0xff] }
 0x703   : >> { %4923 = vmatpush.bf16.msra.mxu1 %v9200_v31  ;;  %9333 = vmatpush.bf16.msra.mxu3 %v9200_v31  ;;  %v12513_v3 = vld [vmem:[%s12459_s14 + $0x2b8] sm:$0xff]  ;;  %v12516_v17 = vld [vmem:[%s12459_s14 + $0x2d0] sm:$0xff]  ;;  %v12525_v5 = vpack.c.bf16 %v12509_v44, %v12506_v25  ;;  %v9212_v53 = vld [vmem:[%s12448_s17 + $0x88] sm:$0xff] }
 0x704   : >> { %v12519_v60 = vld [vmem:[%s12459_s14 + $0x2d8] sm:$0xff]  ;;  %v4833_v37 = vpack.c.bf16 %v12513_v3, %v8403_v56  ;;  %v9205_v59 = vld [vmem:[%s12448_s17 + $0x50] sm:$0xff]  ;;  %v9203_v13 = vld [vmem:[%s12448_s17 + $0x40] sm:$0xff] }
 0x705   : >> { %v9206_v28 = vld [vmem:[%s12448_s17 + $0x58] sm:$0xff]  ;;  %v12530_v24 = vpack.c.bf16 %v12519_v60, %v12516_v17  ;;  %v9213_v33 = vld [vmem:[%s12448_s17 + $0x90] sm:$0xff]  ;;  %v9211_v31 = vld [vmem:[%s12448_s17 + $0x80] sm:$0xff] }
 0x706   : >> { %4887 = vmatpush.bf16.msra.mxu0 %v9199_v19  ;;  %9326 = vmatpush.bf16.msra.mxu2 %v9199_v19  ;;  %v9214_v49 = vld [vmem:[%s12448_s17 + $0x98] sm:$0xff]  ;;  %v9224_v40 = vld [vmem:[%s12448_s17 + $0xe8] sm:$0xff]  ;;  %v9223_v11 = vld [vmem:[%s12448_s17 + $0xe0] sm:$0xff] }
 0x707   : >> { %4924 = vmatpush.bf16.msra.mxu1 %v9199_v19  ;;  %9334 = vmatpush.bf16.msra.mxu3 %v9199_v19  ;;  %v9226_v35 = vld [vmem:[%s12448_s17 + $0xf8] sm:$0xff] }
 0x708   : >> { %v9234_v19 = vld [vmem:[%s12448_s17 + $0x138] sm:$0xff] }
 0x70a   : >> { %4888 = vmatpush.bf16.msra.mxu0 %v9198_v7  ;;  %9327 = vmatpush.bf16.msra.mxu2 %v9198_v7 }
 0x70b   : >> { %4925 = vmatpush.bf16.msra.mxu1 %v9198_v7  ;;  %9335 = vmatpush.bf16.msra.mxu3 %v9198_v7  ;;  %v4991_v7 = vpack.c.bf16 %v8394_v52, %v12463_v16  ;;  %v9232_v16 = vld [vmem:[%s12448_s17 + $0x128] sm:$0xff]  ;;  %v8466_v52 = vld [vmem:[%s12459_s14 + $0x280] sm:$0xff] }
 0x70e   : >> { %4889 = vmatpush.bf16.msra.mxu0 %v9197_v42  ;;  %9328 = vmatpush.bf16.msra.mxu2 %v9197_v42 }
 0x70f   : >> { %4926 = vmatpush.bf16.msra.mxu1 %v9197_v42  ;;  %9336 = vmatpush.bf16.msra.mxu3 %v9197_v42  ;;  %v9225_v42 = vld [vmem:[%s12448_s17 + $0xf0] sm:$0xff] }
 0x712   : >> { %4890 = vmatpush.bf16.msra.mxu0 %v9196_v32  ;;  %9329 = vmatpush.bf16.msra.mxu2 %v9196_v32 }
 0x713   : >> { %4927 = vmatpush.bf16.msra.mxu1 %v9196_v32  ;;  %9337 = vmatpush.bf16.msra.mxu3 %v9196_v32  ;;  %v5004_v32 = vpack.c.bf16 %v8403_v56, %v12473_v45  ;;  %v9231_v45 = vld [vmem:[%s12448_s17 + $0x120] sm:$0xff]  ;;  %v8533_v56 = vld [vmem:[%s12459_s14 + $0x288] sm:$0xff] }
 0x716   : >> { %4891 = vmatpush.bf16.msra.mxu0 %v9195_v20  ;;  %9330 = vmatpush.bf16.msra.mxu2 %v9195_v20 }
 0x717   : >> { %4928 = vmatpush.bf16.msra.mxu1 %v9195_v20  ;;  %9338 = vmatpush.bf16.msra.mxu3 %v9195_v20  ;;  %v9233_v20 = vld [vmem:[%s12448_s17 + $0x130] sm:$0xff] }
 0x719   : >> { %4892 = vmatmul.bf16.vlgmr.msra.gmra.mxu0 %v4819_v9  ;;  %4902 = vmatmul.bf16.vlgmr.msra.gmra.mxu2 %v12485_v22  ;;  %v9230_v9 = vld [vmem:[%s12448_s17 + $0x118] sm:$0xff] }
 0x71a   : >> { %5056 = vmatpush.bf16.msrb.mxu2 %v9210_v39  ;;  %4929 = vmatmul.bf16.vlgmr.msra.gmra.mxu1 %v4832_v15  ;;  %v4992_v15 = vpack.c.bf16 %v12466_v43, %v12503_v47  ;;  %v9220_v43 = vld [vmem:[%s12448_s17 + $0xc8] sm:$0xff]  ;;  %v8475_v47 = vld [vmem:[%s12459_s14 + $0x2e0] sm:$0xff] }
 0x71b   : >> { %5093 = vmatpush.bf16.msrb.mxu3 %v9210_v39  ;;  %5228 = vmatpush.bf16.msrb.mxu0 %v9218_v18  ;;  %v9222_v39 = vld [vmem:[%s12448_s17 + $0xd8] sm:$0xff] }
 0x71c   : >> { %4939 = vmatmul.bf16.vlgmr.msra.gmra.mxu3 %v12490_v1  ;;  %5265 = vmatpush.bf16.msrb.mxu1 %v9218_v18  ;;  %v9221_v18 = vld [vmem:[%s12448_s17 + $0xd0] sm:$0xff] }
 0x71e   : >> { %5057 = vmatpush.bf16.msrb.mxu2 %v9209_v6 }
 0x71f   : >> { %5094 = vmatpush.bf16.msrb.mxu3 %v9209_v6  ;;  %5229 = vmatpush.bf16.msrb.mxu0 %v9217_v57  ;;  %v5005_v6 = vpack.c.bf16 %v12476_v48, %v12513_v3  ;;  %v9227_v48 = vld [vmem:[%s12448_s17 + $0x100] sm:$0xff]  ;;  %v8542_v3 = vld [vmem:[%s12459_s14 + $0x2e8] sm:$0xff] }
 0x720   : >> { %5266 = vmatpush.bf16.msrb.mxu1 %v9217_v57  ;;  %v9229_v57 = vld [vmem:[%s12448_s17 + $0x110] sm:$0xff] }
 0x722   : >> { %5058 = vmatpush.bf16.msrb.mxu2 %v9208_v8 }
 0x723   : >> { %5095 = vmatpush.bf16.msrb.mxu3 %v9208_v8  ;;  %5230 = vmatpush.bf16.msrb.mxu0 %v9216_v12  ;;  %v9219_v8 = vld [vmem:[%s12448_s17 + $0xc0] sm:$0xff] }
 0x724   : >> { %5267 = vmatpush.bf16.msrb.mxu1 %v9216_v12  ;;  %v9228_v12 = vld [vmem:[%s12448_s17 + $0x108] sm:$0xff]  ;;  %s9957_s17 = scalar_lea.hbm (%p12682_p1), %s12943_s9, 16 }
 0x726   : >> { %5059 = vmatpush.bf16.msrb.mxu2 %v9207_v58 }
 0x727   : >> { %5096 = vmatpush.bf16.msrb.mxu3 %v9207_v58  ;;  %5231 = vmatpush.bf16.msrb.mxu0 %v9215_v54  ;;  %v4993_v58 = vpack.c.bf16 %v12506_v25, %v12469_v46  ;;  %v5166_v46 = vpack.c.bf16 %v8533_v56, %v8466_v52  ;;  %v5179_v25 = vpack.c.bf16 %v8542_v3, %v8475_v47 }
 0x728   : >> { %5268 = vmatpush.bf16.msrb.mxu1 %v9215_v54  ;;  %v5006_v54 = vpack.c.bf16 %v12516_v17, %v12479_v10 }
 0x729   : >> { %4897 = vmatmul.bf16.gmra.mxu0 %v4820_v36  ;;  %4907 = vmatmul.bf16.gmra.mxu2 %v12525_v5 }
 0x72a   : >> { %5060 = vmatpush.bf16.msrb.mxu2 %v9206_v28  ;;  %4934 = vmatmul.bf16.gmra.mxu1 %v4833_v37 }
 0x72b   : >> { %5097 = vmatpush.bf16.msrb.mxu3 %v9206_v28  ;;  %5232 = vmatpush.bf16.msrb.mxu0 %v9214_v49  ;;  %v4994_v28 = vpack.c.bf16 %v8466_v52, %v12509_v44 }
 0x72c   : >> { %4944 = vmatmul.bf16.gmra.mxu3 %v12530_v24  ;;  %5269 = vmatpush.bf16.msrb.mxu1 %v9214_v49  ;;  %v8609_v49 = vld [vmem:[%s12459_s14 + $0x2f0] sm:$0xff] }
 0x72e   : >> { %5061 = vmatpush.bf16.msrb.mxu2 %v9205_v59 }
 0x72f   : >> { %5098 = vmatpush.bf16.msrb.mxu3 %v9205_v59  ;;  %5233 = vmatpush.bf16.msrb.mxu0 %v9213_v33  ;;  %v8667_v59 = vld [vmem:[%s12459_s14 + $0x298] sm:$0xff] }
 0x730   : >> { %5270 = vmatpush.bf16.msrb.mxu1 %v9213_v33 }
 0x732   : >> { %5062 = vmatpush.bf16.msrb.mxu2 %v9204_v21 }
 0x733   : >> { %5099 = vmatpush.bf16.msrb.mxu3 %v9204_v21  ;;  %5234 = vmatpush.bf16.msrb.mxu0 %v9212_v53 }
 0x734   : >> { %5271 = vmatpush.bf16.msrb.mxu1 %v9212_v53 }
 0x736   : >> { %5063 = vmatpush.bf16.msrb.mxu2 %v9203_v13 }
 0x737   : >> { %5100 = vmatpush.bf16.msrb.mxu3 %v9203_v13  ;;  %5235 = vmatpush.bf16.msrb.mxu0 %v9211_v31  ;;  %v5351_v13 = vpack.c.bf16 %v8609_v49, %v8542_v3 }
 0x738   : >> { %5272 = vmatpush.bf16.msrb.mxu1 %v9211_v31 }
 0x739   : >> { %5064 = vmatmul.bf16.vlgmr.msrb.gmra.mxu2 %v4991_v7 }
 0x73a   : >> { %5400 = vmatpush.bf16.msra.mxu2 %v9226_v35  ;;  %5236 = vmatmul.bf16.vlgmr.msrb.gmra.mxu0 %v4820_v36  ;;  %v5007_v36 = vpack.c.bf16 %v8475_v47, %v12519_v60 }
 0x73b   : >> { %5437 = vmatpush.bf16.msra.mxu3 %v9226_v35  ;;  %5572 = vmatpush.bf16.msra.mxu0 %v9234_v19 }
 0x73c   : >> { %5609 = vmatpush.bf16.msra.mxu1 %v9234_v19  ;;  %5101 = vmatmul.bf16.vlgmr.msrb.gmra.mxu3 %v5004_v32 }
 0x73d   : >> { %5273 = vmatmul.bf16.vlgmr.msrb.gmra.mxu1 %v4833_v37  ;;  %v8600_v37 = vld [vmem:[%s12459_s14 + $0x290] sm:$0xff] }
 0x73e   : >> { %5401 = vmatpush.bf16.msra.mxu2 %v9225_v42  ;;  %v5510_v35 = vpack.c.bf16 %v8667_v59, %v8600_v37 }
 0x73f   : >> { %5438 = vmatpush.bf16.msra.mxu3 %v9225_v42  ;;  %5573 = vmatpush.bf16.msra.mxu0 %v9233_v20 }
 0x740   : >> { %5610 = vmatpush.bf16.msra.mxu1 %v9233_v20 }
 0x742   : >> { %5402 = vmatpush.bf16.msra.mxu2 %v9224_v40 }
 0x743   : >> { %5439 = vmatpush.bf16.msra.mxu3 %v9224_v40  ;;  %5574 = vmatpush.bf16.msra.mxu0 %v9232_v16 }
 0x744   : >> { %5611 = vmatpush.bf16.msra.mxu1 %v9232_v16 }
 0x746   : >> { %5403 = vmatpush.bf16.msra.mxu2 %v9223_v11 }
 0x747   : >> { %5440 = vmatpush.bf16.msra.mxu3 %v9223_v11  ;;  %5575 = vmatpush.bf16.msra.mxu0 %v9231_v45 }
 0x748   : >> { %5612 = vmatpush.bf16.msra.mxu1 %v9231_v45 }
 0x749   : >> { %5069 = vmatmul.bf16.gmra.mxu2 %v4992_v15 }
 0x74a   : >> { %5404 = vmatpush.bf16.msra.mxu2 %v9222_v39  ;;  %5241 = vmatmul.bf16.gmra.mxu0 %v12485_v22 }
 0x74b   : >> { %5441 = vmatpush.bf16.msra.mxu3 %v9222_v39  ;;  %5576 = vmatpush.bf16.msra.mxu0 %v9230_v9 }
 0x74c   : >> { %5613 = vmatpush.bf16.msra.mxu1 %v9230_v9  ;;  %5106 = vmatmul.bf16.gmra.mxu3 %v5005_v6 }
 0x74d   : >> { %5278 = vmatmul.bf16.gmra.mxu1 %v12490_v1 }
 0x74e   : >> { %5405 = vmatpush.bf16.msra.mxu2 %v9221_v18 }
 0x74f   : >> { %5442 = vmatpush.bf16.msra.mxu3 %v9221_v18  ;;  %5577 = vmatpush.bf16.msra.mxu0 %v9229_v57 }
 0x750   : >> { %5614 = vmatpush.bf16.msra.mxu1 %v9229_v57 }
 0x752   : >> { %5406 = vmatpush.bf16.msra.mxu2 %v9220_v43 }
 0x753   : >> { %5443 = vmatpush.bf16.msra.mxu3 %v9220_v43  ;;  %5578 = vmatpush.bf16.msra.mxu0 %v9228_v12 }
 0x754   : >> { %5615 = vmatpush.bf16.msra.mxu1 %v9228_v12 }
 0x756   : >> { %5407 = vmatpush.bf16.msra.mxu2 %v9219_v8 }
 0x757   : >> { %5444 = vmatpush.bf16.msra.mxu3 %v9219_v8  ;;  %5579 = vmatpush.bf16.msra.mxu0 %v9227_v48 }
 0x758   : >> { %5616 = vmatpush.bf16.msra.mxu1 %v9227_v48 }
 0x759   : >> { %5074 = vmatmul.bf16.gmra.mxu2 %v4993_v58 }
 0x75a   : >> { %5246 = vmatmul.bf16.gmra.mxu0 %v12525_v5 }
 0x75c   : >> { %5111 = vmatmul.bf16.gmra.mxu3 %v5006_v54 }
 0x75d   : >> { %5283 = vmatmul.bf16.gmra.mxu1 %v12530_v24 }
 0x769   : >> { %5079 = vmatmul.bf16.gmra.mxu2 %v4994_v28 }
 0x76a   : >> { %5251 = vmatmul.bf16.gmra.mxu0 %v5166_v46 }
 0x76c   : >> { %5116 = vmatmul.bf16.gmra.mxu3 %v5007_v36 }
 0x76d   : >> { %5288 = vmatmul.bf16.gmra.mxu1 %v5179_v25 }
 0x779   : >> { %5408 = vmatmul.bf16.vlgmr.msra.gmra.mxu2 %v4992_v15 }
 0x77a   : >> { %5580 = vmatmul.bf16.vlgmr.msra.gmra.mxu0 %v12485_v22 }
 0x77c   : >> { %5445 = vmatmul.bf16.vlgmr.msra.gmra.mxu3 %v5005_v6 }
 0x77d   : >> { %5617 = vmatmul.bf16.vlgmr.msra.gmra.mxu1 %v12490_v1 }
 0x789   : >> { %5413 = vmatmul.bf16.gmra.mxu2 %v4993_v58 }
 0x78a   : >> { %5585 = vmatmul.bf16.gmra.mxu0 %v12525_v5  ;;  %v8676_v5 = vld [vmem:[%s12459_s14 + $0x2f8] sm:$0xff]  ;;  %s6108_s14 = scalar_lea.hbm (%p12682_p1), %s12943_s9, %s8934_s25 }
 0x78b   : >> { %v5523_v19 = vpack.c.bf16 %v8676_v5, %v8609_v49  ;;  %s6112_s16 = sshll.u32 (%p12682_p1), %s6108_s14, 4  ;;  %s6113_s16 = int_to_ptr.hbm [resolvable:$true] %s6112_s16 }
 0x78c   : >> { %5450 = vmatmul.bf16.gmra.mxu3 %v5006_v54  ;;  %s9951_s29 = sshra.s32 (%p12682_p1), %s6113_s16, 4  ;;  %s9952_s29 = int_to_ptr.hbm [resolvable:$true] %s9951_s29 }
 0x78d   : >> { %5622 = vmatmul.bf16.gmra.mxu1 %v12530_v24  ;;  %v5338_v24 = vpack.c.bf16 %v8600_v37, %v8533_v56  ;;  %s9953_s24 = scalar_lea.hbm (%p12682_p1), %s9952_s29, 8  ;;  %p9958_p7 = scmp.lt.s32.totalorder (%p12682_p1), %s9952_s29, %s12943_s9 }
 0x78e   : > { %p9954_p2 = scmp.ne.s32.totalorder (%p12682_p1), %s9952_s29, %s9953_s24  ;;  %p9959_p8 = scmp.lt.s32.totalorder (%p12682_p1), %s9957_s17, %s9953_s24 }
 0x790   : > { %p9955_p3 = pnand (%p12682_p1), %p9954_p2, %p10641_p5  ;;  %p9960_p9 = por (%p12682_p1), %p9959_p8, %p9958_p7 }
 0x792   : > { %p9956_p4 = pneg (%p12682_p1), %p9955_p3 }
 0x794   : > { %p9961_p10 = pnand (%p12682_p1), %p9960_p9, %p9956_p4 }
 0x796   : >> { %v4893_v10 = vpop.f32.mrf.mxu0 }
 0x797   : >> { %v4930_v44 = vpop.f32.mrf.mxu1  ;;  %v4913_v39 = vadd.f32 %v10547_v34, %v4893_v10 }
 0x798   : >> { %v4950_v9 = vadd.f32 %v10515_v14, %v4930_v44 }
 0x799   : >> { %5418 = vmatmul.bf16.gmra.mxu2 %v4994_v28 }
 0x79a   : >> { %5590 = vmatmul.bf16.gmra.mxu0 %v5166_v46 }
 0x79c   : >> { %5455 = vmatmul.bf16.gmra.mxu3 %v5007_v36  ;;  %v12581_v17 = vpop.f32.mrf.mxu2 }
 0x79d   : >> { %5627 = vmatmul.bf16.gmra.mxu1 %v5179_v25 }
 0x79e   : >> { %v4895_v1 = vpop.f32.mrf.mxu0 }
 0x79f   : >> { %v12583_v22 = vpop.f32.mrf.mxu3  ;;  %v4932_v60 = vpop.f32.mrf.mxu1  ;;  %v4914_v58 = vadd.f32 %v10543_v63, %v4895_v1 }
 0x7a0   : >> { %v4951_v54 = vadd.f32 %v10511_v29, %v4932_v60 }
 0x7a4   : >> { %v12588_v33 = vpop.f32.mrf.mxu2 }
 0x7a6   : >> { %v4898_v53 = vpop.f32.mrf.mxu0 }
 0x7a7   : >> { %v12591_v21 = vpop.f32.mrf.mxu3  ;;  %v4935_v31 = vpop.f32.mrf.mxu1  ;;  %v4915_v46 = vadd.f32 %v10539_v2, %v4898_v53 }
 0x7a8   : >> { %v4952_v25 = vadd.f32 %v10507_v26, %v4935_v31 }
 0x7a9   : >> { %5423 = vmatmul.bf16.gmra.mxu2 %v5338_v24 }
 0x7aa   : >> { %5595 = vmatmul.bf16.gmra.mxu0 %v5510_v35 }
 0x7ac   : >> { %5460 = vmatmul.bf16.gmra.mxu3 %v5351_v13  ;;  %v12593_v7 = vpop.f32.mrf.mxu2 }
 0x7ad   : >> { %5632 = vmatmul.bf16.gmra.mxu1 %v5523_v19 }
 0x7ae   : >> { %v4900_v32 = vpop.f32.mrf.mxu0 }
 0x7af   : >> { %v12595_v42 = vpop.f32.mrf.mxu3  ;;  %v4937_v20 = vpop.f32.mrf.mxu1  ;;  %v4916_v59 = vadd.f32 %v10535_v62, %v4900_v32 }
 0x7b0   : >> { %v4953_v5 = vadd.f32 %v10503_v50, %v4937_v20 }
 0x7b4   : >> { %v12597_v40 = vpop.f32.mrf.mxu2 }
 0x7b7   : >> { %v12599_v16 = vpop.f32.mrf.mxu3  ;;  %v5237_v11 = vpop.f32.mrf.mxu0 }
 0x7ba   : >> { %v5274_v45 = vpop.f32.mrf.mxu1 }
 0x7bc   : >> { %v5065_v15 = vpop.f32.mrf.mxu2 }
 0x7bd   : >> { %v5085_v18 = vadd.f32 %v5065_v15, %v4913_v39 }
 0x7bf   : >> { %v5102_v6 = vpop.f32.mrf.mxu3  ;;  %v5239_v57 = vpop.f32.mrf.mxu0  ;;  %v12603_v8 = vadd.f32 %v5237_v11, %v5085_v18  ;;  %v4917_v11 = vadd.f32 %v10531_v61, %v12581_v17 }
 0x7c0   : >> { %v5122_v43 = vadd.f32 %v5102_v6, %v4950_v9  ;;  %v4918_v6 = vadd.f32 %v10527_v38, %v12588_v33 }
 0x7c2   : >> { %v5276_v12 = vpop.f32.mrf.mxu1  ;;  %v12605_v48 = vadd.f32 %v5274_v45, %v5122_v43  ;;  %v4954_v45 = vadd.f32 %v10499_v27, %v12583_v22  ;;  %v4955_v43 = vadd.f32 %v10495_v4, %v12591_v21 }
 0x7c4   : >> { %v5067_v52 = vpop.f32.mrf.mxu2 }
 0x7c5   : >> { %v5086_v47 = vadd.f32 %v5067_v52, %v4914_v58  ;;  %v4919_v52 = vadd.f32 %v10523_v0, %v12593_v7 }
 0x7c7   : >> { %v5104_v56 = vpop.f32.mrf.mxu3  ;;  %v5242_v3 = vpop.f32.mrf.mxu0  ;;  %v12609_v14 = vadd.f32 %v5239_v57, %v5086_v47  ;;  %v4956_v47 = vadd.f32 %v10491_v23, %v12595_v42 }
 0x7c8   : >> { %v5123_v34 = vadd.f32 %v5104_v56, %v4951_v54 }
 0x7ca   : >> { %v5279_v28 = vpop.f32.mrf.mxu1  ;;  %v12611_v36 = vadd.f32 %v5276_v12, %v5123_v34 }
 0x7cc   : >> { %v5070_v10 = vpop.f32.mrf.mxu2 }
 0x7cd   : >> { %v5087_v44 = vadd.f32 %v5070_v10, %v4915_v46 }
 0x7cf   : >> { %v5107_v37 = vpop.f32.mrf.mxu3  ;;  %v5244_v1 = vpop.f32.mrf.mxu0  ;;  %v12615_v29 = vadd.f32 %v5242_v3, %v5087_v44 }
 0x7d0   : >> { %v5124_v63 = vadd.f32 %v5107_v37, %v4952_v25 }
 0x7d2   : >> { %v5281_v60 = vpop.f32.mrf.mxu1  ;;  %v12617_v49 = vadd.f32 %v5279_v28, %v5124_v63 }
 0x7d4   : >> { %v5072_v24 = vpop.f32.mrf.mxu2 }
 0x7d5   : >> { %v5088_v13 = vadd.f32 %v5072_v24, %v4916_v59 }
 0x7d7   : >> { %v5109_v35 = vpop.f32.mrf.mxu3  ;;  %v5247_v53 = vpop.f32.mrf.mxu0  ;;  %v5260_v26 = vadd.f32 %v5244_v1, %v5088_v13 }
 0x7d8   : >> { %v5125_v2 = vadd.f32 %v5109_v35, %v4953_v5 }
 0x7da   : >> { %v5284_v31 = vpop.f32.mrf.mxu1  ;;  %v5297_v19 = vadd.f32 %v5281_v60, %v5125_v2 }
 0x7dc   : >> { %v5075_v39 = vpop.f32.mrf.mxu2 }
 0x7dd   : >> { %v5089_v9 = vadd.f32 %v5075_v39, %v4917_v11 }
 0x7df   : >> { %v5112_v15 = vpop.f32.mrf.mxu3  ;;  %v5249_v32 = vpop.f32.mrf.mxu0  ;;  %v5261_v50 = vadd.f32 %v5247_v53, %v5089_v9 }
 0x7e0   : >> { %v5126_v62 = vadd.f32 %v5112_v15, %v4954_v45 }
 0x7e2   : >> { %v5286_v20 = vpop.f32.mrf.mxu1  ;;  %v5298_v18 = vadd.f32 %v5284_v31, %v5126_v62 }
 0x7e4   : >> { %v5077_v57 = vpop.f32.mrf.mxu2 }
 0x7e5   : >> { %v5090_v12 = vadd.f32 %v5077_v57, %v4918_v6 }
 0x7e7   : >> { %v5114_v61 = vpop.f32.mrf.mxu3  ;;  %v5252_v58 = vpop.f32.mrf.mxu0  ;;  %v5262_v27 = vadd.f32 %v5249_v32, %v5090_v12 }
 0x7e8   : >> { %v5127_v17 = vadd.f32 %v5114_v61, %v4955_v43 }
 0x7ea   : >> { %v5289_v22 = vpop.f32.mrf.mxu1  ;;  %v5299_v54 = vadd.f32 %v5286_v20, %v5127_v17 }
 0x7ec   : >> { %v5080_v56 = vpop.f32.mrf.mxu2 }
 0x7ed   : >> { %v5091_v34 = vadd.f32 %v5080_v56, %v4919_v52 }
 0x7ef   : >> { %v5117_v38 = vpop.f32.mrf.mxu3  ;;  %v12633_v3 = vpop.f32.mrf.mxu0  ;;  %v5263_v4 = vadd.f32 %v5252_v58, %v5091_v34 }
 0x7f0   : >> { %v5128_v33 = vadd.f32 %v5117_v38, %v4956_v47 }
 0x7f2   : >> { %v12635_v21 = vpop.f32.mrf.mxu1  ;;  %v5300_v28 = vadd.f32 %v5289_v22, %v5128_v33 }
 0x7f4   : >> { %v5082_v46 = vpop.f32.mrf.mxu2 }
 0x7f7   : >> { %v5119_v25 = vpop.f32.mrf.mxu3  ;;  %v5581_v10 = vpop.f32.mrf.mxu0 }
 0x7fa   : >> { %v5618_v44 = vpop.f32.mrf.mxu1 }
 0x7fc   : >> { %v5409_v37 = vpop.f32.mrf.mxu2 }
 0x7fd   : >> { %v5429_v0 = vadd.f32 %v5409_v37, %v12603_v8 }
 0x7ff   : >> { %v5446_v7 = vpop.f32.mrf.mxu3  ;;  %v12639_v34 = vadd.f32 %v5581_v10, %v5429_v0   ;;  %v5583_v63 = vpop.f32.mrf.mxu0 }
 0x800   : >> { %v5466_v23 = vadd.f32 %v5446_v7, %v12605_v48 }
 0x801   : >> { %v13028_v42 = vmov %v12639_v34 }
 0x802   : >> { %v12641_v1 = vadd.f32 %v5618_v44, %v5466_v23   ;;  %v5620_v60 = vpop.f32.mrf.mxu1  ;;  %v4957_v23 = vadd.f32 %v10487_v55, %v12599_v16 }
 0x804   : >> { %v5411_v59 = vpop.f32.mrf.mxu2 }
 0x805   : >> { %v5430_v5 = vadd.f32 %v5411_v59, %v12609_v14 }
 0x807   : >> { %v5448_v24 = vpop.f32.mrf.mxu3  ;;  %v12645_v63 = vadd.f32 %v5583_v63, %v5430_v5   ;;  %v5586_v2 = vpop.f32.mrf.mxu0 }
 0x808   : >> { %v5467_v13 = vadd.f32 %v5448_v24, %v12611_v36 }
 0x809   : >> { %v13029_v35 = vmov %v12645_v63 }
 0x80a   : >> { %v12647_v53 = vadd.f32 %v5620_v60, %v5467_v13   ;;  %v5623_v8 = vpop.f32.mrf.mxu1 }
 0x80c   : >> { %v5414_v31 = vpop.f32.mrf.mxu2 }
 0x80d   : >> { %v5431_v48 = vadd.f32 %v5414_v31, %v12615_v29  ;;  %v9257_v31 = vld [vmem:[%s12939_s5 + $0x3b0] sm:$0xff] (%p12682_p1) }
 0x80f   : >> { %v5451_v11 = vpop.f32.mrf.mxu3  ;;  %v12651_v2 = vadd.f32 %v5586_v2, %v5431_v48   ;;  %v5588_v9 = vpop.f32.mrf.mxu0  ;;  %v9265_v48 = vld [vmem:[%s12939_s5 + $0x3f0] sm:$0xff] (%p12682_p1) }
 0x810   : >> { %v5468_v45 = vadd.f32 %v5451_v11, %v12617_v49  ;;  %v9240_v11 = vld [vmem:[%s12939_s5 + $0x328] sm:$0xff] (%p12682_p1) }
 0x811   : >> { %v13030_v39 = vmov %v12651_v2 }
 0x812   : >> { %v12653_v15 = vadd.f32 %v5623_v8, %v5468_v45   ;;  %v5625_v14 = vpop.f32.mrf.mxu1  ;;  %v9248_v45 = vld [vmem:[%s12939_s5 + $0x368] sm:$0xff] (%p12682_p1) }
 0x814   : >> { %v5416_v62 = vpop.f32.mrf.mxu2 }
 0x815   : >> { %v5432_v36 = vadd.f32 %v5416_v62, %v5260_v26 }
 0x817   : >> { %v5453_v32 = vpop.f32.mrf.mxu3  ;;  %v12655_v62 = vadd.f32 %v5588_v9, %v5432_v36   ;;  %v5591_v57 = vpop.f32.mrf.mxu0  ;;  %v9256_v9 = vld [vmem:[%s12939_s5 + $0x3a8] sm:$0xff] (%p12682_p1)  ;;  %v9247_v36 = vld [vmem:[%s12939_s5 + $0x360] sm:$0xff] (%p12682_p1) }
 0x818   : >> { %v5469_v20 = vadd.f32 %v5453_v32, %v5297_v19  ;;  %v5646_v32 = vadd.f32 (%p12682_p1), %v13028_v42, %v11237_v51 }
 0x819   : >> { %v13031_v6 = vmov %v12655_v62 }
 0x81a   : >> { %v12657_v43 = vadd.f32 %v5625_v14, %v5469_v20   ;;  %v5628_v12 = vpop.f32.mrf.mxu1  ;;  %v13046_v14 = vmov %v12641_v1  ;;  %v13051_v62 = vmov %v13031_v6  ;;  %v5647_v20 = vadd.f32 (%p12682_p1), %v13029_v35, %v11237_v51 }
 0x81b   : > { %v9264_v14 = vld [vmem:[%s12939_s5 + $0x3e8] sm:$0xff] (%p12682_p1)  ;;  %v9239_v62 = vld [vmem:[%s12939_s5 + $0x320] sm:$0xff] (%p12682_p1) }
 0x81c   : >> { %v5419_v29 = vpop.f32.mrf.mxu2 }
 0x81d   : >> { %v5433_v61 = vadd.f32 %v5419_v29, %v5261_v50  ;;  %v4920_v50 = vadd.f32 %v10519_v30, %v12597_v40  ;;  %v13045_v29 = vmov %v12647_v53 }
 0x81e   : > { %v5654_v29 = vadd.f32 (%p12682_p1), %v12641_v1, %v11237_v51 }
 0x81f   : >> { %v5456_v17 = vpop.f32.mrf.mxu3  ;;  %v12659_v61 = vadd.f32 %v5591_v57, %v5433_v61   ;;  %v5593_v52 = vpop.f32.mrf.mxu0  ;;  %v5092_v60 = vadd.f32 %v5082_v46, %v4920_v50  ;;  %v13043_v50 = vmov %v12657_v43  ;;  %v9266_v46 = vld [vmem:[%s12939_s5 + $0x3f8] sm:$0xff] (%p12682_p1)  ;;  %v9255_v57 = vld [vmem:[%s12939_s5 + $0x3a0] sm:$0xff] (%p12682_p1) }
 0x820   : >> { %v5470_v49 = vadd.f32 %v5456_v17, %v5298_v18  ;;  %5984 = vmatpush.bf16.msra.mxu3 (%p12682_p1), %v9266_v46  ;;  %v5656_v17 = vadd.f32 (%p12682_p1), %v12653_v15, %v11237_v51 }
 0x821   : >> { %v13032_v58 = vmov %v12659_v61 }
 0x822   : >> { %v12661_v22 = vadd.f32 %v5628_v12, %v5470_v49   ;;  %v5630_v47 = vpop.f32.mrf.mxu1  ;;  %v13050_v61 = vmov %v13032_v58  ;;  %v9263_v12 = vld [vmem:[%s12939_s5 + $0x3e0] sm:$0xff] (%p12682_p1)  ;;  %v5657_v49 = vadd.f32 (%p12682_p1), %v12657_v43, %v11237_v51  ;;  %v9246_v43 = vld [vmem:[%s12939_s5 + $0x358] sm:$0xff] (%p12682_p1) }
 0x823   : > { %v5655_v61 = vadd.f32 (%p12682_p1), %v12647_v53, %v11237_v51 }
 0x824   : >> { %v5421_v56 = vpop.f32.mrf.mxu2  ;;  %5985 = vmatpush.bf16.msra.mxu3 (%p12682_p1), %v9265_v48  ;;  %v5658_v53 = vadd.f32 (%p12682_p1), %v12661_v22, %v11237_v51  ;;  %v9272_v48 = vld [vmem:[%s12941_s7 + $0x28] sm:$0xff] (%p12682_p1) }
 0x825   : >> { %v5434_v26 = vadd.f32 %v5421_v56, %v5262_v27  ;;  %v5129_v27 = vadd.f32 %v5119_v25, %v4957_v23  ;;  %v9249_v25 = vld [vmem:[%s12939_s5 + $0x370] sm:$0xff] (%p12682_p1)  ;;  %v9254_v56 = vld [vmem:[%s12939_s5 + $0x398] sm:$0xff] (%p12682_p1) }
 0x827   : >> { %v5458_v34 = vpop.f32.mrf.mxu3  ;;  %v12663_v38 = vadd.f32 %v5593_v52, %v5434_v26   ;;  %v5596_v44 = vpop.f32.mrf.mxu0  ;;  %v5301_v24 = vadd.f32 %v12635_v21, %v5129_v27  ;;  %v13042_v27 = vmov %v12661_v22  ;;  %v13044_v26 = vmov %v12653_v15  ;;  %v9250_v21 = vld [vmem:[%s12939_s5 + $0x378] sm:$0xff] (%p12682_p1) }
 0x828   : >> { %v5471_v19 = vadd.f32 %v5458_v34, %v5299_v54  ;;  %v13054_v34 = vmov %v13028_v42  ;;  %5816 = vmatpush.bf16.msra.mxu1 (%p12682_p1), %v9250_v21  ;;  %5986 = vmatpush.bf16.msra.mxu3 (%p12682_p1), %v9264_v14  ;;  %v5648_v42 = vadd.f32 (%p12682_p1), %v13030_v39, %v11237_v51  ;;  %v5650_v52 = vadd.f32 (%p12682_p1), %v13032_v58, %v11237_v51  ;;  %v9238_v15 = vld [vmem:[%s12939_s5 + $0x318] sm:$0xff] (%p12682_p1)  ;;  %v9244_v27 = vld [vmem:[%s12939_s5 + $0x348] sm:$0xff] (%p12682_p1) }
 0x829   : >> { %v13033_v33 = vmov %v12663_v38  ;;  %v5264_v38 = vadd.f32 %v12633_v3, %v5092_v60  ;;  %v9242_v3 = vld [vmem:[%s12939_s5 + $0x338] sm:$0xff] (%p12682_p1)  ;;  %v5662_v34 = vmax.f32 (%p12682_p1), %v5646_v32, %v5647_v20  ;;  %v9268_v14 = vld [vmem:[%s12941_s7 + $0x8] sm:$0xff] (%p12682_p1) }
 0x82a   : >> { %v12665_v10 = vadd.f32 %v5630_v47, %v5471_v19   ;;  %v5633_v18 = vpop.f32.mrf.mxu1  ;;  %5732 = vmatpush.bf16.msra.mxu0 (%p12682_p1), %v9242_v3  ;;  %v5651_v1 = vadd.f32 (%p12682_p1), %v13033_v33, %v11237_v51  ;;  %v9262_v26 = vld [vmem:[%s12939_s5 + $0x3d8] sm:$0xff] (%p12682_p1)  ;;  %v5663_v19 = vmax.f32 (%p12682_p1), %v5654_v29, %v5655_v61  ;;  %v9259_v3 = vld [vmem:[%s12939_s5 + $0x3c0] sm:$0xff] (%p12682_p1) }
 0x82b   : > { %v9274_v21 = vld [vmem:[%s12941_s7 + $0x38] sm:$0xff] (%p12682_p1) }
 0x82c   : >> { %v5424_v37 = vpop.f32.mrf.mxu2  ;;  %5817 = vmatpush.bf16.msra.mxu1 (%p12682_p1), %v9249_v25  ;;  %5987 = vmatpush.bf16.msra.mxu3 (%p12682_p1), %v9263_v12 }
 0x82d   : >> { %v5435_v0 = vadd.f32 %v5424_v37, %v5263_v4  ;;  %v9245_v37 = vld [vmem:[%s12939_s5 + $0x350] sm:$0xff] (%p12682_p1) }
 0x82f   : >> { %v5461_v7 = vpop.f32.mrf.mxu3  ;;  %v12671_v0 = vadd.f32 %v5596_v44, %v5435_v0   ;;  %v5598_v40 = vpop.f32.mrf.mxu0  ;;  %v5830_v44 = vmax.f32 (%p12682_p1), %v5650_v52, %v5651_v1 }
 0x830   : >> { %v5472_v63 = vadd.f32 %v5461_v7, %v5300_v28  ;;  %v9258_v28 = vld [vmem:[%s12939_s5 + $0x3b8] sm:$0xff] (%p12682_p1)  ;;  %5818 = vmatpush.bf16.msra.mxu1 (%p12682_p1), %v9248_v45  ;;  %5988 = vmatpush.bf16.msra.mxu3 (%p12682_p1), %v9262_v26  ;;  %v9253_v7 = vld [vmem:[%s12939_s5 + $0x390] sm:$0xff] (%p12682_p1) }
 0x831   : >> { %v13034_v59 = vmov %v12671_v0  ;;  %5900 = vmatpush.bf16.msra.mxu2 (%p12682_p1), %v9258_v28  ;;  %v9270_v45 = vld [vmem:[%s12941_s7 + $0x18] sm:$0xff] (%p12682_p1) }
 0x832   : >> { %v12673_v23 = vadd.f32 %v5633_v18, %v5472_v63   ;;  %v5635_v2 = vpop.f32.mrf.mxu1  ;;  %v13048_v0 = vmov %v13034_v59  ;;  %v13053_v63 = vmov %v13029_v35  ;;  %v5649_v35 = vadd.f32 (%p12682_p1), %v13031_v6, %v11237_v51 }
 0x833   : > { %v5652_v6 = vadd.f32 (%p12682_p1), %v13034_v59, %v11237_v51  ;;  %v5664_v63 = vmax.f32 (%p12682_p1), %v5662_v34, %v5663_v19  ;;  %v9236_v59 = vld [vmem:[%s12939_s5 + $0x308] sm:$0xff] (%p12682_p1) }
 0x834   : >> { %v13035_v54 = vmov %v12673_v23  ;;  %v5426_v5 = vpop.f32.mrf.mxu2  ;;  %5819 = vmatpush.bf16.msra.mxu1 (%p12682_p1), %v9247_v36 }
 0x835   : >> { %v5436_v13 = vadd.f32 %v5426_v5, %v5264_v38  ;;  %v13040_v23 = vmov %v13035_v54  ;;  %v13049_v38 = vmov %v13033_v33  ;;  %5901 = vmatpush.bf16.msra.mxu2 (%p12682_p1), %v9257_v31  ;;  %v5660_v22 = vadd.f32 (%p12682_p1), %v13035_v54, %v11237_v51  ;;  %v9252_v5 = vld [vmem:[%s12939_s5 + $0x388] sm:$0xff] (%p12682_p1)  ;;  %v9273_v31 = vld [vmem:[%s12941_s7 + $0x30] sm:$0xff] (%p12682_p1) }
 0x836   : > { %v5746_v33 = vmax.f32 (%p12682_p1), %v5648_v42, %v5649_v35  ;;  %v9261_v23 = vld [vmem:[%s12939_s5 + $0x3d0] sm:$0xff] (%p12682_p1)  ;;  %v9931_v42 = vld [vmem:[%s12940_s6] ss:$0 sm:$0xff] (%p12682_p1) }
 0x837   : >> { %v5463_v30 = vpop.f32.mrf.mxu3  ;;  %5989 = vmatpush.bf16.msra.mxu3 (%p12682_p1), %v9261_v23 }
 0x838   : >> { %v5473_v4 = vadd.f32 %v5463_v30, %v5301_v24  ;;  %v12677_v30 = vadd.f32 %v5598_v40, %v5436_v13   ;;  %5820 = vmatpush.bf16.msra.mxu1 (%p12682_p1), %v9246_v43  ;;  %v9260_v24 = vld [vmem:[%s12939_s5 + $0x3c8] sm:$0xff] (%p12682_p1)  ;;  %v5665_v13 = vmax.f32 (%p12682_p1), %v5664_v63, 0.0  ;;  %v9235_v40 = vld [vmem:[%s12939_s5 + $0x300] sm:$0xff] (%p12682_p1) }
 0x839   : > { %4767 = sbr.rel (!%p12682_p1) target bundleno = 1782 (0x6f6), region = 250  ;;  %5902 = vmatpush.bf16.msra.mxu2 (%p12682_p1), %v9256_v9  ;;  %v9269_v9 = vld [vmem:[%s12941_s7 + $0x10] sm:$0xff] (%p12682_p1) }
 0x83a   : >> { %v13036_v8 = vmov %v12677_v30  ;;  %v12679_v55 = vadd.f32 %v5635_v2, %v5473_v4   ;;  %v13041_v4 = vmov %v12665_v10  ;;  %v13052_v2 = vmov %v13030_v39 }
 0x83b   : >> { %v13047_v30 = vmov %v13036_v8  ;;  %v5659_v39 = vadd.f32 (%p12682_p1), %v12665_v10, %v11237_v51  ;;  %v5653_v58 = vadd.f32 (%p12682_p1), %v13036_v8, %v11237_v51  ;;  %v5747_v10 = vmax.f32 (%p12682_p1), %v5656_v17, %v5657_v49  ;;  %v9243_v4 = vld [vmem:[%s12939_s5 + $0x340] sm:$0xff] (%p12682_p1)  ;;  %5990 = vmatpush.bf16.msra.mxu3 (%p12682_p1), %v9260_v24 }
 0x83c   : >> { %v13037_v16 = vmov %v12679_v55  ;;  %5821 = vmatpush.bf16.msra.mxu1 (%p12682_p1), %v9245_v37  ;;  %v5666_v28 = vpack.c.bf16 (%p12682_p1), %v5665_v13, %v5665_v13 }
 0x83d   : >> { %v13039_v55 = vmov %v13037_v16  ;;  %v5661_v47 = vadd.f32 (%p12682_p1), %v13037_v16, %v11237_v51  ;;  %5903 = vmatpush.bf16.msra.mxu2 (%p12682_p1), %v9255_v57  ;;  %v9237_v51 = vld [vmem:[%s12939_s5 + $0x310] sm:$0xff] (%p12682_p1)  ;;  %v5831_v50 = vmax.f32 (%p12682_p1), %v5658_v53, %v5659_v39  ;;  %v5914_v18 = vmax.f32 (%p12682_p1), %v5652_v6, %v5653_v58  ;;  %v9251_v16 = vld [vmem:[%s12939_s5 + $0x380] sm:$0xff] (%p12682_p1) }
 0x83e   : > { %v9241_v55 = vld [vmem:[%s12939_s5 + $0x330] sm:$0xff]  ;;  %v5748_v60 = vmax.f32 %v5746_v33, %v5747_v10 }
 0x83f   : > { %5733 = vmatpush.bf16.msra.mxu0 %v9241_v55  ;;  %v5915_v0 = vmax.f32 %v5660_v22, %v5661_v47  ;;  %v5832_v54 = vmax.f32 %v5830_v44, %v5831_v50  ;;  %5991 = vmatpush.bf16.msra.mxu3 %v9259_v3 }
 0x840   : > { %v5749_v30 = vmax.f32 %v5748_v60, 0.0  ;;  %5822 = vmatpush.bf16.msra.mxu1 %v9244_v27 }
 0x841   : > { %5904 = vmatpush.bf16.msra.mxu2 %v9254_v56  ;;  %v5916_v38 = vmax.f32 %v5914_v18, %v5915_v0  ;;  %v5833_v2 = vmax.f32 %v5832_v54, 0.0 }
 0x842   : > { %v5750_v46 = vpack.c.bf16 %v5749_v30, %v5749_v30 }
 0x843   : > { %5734 = vmatpush.bf16.msra.mxu0 %v9240_v11  ;;  %v5917_v8 = vmax.f32 %v5916_v38, 0.0  ;;  %v5834_v55 = vpack.c.bf16 %v5833_v2, %v5833_v2  ;;  %v9271_v11 = vld [vmem:[%s12941_s7 + $0x20] sm:$0xff] }
 0x844   : > { %5823 = vmatpush.bf16.msra.mxu1 %v9243_v4 }
 0x845   : > { %5905 = vmatpush.bf16.msra.mxu2 %v9253_v7  ;;  %v5918_v25 = vpack.c.bf16 %v5917_v8, %v5917_v8 }
 0x847   : > { %5735 = vmatpush.bf16.msra.mxu0 %v9239_v62  ;;  %5824 = vmatmul.bf16.vlgmr.msra.gmra.mxu1 %v5750_v46  ;;  %v9267_v62 = vld [vmem:[%s12941_s7] sm:$0xff] }
 0x848   : > { %5992 = vmatmul.bf16.vlgmr.msra.gmra.mxu3 %v5918_v25 }
 0x849   : > { %5906 = vmatpush.bf16.msra.mxu2 %v9252_v5 }
 0x84b   : > { %5736 = vmatpush.bf16.msra.mxu0 %v9238_v15 }
 0x84d   : > { %5907 = vmatpush.bf16.msra.mxu2 %v9251_v16 }
 0x84f   : > { %5737 = vmatpush.bf16.msra.mxu0 %v9237_v51 }
 0x850   : > { %5908 = vmatmul.bf16.vlgmr.msra.gmra.mxu2 %v5834_v55 }
 0x853   : > { %5738 = vmatpush.bf16.msra.mxu0 %v9236_v59 }
 0x857   : > { %5739 = vmatpush.bf16.msra.mxu0 %v9235_v40 }
 0x85a   : > { %5740 = vmatmul.bf16.vlgmr.msra.gmra.mxu0 %v5666_v28 }
 0x85b   : > { %6073 = vmatpush.bf16.msrb.mxu0 %v9274_v21 }
 0x85f   : > { %6074 = vmatpush.bf16.msrb.mxu0 %v9273_v31 }
 0x863   : > { %6075 = vmatpush.bf16.msrb.mxu0 %v9272_v48 }
 0x867   : > { %6076 = vmatpush.bf16.msrb.mxu0 %v9271_v11 }
 0x86b   : > { %6077 = vmatpush.bf16.msrb.mxu0 %v9270_v45 }
 0x86f   : > { %6078 = vmatpush.bf16.msrb.mxu0 %v9269_v9 }
 0x873   : > { %6079 = vmatpush.bf16.msrb.mxu0 %v9268_v14 }
 0x877   : > { %6080 = vmatpush.bf16.msrb.mxu0 %v9267_v62 }
 0x8c4   : > { %v5825_v32 = vpop.f32.mrf.mxu1 }
 0x8cb   : > { %v5993_v29 = vpop.f32.mrf.mxu3 }
 0x8cc   : > { %v5827_v17 = vpop.f32.mrf.mxu1 }
 0x8d3   : > { %v5909_v12 = vpop.f32.mrf.mxu2  ;;  %v5995_v39 = vpop.f32.mrf.mxu3 }
 0x8d7   : > { %v5741_v36 = vpop.f32.mrf.mxu0 }
 0x8d8   : > { %v5745_v20 = vadd.f32 %v5741_v36, %v12357_v41  ;;  %v9932_v41 = vld [vmem:[%s12942_s8] ss:$0 sm:$0xff] }
 0x8da   : > { %v5829_v57 = vadd.f32 %v5825_v32, %v5745_v20 }
 0x8db   : > { %v5911_v53 = vpop.f32.mrf.mxu2 }
 0x8dc   : > { %v5913_v61 = vadd.f32 %v5909_v12, %v5829_v57 }
 0x8de   : > { %v5997_v49 = vadd.f32 %v5993_v29, %v5913_v61 }
 0x8df   : > { %v5743_v35 = vpop.f32.mrf.mxu0 }
 0x8e0   : > { %v6002_v52 = vadd.f32 %v9931_v42, %v5997_v49 }
 0x8e2   : > { %v6003_v1 = vmax.f32 %v6002_v52, 0.0 }
 0x8e4   : > { %v6004_v6 = vpack.c.bf16 %v6003_v1, %v6003_v1 }
 0x8e6   : > { %6081 = vmatmul.bf16.vlgmr.msrb.gmra.mxu0 %v6004_v6 }
 0x963   : > { %v6082_v15 = vpop.f32.mrf.mxu0 }
 0x964   : > { %v6083_v43 = vadd.f32 %v9932_v41, %v6082_v15 }
 0x966   : > { %6086 = vmax.xlane.f32.xlu0 %v6083_v43 }
 0x96b   : > { %v6084_v58 = vpop.f32.mrf.mxu0 }
 0x9d9   : > { %v6087_v22 = vpop.xlane.xlu0 %6086 }
 0x9da   : > { %v6088_v47 = vsub.f32 %v6083_v43, %v6087_v22 }
 0x9dc   : > { %v6089_v56 = vmul.f32 1.442695, %v6088_v47 }
 0x9de   : > { %9933 = vpow2.f32 %v6089_v56 }
 0x9e4   : > { %v9934_v26 = vpop.eup %9933 }
 0x9e5   : > { %6091 = vadd.xlane.f32.xlu0 %v9934_v26 }
 0xa58   : > { %v6092_v34 = vpop.xlane.xlu0 %6091 }
 0xa59   : > { %9935 = vlog2.f32 %v6092_v34 }
 0xa5f   : > { %v9936_v19 = vpop.eup %9935 }
 0xa60   : > { %v6094_v33 = vmul.f32 0.6931472, %v9936_v19 }
 0xa62   : > { %v6095_v10 = vsub.f32 %v6088_v47, %v6094_v33 }
 0xa64   : > { %6096 = vst [vmem:[%s325_s27] sm:$0xff] %v6095_v10 }
 0xa65   : > { %9964 = shalt.err (!%p9961_p10)
}
 0xa66   : > { %9340 = dma.vmem_to_hbm [thread:$0]  (%p10641_p5), %s6111_s23, 128, %s6113_s16, %s6098_s22  }
 0xa67 PF: > { %p9346_p11 = scmp.ge.s32.totalorder %s10275_s12, 2  ;;  %s6124_s26 = sand.u32 1, %s10263_s30  }
 0xa68   : > { %s6125_s27 = scalar_lea.sflag [#allocation4], %s6124_s26 }
 0xa69   : > { %p9343_p12 = pnand %p9346_p11, %p10645_p6 }
 0xa6b   : > { %p9344_p13 = pneg %p9343_p12 }
 0xa6d   : > { %10258 = dma.done.wait (%p9344_p13), %s6125_s27, 128  }
 0xa6e   : > { %10260 = vsyncadd (%p9344_p13), %s6125_s27, 4294967168  ;;  %p19_p0 = scmp.ge.s32.totalorder %s10628_s15, 4   ;;  %s13056_s30 = smov %s10267_s10 }
 0xa6f   : > { %s13057_s10 = smov %s10271_s11  ;;  %s13058_s11 = smov %s10639_s18 }
 0xa70   : > { %s13059_s12 = smov %s10628_s15  ;;  %21 = sbr.rel (!%p19_p0) target bundleno = 3 (0x3), region = 261 }
 0xa75   :  { %6131 = vsyncpa [#allocation4], 1 }
 0xa76   :  { %6133 = vsyncpa [#allocation4 + $0x1], 1 }

</bundles_post_ra>
